<compile_context>
chip_gen: v5e
topology: v5e:2x2
jax: 0.10.0
libtpu: 0.0.40
codegen_flags: <defaults>
</compile_context>

<pallas_src>
import functools

import jax
import jax.numpy as jnp
from jax.experimental import pallas as pl
from jax.experimental.pallas import tpu as pltpu


# ----------------------------------------------------------------------------
# Fused kernel: one batch element per grid step.
#   x_ref     : (1, N, C)    input rows
#   wqkv_ref  : (C, 3C)      grid-invariant QKV weight (stored (in, out))
#   wproj_ref : (C, C)       grid-invariant proj weight (stored (in, out))
#   bproj_ref : (1, C)       grid-invariant proj bias
#   o_ref     : (1, N, C)    output rows (lane-dense C)
#   qkv_ref   : (N, 3C) f32  VMEM scratch: QKV projection result
#   acc_ref   : (N, C)  f32  VMEM scratch: merged-head attention output
# ----------------------------------------------------------------------------
def fused_attention_kernel(x_ref, wqkv_ref, wproj_ref, bproj_ref, o_ref,
                           qkv_ref, acc_ref, *, nhead, scale):
    N, C = acc_ref.shape
    hd = C // nhead

    x = x_ref[0]  # (N, C)

    # QKV projection (qkv_bias=False): lane-dense 3C-wide MXU matmul, parked in VMEM scratch
    # so that only one head's tiles are live in vregs at a time.
    qkv_ref[...] = jnp.dot(x, wqkv_ref[...], preferred_element_type=jnp.float32)

    # PyTorch channel layout of the QKV output is [3, nhead, hd]:
    #   q_h = qkv[:, h*hd:(h+1)*hd], k_h = qkv[:, C+h*hd:...], v_h = qkv[:, 2C+h*hd:...]
    # Static Python loop over heads (nhead small); each iteration's (N, N) tile is consumed
    # in-iteration, so live ranges stay bounded.
    for h in range(nhead):
        q_h = qkv_ref[:, h * hd:(h + 1) * hd] * scale          # scale folded into q (N*hd muls)
        k_h = qkv_ref[:, C + h * hd:C + (h + 1) * hd]
        v_h = qkv_ref[:, 2 * C + h * hd:2 * C + (h + 1) * hd]

        # s = q_h @ k_h^T without an explicit transpose.
        s = jax.lax.dot_general(q_h, k_h, (((1,), (1,)), ((), ())),
                                preferred_element_type=jnp.float32)   # (N, N) f32
        m = jnp.max(s, axis=-1, keepdims=True)
        p = jnp.exp(s - m)                                            # unnormalized probabilities
        l = jnp.sum(p, axis=-1, keepdims=True)
        # attn_drop p=0.0 -> identity.
        # bf16 MXU feed with f32 accumulation; normalize the (N, hd) result (not (N, N) probs)
        # with an EUP approximate reciprocal.
        pv = jnp.dot(p.astype(jnp.bfloat16), v_h.astype(jnp.bfloat16),
                     preferred_element_type=jnp.float32)              # (N, hd) f32
        acc_ref[:, h * hd:(h + 1) * hd] = pv * pl.reciprocal(l, approx=True)

    # Output projection + bias on the merged-head, lane-dense (N, C) activation.
    out = jnp.dot(acc_ref[...], wproj_ref[...], preferred_element_type=jnp.float32)
    out = out + bproj_ref[...]                 # proj_drop p=0.0 -> identity
    o_ref[0] = out.astype(o_ref.dtype)


def _vmem_limit_bytes(N, C):
    """Derive the VMEM ask from the actual per-block footprint (f32), with headroom."""
    f32 = 4
    io_blocks = 2 * (2 * N * C) * f32              # x + out blocks, double-buffered
    weights = 2 * (C * 3 * C + C * C + C) * f32    # qkv/proj weights + bias, double-buffered
    scratch = (N * 3 * C + N * C) * f32            # qkv + merged-head scratch
    live = (2 * N * N + 6 * N * C) * f32           # score tile + misc intermediates
    need = int(1.5 * (io_blocks + weights + scratch + live))
    return min(max(need, 16 * 1024 * 1024), 64 * 1024 * 1024)


# ----------------------------------------------------------------------------
# Full module forward.  Weights stored transposed vs PyTorch: (in, out).
# ----------------------------------------------------------------------------
def attention_pallas(x, w_qkv, w_proj, b_proj, *, nhead):
    B, N, C = x.shape
    assert C % nhead == 0, "d_model needs to be divisible by nhead"
    hd = C // nhead
    scale = float(hd) ** (-0.5)

    kernel = functools.partial(fused_attention_kernel, nhead=nhead, scale=scale)

    flops = B * (2 * N * C * 3 * C                 # qkv projection
                 + nhead * 4 * N * N * hd          # q@k^T + p@v
                 + 2 * N * C * C)                  # output projection
    transcendentals = B * nhead * N * N            # exp
    bytes_accessed = 4 * (2 * B * N * C + C * 3 * C + C * C + C)

    # NOTE: whole-sequence-per-block attention; for long N add a flash-style online-softmax
    # key-tile grid axis ("arbitrary") before scaling N (v7x has only 64 MiB VMEM).
    return pl.pallas_call(
        kernel,
        out_shape=jax.ShapeDtypeStruct((B, N, C), x.dtype),
        grid_spec=pltpu.PrefetchScalarGridSpec(
            num_scalar_prefetch=0,
            grid=(B,),
            in_specs=[
                pl.BlockSpec((1, N, C), lambda b: (b, 0, 0)),   # x: one batch element
                pl.BlockSpec((C, 3 * C), lambda b: (0, 0)),     # w_qkv: grid-invariant
                pl.BlockSpec((C, C), lambda b: (0, 0)),         # w_proj: grid-invariant
                pl.BlockSpec((1, C), lambda b: (0, 0)),         # b_proj: grid-invariant
            ],
            out_specs=pl.BlockSpec((1, N, C), lambda b: (b, 0, 0)),
            scratch_shapes=[
                pltpu.VMEM((N, 3 * C), jnp.float32),   # qkv projection scratch
                pltpu.VMEM((N, C), jnp.float32),       # merged-head attention output
            ],
        ),
        compiler_params=pltpu.CompilerParams(
            dimension_semantics=("parallel",),
            vmem_limit_bytes=_vmem_limit_bytes(N, C),
        ),
        cost_estimate=pl.CostEstimate(
            flops=flops, transcendentals=transcendentals, bytes_accessed=bytes_accessed
        ),
    )(x, w_qkv, w_proj, b_proj.reshape(1, C))


# ----------------------------------------------------------------------------
# Pure-JAX reference (matches the PyTorch forward).
# ----------------------------------------------------------------------------
def attention_reference(x, w_qkv, w_proj, b_proj, *, nhead):
    B, N, C = x.shape
    hd = C // nhead
    scale = float(hd) ** (-0.5)
    hi = jax.lax.Precision.HIGHEST
    qkv = jnp.einsum("bnc,ck->bnk", x, w_qkv, precision=hi).reshape(B, N, 3, nhead, hd)
    qkv = jnp.transpose(qkv, (2, 0, 3, 1, 4))
    q, k, v = qkv[0], qkv[1], qkv[2]
    attn = jnp.einsum("bhqd,bhkd->bhqk", q, k, precision=hi) * scale
    attn = jax.nn.softmax(attn, axis=-1)
    o = jnp.einsum("bhqk,bhkd->bhqd", attn, v, precision=hi)
    o = jnp.transpose(o, (0, 2, 1, 3)).reshape(B, N, C)
    return (jnp.einsum("mc,co->mo", o.reshape(B * N, C), w_proj, precision=hi)
            + b_proj).reshape(B, N, C)


if __name__ == "__main__":
    key = jax.random.PRNGKey(0)
    # Attention(d_model=128, nhead=8, qkv_bias=False, attn_drop=0.0, proj_drop=0.0)
    # d_model and seq chosen as multiples of 128 so channel/lane dims are dense.
    B, N, d_model, nhead = 2, 128, 128, 8

    k_x, k_wqkv, k_wproj, k_bproj = jax.random.split(key, 4)
    x = jax.random.normal(k_x, (B, N, d_model), dtype=jnp.float32)
    # PyTorch nn.Linear weights are (out, in); we store the transposed (in, out) layout.
    w_qkv = jax.random.normal(k_wqkv, (d_model, 3 * d_model), dtype=jnp.float32) * 0.05
    w_proj = jax.random.normal(k_wproj, (d_model, d_model), dtype=jnp.float32) * 0.05
    b_proj = jax.random.normal(k_bproj, (d_model,), dtype=jnp.float32) * 0.05

    out = attention_pallas(x, w_qkv, w_proj, b_proj, nhead=nhead)
    out = jax.block_until_ready(out)

    ref = attention_reference(x, w_qkv, w_proj, b_proj, nhead=nhead)
    # Tolerance loosened vs the pure-f32 version: PV matmul runs in bf16 (f32 accumulation) and
    # the softmax denominator uses the EUP approximate reciprocal, per the perf review.
    assert jnp.allclose(out, ref, atol=5e-3, rtol=5e-3), "mismatch vs JAX reference"

    print("KERNEL_OK")
</pallas_src>

<mosaic_0001>
module attributes {stable_mosaic.version = 11 : i64} {
  func.func @fused_attention_kernel(%arg0: i32, %arg1: memref<1x128x128xf32, #tpu.memory_space<vmem>>, %arg2: memref<128x384xf32, #tpu.memory_space<vmem>>, %arg3: memref<128x128xf32, #tpu.memory_space<vmem>>, %arg4: memref<1x128xf32, #tpu.memory_space<vmem>>, %arg5: memref<1x128x128xf32, #tpu.memory_space<vmem>>, %arg6: memref<128x384xf32, #tpu.memory_space<vmem>>, %arg7: memref<128x128xf32, #tpu.memory_space<vmem>>) attributes {dimension_semantics = [#tpu.dimension_semantics<parallel>], iteration_bounds = array<i64: 2>, scalar_prefetch = 0 : i64, scratch_operands = 2 : i64, tpu.core_type = #tpu.core_type<tc>, window_params = [{transform_indices = @transform_0, window_bounds = array<i64: 1, 128, 128>}, {pipeline_mode = #tpu.pipeline_mode<synchronous>, transform_indices = @transform_1, window_bounds = array<i64: 128, 384>}, {pipeline_mode = #tpu.pipeline_mode<synchronous>, transform_indices = @transform_2, window_bounds = array<i64: 128, 128>}, {pipeline_mode = #tpu.pipeline_mode<synchronous>, transform_indices = @transform_3, window_bounds = array<i64: 1, 128>}, {transform_indices = @transform_4, window_bounds = array<i64: 1, 128, 128>}]} {
    %c0 = arith.constant 0 : index
    %c0_0 = arith.constant 0 : index
    %c0_1 = arith.constant 0 : index
    %0 = vector.load %arg1[%c0, %c0_0, %c0_1] : memref<1x128x128xf32, #tpu.memory_space<vmem>>, vector<1x128x128xf32>
    %1 = vector.shape_cast %0 : vector<1x128x128xf32> to vector<128x128xf32>
    %c0_2 = arith.constant 0 : index
    %c0_3 = arith.constant 0 : index
    %2 = vector.load %arg2[%c0_2, %c0_3] : memref<128x384xf32, #tpu.memory_space<vmem>>, vector<128x384xf32>
    %cst = arith.constant dense<0.000000e+00> : vector<128x384xf32>
    %3 = tpu.matmul %1, %2, %cst {dimension_numbers = #tpu.dot_dimension_numbers<[1], [0], [0], [1], [0, 0, 1, 1], [], []>} : vector<128x128xf32>, vector<128x384xf32>, vector<128x384xf32> -> vector<128x384xf32>
    %c0_4 = arith.constant 0 : index
    %c0_5 = arith.constant 0 : index
    %4 = vector.load %arg6[%c0_4, %c0_5] : memref<128x384xf32, #tpu.memory_space<vmem>>, vector<128x384xf32>
    tpu.vector_store %arg6[%c0_4, %c0_5], %3 {strides = array<i32>} : memref<128x384xf32, #tpu.memory_space<vmem>>, vector<128x384xf32>,
    %c0_6 = arith.constant 0 : index
    %c0_7 = arith.constant 0 : index
    %5 = vector.load %arg6[%c0_6, %c0_7] : memref<128x384xf32, #tpu.memory_space<vmem>>, vector<128x16xf32>
    %cst_8 = arith.constant 2.500000e-01 : f32
    %6 = vector.broadcast %cst_8 : f32 to vector<128x16xf32>
    %7 = arith.mulf %5, %6 : vector<128x16xf32>
    %c0_9 = arith.constant 0 : index
    %c128 = arith.constant 128 : index
    %8 = vector.load %arg6[%c0_9, %c128] : memref<128x384xf32, #tpu.memory_space<vmem>>, vector<128x16xf32>
    %c0_10 = arith.constant 0 : index
    %c256 = arith.constant 256 : index
    %9 = vector.load %arg6[%c0_10, %c256] : memref<128x384xf32, #tpu.memory_space<vmem>>, vector<128x16xf32>
    %cst_11 = arith.constant dense<0.000000e+00> : vector<128x128xf32>
    %10 = tpu.matmul %7, %8, %cst_11 {dimension_numbers = #tpu.dot_dimension_numbers<[1], [1], [0], [0], [0, 0, 1, 0], [], []>} : vector<128x16xf32>, vector<128x16xf32>, vector<128x128xf32> -> vector<128x128xf32>
    %cst_12 = arith.constant dense<0xFF800000> : vector<128xf32>
    %11 = vector.multi_reduction <maximumf>, %10, %cst_12 [1] : vector<128x128xf32> to vector<128xf32>
    %12 = vector.shape_cast %11 : vector<128xf32> to vector<128x1xf32>
    %13 = vector.broadcast %12 : vector<128x1xf32> to vector<128x128xf32>
    %14 = arith.subf %10, %13 : vector<128x128xf32>
    %15 = math.exp %14 : vector<128x128xf32>
    %cst_13 = arith.constant dense<0.000000e+00> : vector<128xf32>
    %16 = vector.multi_reduction <add>, %15, %cst_13 [1] : vector<128x128xf32> to vector<128xf32>
    %17 = vector.shape_cast %16 : vector<128xf32> to vector<128x1xf32>
    %18 = arith.truncf %15 : vector<128x128xf32> to vector<128x128xbf16>
    %19 = arith.truncf %9 : vector<128x16xf32> to vector<128x16xbf16>
    %cst_14 = arith.constant dense<0.000000e+00> : vector<128x16xf32>
    %20 = tpu.matmul %18, %19, %cst_14 {dimension_numbers = #tpu.dot_dimension_numbers<[1], [0], [0], [1], [0, 0, 1, 1], [], []>} : vector<128x128xbf16>, vector<128x16xbf16>, vector<128x16xf32> -> vector<128x16xf32>
    %21 = tpu.reciprocal %17 {approx = true} : vector<128x1xf32> -> vector<128x1xf32>
    %22 = vector.broadcast %21 : vector<128x1xf32> to vector<128x16xf32>
    %23 = arith.mulf %20, %22 : vector<128x16xf32>
    %c0_15 = arith.constant 0 : index
    %c0_16 = arith.constant 0 : index
    %24 = vector.load %arg7[%c0_15, %c0_16] : memref<128x128xf32, #tpu.memory_space<vmem>>, vector<128x16xf32>
    tpu.vector_store %arg7[%c0_15, %c0_16], %23 {strides = array<i32>} : memref<128x128xf32, #tpu.memory_space<vmem>>, vector<128x16xf32>,
    %c0_17 = arith.constant 0 : index
    %c16 = arith.constant 16 : index
    %25 = vector.load %arg6[%c0_17, %c16] : memref<128x384xf32, #tpu.memory_space<vmem>>, vector<128x16xf32>
    %cst_18 = arith.constant 2.500000e-01 : f32
    %26 = vector.broadcast %cst_18 : f32 to vector<128x16xf32>
    %27 = arith.mulf %25, %26 : vector<128x16xf32>
    %c0_19 = arith.constant 0 : index
    %c144 = arith.constant 144 : index
    %28 = vector.load %arg6[%c0_19, %c144] : memref<128x384xf32, #tpu.memory_space<vmem>>, vector<128x16xf32>
    %c0_20 = arith.constant 0 : index
    %c272 = arith.constant 272 : index
    %29 = vector.load %arg6[%c0_20, %c272] : memref<128x384xf32, #tpu.memory_space<vmem>>, vector<128x16xf32>
    %cst_21 = arith.constant dense<0.000000e+00> : vector<128x128xf32>
    %30 = tpu.matmul %27, %28, %cst_21 {dimension_numbers = #tpu.dot_dimension_numbers<[1], [1], [0], [0], [0, 0, 1, 0], [], []>} : vector<128x16xf32>, vector<128x16xf32>, vector<128x128xf32> -> vector<128x128xf32>
    %cst_22 = arith.constant dense<0xFF800000> : vector<128xf32>
    %31 = vector.multi_reduction <maximumf>, %30, %cst_22 [1] : vector<128x128xf32> to vector<128xf32>
    %32 = vector.shape_cast %31 : vector<128xf32> to vector<128x1xf32>
    %33 = vector.broadcast %32 : vector<128x1xf32> to vector<128x128xf32>
    %34 = arith.subf %30, %33 : vector<128x128xf32>
    %35 = math.exp %34 : vector<128x128xf32>
    %cst_23 = arith.constant dense<0.000000e+00> : vector<128xf32>
    %36 = vector.multi_reduction <add>, %35, %cst_23 [1] : vector<128x128xf32> to vector<128xf32>
    %37 = vector.shape_cast %36 : vector<128xf32> to vector<128x1xf32>
    %38 = arith.truncf %35 : vector<128x128xf32> to vector<128x128xbf16>
    %39 = arith.truncf %29 : vector<128x16xf32> to vector<128x16xbf16>
    %cst_24 = arith.constant dense<0.000000e+00> : vector<128x16xf32>
    %40 = tpu.matmul %38, %39, %cst_24 {dimension_numbers = #tpu.dot_dimension_numbers<[1], [0], [0], [1], [0, 0, 1, 1], [], []>} : vector<128x128xbf16>, vector<128x16xbf16>, vector<128x16xf32> -> vector<128x16xf32>
    %41 = tpu.reciprocal %37 {approx = true} : vector<128x1xf32> -> vector<128x1xf32>
    %42 = vector.broadcast %41 : vector<128x1xf32> to vector<128x16xf32>
    %43 = arith.mulf %40, %42 : vector<128x16xf32>
    %c0_25 = arith.constant 0 : index
    %c16_26 = arith.constant 16 : index
    %44 = vector.load %arg7[%c0_25, %c16_26] : memref<128x128xf32, #tpu.memory_space<vmem>>, vector<128x16xf32>
    tpu.vector_store %arg7[%c0_25, %c16_26], %43 {strides = array<i32>} : memref<128x128xf32, #tpu.memory_space<vmem>>, vector<128x16xf32>,
    %c0_27 = arith.constant 0 : index
    %c32 = arith.constant 32 : index
    %45 = vector.load %arg6[%c0_27, %c32] : memref<128x384xf32, #tpu.memory_space<vmem>>, vector<128x16xf32>
    %cst_28 = arith.constant 2.500000e-01 : f32
    %46 = vector.broadcast %cst_28 : f32 to vector<128x16xf32>
    %47 = arith.mulf %45, %46 : vector<128x16xf32>
    %c0_29 = arith.constant 0 : index
    %c160 = arith.constant 160 : index
    %48 = vector.load %arg6[%c0_29, %c160] : memref<128x384xf32, #tpu.memory_space<vmem>>, vector<128x16xf32>
    %c0_30 = arith.constant 0 : index
    %c288 = arith.constant 288 : index
    %49 = vector.load %arg6[%c0_30, %c288] : memref<128x384xf32, #tpu.memory_space<vmem>>, vector<128x16xf32>
    %cst_31 = arith.constant dense<0.000000e+00> : vector<128x128xf32>
    %50 = tpu.matmul %47, %48, %cst_31 {dimension_numbers = #tpu.dot_dimension_numbers<[1], [1], [0], [0], [0, 0, 1, 0], [], []>} : vector<128x16xf32>, vector<128x16xf32>, vector<128x128xf32> -> vector<128x128xf32>
    %cst_32 = arith.constant dense<0xFF800000> : vector<128xf32>
    %51 = vector.multi_reduction <maximumf>, %50, %cst_32 [1] : vector<128x128xf32> to vector<128xf32>
    %52 = vector.shape_cast %51 : vector<128xf32> to vector<128x1xf32>
    %53 = vector.broadcast %52 : vector<128x1xf32> to vector<128x128xf32>
    %54 = arith.subf %50, %53 : vector<128x128xf32>
    %55 = math.exp %54 : vector<128x128xf32>
    %cst_33 = arith.constant dense<0.000000e+00> : vector<128xf32>
    %56 = vector.multi_reduction <add>, %55, %cst_33 [1] : vector<128x128xf32> to vector<128xf32>
    %57 = vector.shape_cast %56 : vector<128xf32> to vector<128x1xf32>
    %58 = arith.truncf %55 : vector<128x128xf32> to vector<128x128xbf16>
    %59 = arith.truncf %49 : vector<128x16xf32> to vector<128x16xbf16>
    %cst_34 = arith.constant dense<0.000000e+00> : vector<128x16xf32>
    %60 = tpu.matmul %58, %59, %cst_34 {dimension_numbers = #tpu.dot_dimension_numbers<[1], [0], [0], [1], [0, 0, 1, 1], [], []>} : vector<128x128xbf16>, vector<128x16xbf16>, vector<128x16xf32> -> vector<128x16xf32>
    %61 = tpu.reciprocal %57 {approx = true} : vector<128x1xf32> -> vector<128x1xf32>
    %62 = vector.broadcast %61 : vector<128x1xf32> to vector<128x16xf32>
    %63 = arith.mulf %60, %62 : vector<128x16xf32>
    %c0_35 = arith.constant 0 : index
    %c32_36 = arith.constant 32 : index
    %64 = vector.load %arg7[%c0_35, %c32_36] : memref<128x128xf32, #tpu.memory_space<vmem>>, vector<128x16xf32>
    tpu.vector_store %arg7[%c0_35, %c32_36], %63 {strides = array<i32>} : memref<128x128xf32, #tpu.memory_space<vmem>>, vector<128x16xf32>,
    %c0_37 = arith.constant 0 : index
    %c48 = arith.constant 48 : index
    %65 = vector.load %arg6[%c0_37, %c48] : memref<128x384xf32, #tpu.memory_space<vmem>>, vector<128x16xf32>
    %cst_38 = arith.constant 2.500000e-01 : f32
    %66 = vector.broadcast %cst_38 : f32 to vector<128x16xf32>
    %67 = arith.mulf %65, %66 : vector<128x16xf32>
    %c0_39 = arith.constant 0 : index
    %c176 = arith.constant 176 : index
    %68 = vector.load %arg6[%c0_39, %c176] : memref<128x384xf32, #tpu.memory_space<vmem>>, vector<128x16xf32>
    %c0_40 = arith.constant 0 : index
    %c304 = arith.constant 304 : index
    %69 = vector.load %arg6[%c0_40, %c304] : memref<128x384xf32, #tpu.memory_space<vmem>>, vector<128x16xf32>
    %cst_41 = arith.constant dense<0.000000e+00> : vector<128x128xf32>
    %70 = tpu.matmul %67, %68, %cst_41 {dimension_numbers = #tpu.dot_dimension_numbers<[1], [1], [0], [0], [0, 0, 1, 0], [], []>} : vector<128x16xf32>, vector<128x16xf32>, vector<128x128xf32> -> vector<128x128xf32>
    %cst_42 = arith.constant dense<0xFF800000> : vector<128xf32>
    %71 = vector.multi_reduction <maximumf>, %70, %cst_42 [1] : vector<128x128xf32> to vector<128xf32>
    %72 = vector.shape_cast %71 : vector<128xf32> to vector<128x1xf32>
    %73 = vector.broadcast %72 : vector<128x1xf32> to vector<128x128xf32>
    %74 = arith.subf %70, %73 : vector<128x128xf32>
    %75 = math.exp %74 : vector<128x128xf32>
    %cst_43 = arith.constant dense<0.000000e+00> : vector<128xf32>
    %76 = vector.multi_reduction <add>, %75, %cst_43 [1] : vector<128x128xf32> to vector<128xf32>
    %77 = vector.shape_cast %76 : vector<128xf32> to vector<128x1xf32>
    %78 = arith.truncf %75 : vector<128x128xf32> to vector<128x128xbf16>
    %79 = arith.truncf %69 : vector<128x16xf32> to vector<128x16xbf16>
    %cst_44 = arith.constant dense<0.000000e+00> : vector<128x16xf32>
    %80 = tpu.matmul %78, %79, %cst_44 {dimension_numbers = #tpu.dot_dimension_numbers<[1], [0], [0], [1], [0, 0, 1, 1], [], []>} : vector<128x128xbf16>, vector<128x16xbf16>, vector<128x16xf32> -> vector<128x16xf32>
    %81 = tpu.reciprocal %77 {approx = true} : vector<128x1xf32> -> vector<128x1xf32>
    %82 = vector.broadcast %81 : vector<128x1xf32> to vector<128x16xf32>
    %83 = arith.mulf %80, %82 : vector<128x16xf32>
    %c0_45 = arith.constant 0 : index
    %c48_46 = arith.constant 48 : index
    %84 = vector.load %arg7[%c0_45, %c48_46] : memref<128x128xf32, #tpu.memory_space<vmem>>, vector<128x16xf32>
    tpu.vector_store %arg7[%c0_45, %c48_46], %83 {strides = array<i32>} : memref<128x128xf32, #tpu.memory_space<vmem>>, vector<128x16xf32>,
    %c0_47 = arith.constant 0 : index
    %c64 = arith.constant 64 : index
    %85 = vector.load %arg6[%c0_47, %c64] : memref<128x384xf32, #tpu.memory_space<vmem>>, vector<128x16xf32>
    %cst_48 = arith.constant 2.500000e-01 : f32
    %86 = vector.broadcast %cst_48 : f32 to vector<128x16xf32>
    %87 = arith.mulf %85, %86 : vector<128x16xf32>
    %c0_49 = arith.constant 0 : index
    %c192 = arith.constant 192 : index
    %88 = vector.load %arg6[%c0_49, %c192] : memref<128x384xf32, #tpu.memory_space<vmem>>, vector<128x16xf32>
    %c0_50 = arith.constant 0 : index
    %c320 = arith.constant 320 : index
    %89 = vector.load %arg6[%c0_50, %c320] : memref<128x384xf32, #tpu.memory_space<vmem>>, vector<128x16xf32>
    %cst_51 = arith.constant dense<0.000000e+00> : vector<128x128xf32>
    %90 = tpu.matmul %87, %88, %cst_51 {dimension_numbers = #tpu.dot_dimension_numbers<[1], [1], [0], [0], [0, 0, 1, 0], [], []>} : vector<128x16xf32>, vector<128x16xf32>, vector<128x128xf32> -> vector<128x128xf32>
    %cst_52 = arith.constant dense<0xFF800000> : vector<128xf32>
    %91 = vector.multi_reduction <maximumf>, %90, %cst_52 [1] : vector<128x128xf32> to vector<128xf32>
    %92 = vector.shape_cast %91 : vector<128xf32> to vector<128x1xf32>
    %93 = vector.broadcast %92 : vector<128x1xf32> to vector<128x128xf32>
    %94 = arith.subf %90, %93 : vector<128x128xf32>
    %95 = math.exp %94 : vector<128x128xf32>
    %cst_53 = arith.constant dense<0.000000e+00> : vector<128xf32>
    %96 = vector.multi_reduction <add>, %95, %cst_53 [1] : vector<128x128xf32> to vector<128xf32>
    %97 = vector.shape_cast %96 : vector<128xf32> to vector<128x1xf32>
    %98 = arith.truncf %95 : vector<128x128xf32> to vector<128x128xbf16>
    %99 = arith.truncf %89 : vector<128x16xf32> to vector<128x16xbf16>
    %cst_54 = arith.constant dense<0.000000e+00> : vector<128x16xf32>
    %100 = tpu.matmul %98, %99, %cst_54 {dimension_numbers = #tpu.dot_dimension_numbers<[1], [0], [0], [1], [0, 0, 1, 1], [], []>} : vector<128x128xbf16>, vector<128x16xbf16>, vector<128x16xf32> -> vector<128x16xf32>
    %101 = tpu.reciprocal %97 {approx = true} : vector<128x1xf32> -> vector<128x1xf32>
    %102 = vector.broadcast %101 : vector<128x1xf32> to vector<128x16xf32>
    %103 = arith.mulf %100, %102 : vector<128x16xf32>
    %c0_55 = arith.constant 0 : index
    %c64_56 = arith.constant 64 : index
    %104 = vector.load %arg7[%c0_55, %c64_56] : memref<128x128xf32, #tpu.memory_space<vmem>>, vector<128x16xf32>
    tpu.vector_store %arg7[%c0_55, %c64_56], %103 {strides = array<i32>} : memref<128x128xf32, #tpu.memory_space<vmem>>, vector<128x16xf32>,
    %c0_57 = arith.constant 0 : index
    %c80 = arith.constant 80 : index
    %105 = vector.load %arg6[%c0_57, %c80] : memref<128x384xf32, #tpu.memory_space<vmem>>, vector<128x16xf32>
    %cst_58 = arith.constant 2.500000e-01 : f32
    %106 = vector.broadcast %cst_58 : f32 to vector<128x16xf32>
    %107 = arith.mulf %105, %106 : vector<128x16xf32>
    %c0_59 = arith.constant 0 : index
    %c208 = arith.constant 208 : index
    %108 = vector.load %arg6[%c0_59, %c208] : memref<128x384xf32, #tpu.memory_space<vmem>>, vector<128x16xf32>
    %c0_60 = arith.constant 0 : index
    %c336 = arith.constant 336 : index
    %109 = vector.load %arg6[%c0_60, %c336] : memref<128x384xf32, #tpu.memory_space<vmem>>, vector<128x16xf32>
    %cst_61 = arith.constant dense<0.000000e+00> : vector<128x128xf32>
    %110 = tpu.matmul %107, %108, %cst_61 {dimension_numbers = #tpu.dot_dimension_numbers<[1], [1], [0], [0], [0, 0, 1, 0], [], []>} : vector<128x16xf32>, vector<128x16xf32>, vector<128x128xf32> -> vector<128x128xf32>
    %cst_62 = arith.constant dense<0xFF800000> : vector<128xf32>
    %111 = vector.multi_reduction <maximumf>, %110, %cst_62 [1] : vector<128x128xf32> to vector<128xf32>
    %112 = vector.shape_cast %111 : vector<128xf32> to vector<128x1xf32>
    %113 = vector.broadcast %112 : vector<128x1xf32> to vector<128x128xf32>
    %114 = arith.subf %110, %113 : vector<128x128xf32>
    %115 = math.exp %114 : vector<128x128xf32>
    %cst_63 = arith.constant dense<0.000000e+00> : vector<128xf32>
    %116 = vector.multi_reduction <add>, %115, %cst_63 [1] : vector<128x128xf32> to vector<128xf32>
    %117 = vector.shape_cast %116 : vector<128xf32> to vector<128x1xf32>
    %118 = arith.truncf %115 : vector<128x128xf32> to vector<128x128xbf16>
    %119 = arith.truncf %109 : vector<128x16xf32> to vector<128x16xbf16>
    %cst_64 = arith.constant dense<0.000000e+00> : vector<128x16xf32>
    %120 = tpu.matmul %118, %119, %cst_64 {dimension_numbers = #tpu.dot_dimension_numbers<[1], [0], [0], [1], [0, 0, 1, 1], [], []>} : vector<128x128xbf16>, vector<128x16xbf16>, vector<128x16xf32> -> vector<128x16xf32>
    %121 = tpu.reciprocal %117 {approx = true} : vector<128x1xf32> -> vector<128x1xf32>
    %122 = vector.broadcast %121 : vector<128x1xf32> to vector<128x16xf32>
    %123 = arith.mulf %120, %122 : vector<128x16xf32>
    %c0_65 = arith.constant 0 : index
    %c80_66 = arith.constant 80 : index
    %124 = vector.load %arg7[%c0_65, %c80_66] : memref<128x128xf32, #tpu.memory_space<vmem>>, vector<128x16xf32>
    tpu.vector_store %arg7[%c0_65, %c80_66], %123 {strides = array<i32>} : memref<128x128xf32, #tpu.memory_space<vmem>>, vector<128x16xf32>,
    %c0_67 = arith.constant 0 : index
    %c96 = arith.constant 96 : index
    %125 = vector.load %arg6[%c0_67, %c96] : memref<128x384xf32, #tpu.memory_space<vmem>>, vector<128x16xf32>
    %cst_68 = arith.constant 2.500000e-01 : f32
    %126 = vector.broadcast %cst_68 : f32 to vector<128x16xf32>
    %127 = arith.mulf %125, %126 : vector<128x16xf32>
    %c0_69 = arith.constant 0 : index
    %c224 = arith.constant 224 : index
    %128 = vector.load %arg6[%c0_69, %c224] : memref<128x384xf32, #tpu.memory_space<vmem>>, vector<128x16xf32>
    %c0_70 = arith.constant 0 : index
    %c352 = arith.constant 352 : index
    %129 = vector.load %arg6[%c0_70, %c352] : memref<128x384xf32, #tpu.memory_space<vmem>>, vector<128x16xf32>
    %cst_71 = arith.constant dense<0.000000e+00> : vector<128x128xf32>
    %130 = tpu.matmul %127, %128, %cst_71 {dimension_numbers = #tpu.dot_dimension_numbers<[1], [1], [0], [0], [0, 0, 1, 0], [], []>} : vector<128x16xf32>, vector<128x16xf32>, vector<128x128xf32> -> vector<128x128xf32>
    %cst_72 = arith.constant dense<0xFF800000> : vector<128xf32>
    %131 = vector.multi_reduction <maximumf>, %130, %cst_72 [1] : vector<128x128xf32> to vector<128xf32>
    %132 = vector.shape_cast %131 : vector<128xf32> to vector<128x1xf32>
    %133 = vector.broadcast %132 : vector<128x1xf32> to vector<128x128xf32>
    %134 = arith.subf %130, %133 : vector<128x128xf32>
    %135 = math.exp %134 : vector<128x128xf32>
    %cst_73 = arith.constant dense<0.000000e+00> : vector<128xf32>
    %136 = vector.multi_reduction <add>, %135, %cst_73 [1] : vector<128x128xf32> to vector<128xf32>
    %137 = vector.shape_cast %136 : vector<128xf32> to vector<128x1xf32>
    %138 = arith.truncf %135 : vector<128x128xf32> to vector<128x128xbf16>
    %139 = arith.truncf %129 : vector<128x16xf32> to vector<128x16xbf16>
    %cst_74 = arith.constant dense<0.000000e+00> : vector<128x16xf32>
    %140 = tpu.matmul %138, %139, %cst_74 {dimension_numbers = #tpu.dot_dimension_numbers<[1], [0], [0], [1], [0, 0, 1, 1], [], []>} : vector<128x128xbf16>, vector<128x16xbf16>, vector<128x16xf32> -> vector<128x16xf32>
    %141 = tpu.reciprocal %137 {approx = true} : vector<128x1xf32> -> vector<128x1xf32>
    %142 = vector.broadcast %141 : vector<128x1xf32> to vector<128x16xf32>
    %143 = arith.mulf %140, %142 : vector<128x16xf32>
    %c0_75 = arith.constant 0 : index
    %c96_76 = arith.constant 96 : index
    %144 = vector.load %arg7[%c0_75, %c96_76] : memref<128x128xf32, #tpu.memory_space<vmem>>, vector<128x16xf32>
    tpu.vector_store %arg7[%c0_75, %c96_76], %143 {strides = array<i32>} : memref<128x128xf32, #tpu.memory_space<vmem>>, vector<128x16xf32>,
    %c0_77 = arith.constant 0 : index
    %c112 = arith.constant 112 : index
    %145 = vector.load %arg6[%c0_77, %c112] : memref<128x384xf32, #tpu.memory_space<vmem>>, vector<128x16xf32>
    %cst_78 = arith.constant 2.500000e-01 : f32
    %146 = vector.broadcast %cst_78 : f32 to vector<128x16xf32>
    %147 = arith.mulf %145, %146 : vector<128x16xf32>
    %c0_79 = arith.constant 0 : index
    %c240 = arith.constant 240 : index
    %148 = vector.load %arg6[%c0_79, %c240] : memref<128x384xf32, #tpu.memory_space<vmem>>, vector<128x16xf32>
    %c0_80 = arith.constant 0 : index
    %c368 = arith.constant 368 : index
    %149 = vector.load %arg6[%c0_80, %c368] : memref<128x384xf32, #tpu.memory_space<vmem>>, vector<128x16xf32>
    %cst_81 = arith.constant dense<0.000000e+00> : vector<128x128xf32>
    %150 = tpu.matmul %147, %148, %cst_81 {dimension_numbers = #tpu.dot_dimension_numbers<[1], [1], [0], [0], [0, 0, 1, 0], [], []>} : vector<128x16xf32>, vector<128x16xf32>, vector<128x128xf32> -> vector<128x128xf32>
    %cst_82 = arith.constant dense<0xFF800000> : vector<128xf32>
    %151 = vector.multi_reduction <maximumf>, %150, %cst_82 [1] : vector<128x128xf32> to vector<128xf32>
    %152 = vector.shape_cast %151 : vector<128xf32> to vector<128x1xf32>
    %153 = vector.broadcast %152 : vector<128x1xf32> to vector<128x128xf32>
    %154 = arith.subf %150, %153 : vector<128x128xf32>
    %155 = math.exp %154 : vector<128x128xf32>
    %cst_83 = arith.constant dense<0.000000e+00> : vector<128xf32>
    %156 = vector.multi_reduction <add>, %155, %cst_83 [1] : vector<128x128xf32> to vector<128xf32>
    %157 = vector.shape_cast %156 : vector<128xf32> to vector<128x1xf32>
    %158 = arith.truncf %155 : vector<128x128xf32> to vector<128x128xbf16>
    %159 = arith.truncf %149 : vector<128x16xf32> to vector<128x16xbf16>
    %cst_84 = arith.constant dense<0.000000e+00> : vector<128x16xf32>
    %160 = tpu.matmul %158, %159, %cst_84 {dimension_numbers = #tpu.dot_dimension_numbers<[1], [0], [0], [1], [0, 0, 1, 1], [], []>} : vector<128x128xbf16>, vector<128x16xbf16>, vector<128x16xf32> -> vector<128x16xf32>
    %161 = tpu.reciprocal %157 {approx = true} : vector<128x1xf32> -> vector<128x1xf32>
    %162 = vector.broadcast %161 : vector<128x1xf32> to vector<128x16xf32>
    %163 = arith.mulf %160, %162 : vector<128x16xf32>
    %c0_85 = arith.constant 0 : index
    %c112_86 = arith.constant 112 : index
    %164 = vector.load %arg7[%c0_85, %c112_86] : memref<128x128xf32, #tpu.memory_space<vmem>>, vector<128x16xf32>
    tpu.vector_store %arg7[%c0_85, %c112_86], %163 {strides = array<i32>} : memref<128x128xf32, #tpu.memory_space<vmem>>, vector<128x16xf32>,
    %c0_87 = arith.constant 0 : index
    %c0_88 = arith.constant 0 : index
    %165 = vector.load %arg7[%c0_87, %c0_88] : memref<128x128xf32, #tpu.memory_space<vmem>>, vector<128x128xf32>
    %c0_89 = arith.constant 0 : index
    %c0_90 = arith.constant 0 : index
    %166 = vector.load %arg3[%c0_89, %c0_90] : memref<128x128xf32, #tpu.memory_space<vmem>>, vector<128x128xf32>
    %cst_91 = arith.constant dense<0.000000e+00> : vector<128x128xf32>
    %167 = tpu.matmul %165, %166, %cst_91 {dimension_numbers = #tpu.dot_dimension_numbers<[1], [0], [0], [1], [0, 0, 1, 1], [], []>} : vector<128x128xf32>, vector<128x128xf32>, vector<128x128xf32> -> vector<128x128xf32>
    %c0_92 = arith.constant 0 : index
    %c0_93 = arith.constant 0 : index
    %168 = vector.load %arg4[%c0_92, %c0_93] : memref<1x128xf32, #tpu.memory_space<vmem>>, vector<1x128xf32>
    %169 = vector.broadcast %168 : vector<1x128xf32> to vector<128x128xf32>
    %170 = arith.addf %167, %169 : vector<128x128xf32>
    %c0_94 = arith.constant 0 : index
    %c0_95 = arith.constant 0 : index
    %c0_96 = arith.constant 0 : index
    %171 = vector.load %arg5[%c0_94, %c0_95, %c0_96] : memref<1x128x128xf32, #tpu.memory_space<vmem>>, vector<1x128x128xf32>
    %172 = vector.shape_cast %171 : vector<1x128x128xf32> to vector<128x128xf32>
    %173 = vector.shape_cast %170 : vector<128x128xf32> to vector<1x128x128xf32>
    tpu.vector_store %arg5[%c0_94, %c0_95, %c0_96], %173 {strides = array<i32>} : memref<1x128x128xf32, #tpu.memory_space<vmem>>, vector<1x128x128xf32>,
    return
  }
  func.func @transform_0(%arg0: i32) -> (i32, i32, i32) {
    %c0_i32 = arith.constant 0 : i32
    %c0_i32_0 = arith.constant 0 : i32
    %c0_i32_1 = arith.constant 0 : i32
    return %arg0, %c0_i32, %c0_i32_0 : i32, i32, i32
  }
  func.func @transform_1(%arg0: i32) -> (i32, i32) {
    %c0_i32 = arith.constant 0 : i32
    %c0_i32_0 = arith.constant 0 : i32
    %c0_i32_1 = arith.constant 0 : i32
    return %c0_i32, %c0_i32_0 : i32, i32
  }
  func.func @transform_2(%arg0: i32) -> (i32, i32) {
    %c0_i32 = arith.constant 0 : i32
    %c0_i32_0 = arith.constant 0 : i32
    %c0_i32_1 = arith.constant 0 : i32
    return %c0_i32, %c0_i32_0 : i32, i32
  }
  func.func @transform_3(%arg0: i32) -> (i32, i32) {
    %c0_i32 = arith.constant 0 : i32
    %c0_i32_0 = arith.constant 0 : i32
    %c0_i32_1 = arith.constant 0 : i32
    return %c0_i32, %c0_i32_0 : i32, i32
  }
  func.func @transform_4(%arg0: i32) -> (i32, i32, i32) {
    %c0_i32 = arith.constant 0 : i32
    %c0_i32_0 = arith.constant 0 : i32
    %c0_i32_1 = arith.constant 0 : i32
    return %arg0, %c0_i32, %c0_i32_0 : i32, i32, i32
  }
}

</mosaic_0001>

<bundles_post_ra>
// kernel: tpu_custom_call.1
= control target key start
LH: loop header
LB: loop body
LE: loop exit
PB: predicated region body
PF: predicated region fallthrough
CT: control target
= control target key end

     0   :  { %9 = vsyncpa [#allocation5], 0  ;;  %s9562_s0 = inlined_call_operand.hbm [shape: f32[2,128,128], index: 0, kind: input, shape index: {}]   ;;  %s9563_s1 = inlined_call_operand.hbm [shape: f32[128,384], index: 1, kind: input, shape index: {}]   ;;  %s9564_s2 = inlined_call_operand.hbm [shape: f32[128,128], index: 2, kind: input, shape index: {}]   ;;  %s9565_s3 = inlined_call_operand.vmem [shape: f32[1,128], index: 3, kind: input, shape index: {}]   ;;  %s9566_s4 = inlined_call_operand.hbm [shape: f32[2,128,128], index: 4, kind: output, shape index: {}]  }
   0x1   :  { %11 = vsyncpa [#allocation5 + $0x1], 0 }
   0x2   :  { %12 = vsyncpa [#allocation8], 0 }
   0x3   :  { %13 = vsyncpa [#allocation6], 0 }
   0x4   :  { %15 = vsyncpa [#allocation6 + $0x1], 0  ;;  %s6630_s15 = smov 0   ;;  %s6632_s16 = smov 0  }
   0x5   :  { %s6634_s17 = smov 0   ;;  %s6636_s18 = smov 0  }
   0x6 LB: > { %s6651_s19 = sadd.s32 4294967295, %s6588_s18   ;;  %s5511_s20 = sadd.s32 4294967294, %s6588_s18   ;;  %s6588_s18 = sphi %s6636_s18, %s9847_s18   ;;  %s6584_s17 = sphi %s6634_s17, %s9846_s17   ;;  %s6580_s16 = sphi %s6632_s16, %s9845_s16   ;;  %s6576_s15 = sphi %s6630_s15, %s9844_s15  }
   0x7   : > { %p41_p0 = scmp.ne.s32.totalorder %s6580_s16, %s6576_s15  ;;  %p42_p1 = scmp.eq.s32.totalorder %s6651_s19, 0 }
   0x8   : > { %p128_p2 = scmp.eq.s32.totalorder %s6651_s19, 1  ;;  %p134_p3 = scmp.eq.s32.totalorder %s5511_s20, 1 }
   0x9   : > { %p6660_p4 = por %p42_p1, %p41_p0  ;;  %p5512_p5 = scmp.ge.s32.totalorder %s6588_s18, 1 }
   0xa   : > { %p6665_p6 = por %p134_p3, %p41_p0  ;;  %p141_p7 = scmp.lt.s32.totalorder %s6588_s18, 3 }
   0xb   : > { %s152_s25 = sshll.u32 %s9563_s1, 4  ;;  %s6590_s27 = smov [#allocation7]   ;;  %s153_s25 = int_to_ptr.hbm [resolvable:$true] %s152_s25 }
   0xc   : > { %p6673_p8 = pnand %p5512_p5, %p141_p7  ;;  %s154_s28 = sshll.u32 %s6590_s27, 4  ;;  %s155_s28 = int_to_ptr.vmem [resolvable:$true] %s154_s28 }
   0xd   : > { %s166_s5 = sshll.u32 %s9564_s2, 4  ;;  %s6591_s6 = smov 384   ;;  %s167_s5 = int_to_ptr.hbm [resolvable:$true] %s166_s5 }
   0xe   : > { %p5847_p9 = pneg %p6673_p8  ;;  %s6592_s7 = smov 24  }
   0xf   : > { %s6593_s8 = smov [#allocation9]   ;;  %s6594_s10 = smov 128  }
  0x10   : > { %p5848_p10 = pnand %p5847_p9, %p42_p1  ;;  %s168_s9 = sshll.u32 %s6593_s8, 4  ;;  %s169_s9 = int_to_ptr.vmem [resolvable:$true] %s168_s9 }
  0x11   : > { %s6595_s11 = smov 8   ;;  %s6689_s12 = sadd.s32 1, %s6588_s18  }
  0x12   : > { %5850 = dma.hbm_to_vmem [thread:$0]  (!%p5848_p10), %s153_s25, 6144, %s155_s28, [#allocation8], %s6591_s6, %s6591_s6, %s6592_s7  }
  0x13   : > { %5853 = dma.hbm_to_vmem [thread:$0]  (!%p5848_p10), %s167_s5, 2048, %s169_s9, [#allocation8], %s6594_s10, %s6594_s10, %s6595_s11  }
  0x14   : > { %s25_s13 = ssub.s32 %s6588_s18, %s6689_s12  ;;  %s28_s14 = sadd.s32 1, %s6584_s17 }
  0x15   : > { %p26_p12 = scmp.eq.s32.totalorder %s25_s13, 0  ;;  %p35_p13 = scmp.ne.s32.totalorder %s6584_s17, %s6580_s16 }
  0x16   : > { %p36_p0 = scmp.eq.s32.totalorder %s6588_s18, 0  ;;  %p5864_p7 = scmp.lt.s32.totalorder %s6588_s18, 2 }
  0x17   : > { %s6698_s20 = scalar_select %p26_p12, %s6584_s17, %s28_s14  }
  0x18   : > { %p37_p3 = por %p36_p0, %p35_p13  ;;  %p6702_p5 = por %p128_p2, %p35_p13 }
  0x19   : > { %s185_s24 = sand.u32 1, %s6584_s17   ;;  %s5785_s27 = sshll.u32 %s6588_s18, 7 }
  0x1a   : > { %s5516_s25 = sshll.u32 %s185_s24, 7  ;;  %s194_s30 = scalar_lea.hbm %s9562_s0, %s5785_s27 }
  0x1b   : > { %s189_s5 = scalar_lea.vmem [#allocation4], %s5516_s25  ;;  %s195_s7 = sshll.u32 %s194_s30, 4  ;;  %s196_s7 = int_to_ptr.hbm [resolvable:$true] %s195_s7 }
  0x1c   : > { %s197_s6 = sshll.u32 %s189_s5, 4  ;;  %p6712_p9 = pnand %p5864_p7, %p37_p3  ;;  %s198_s6 = int_to_ptr.vmem [resolvable:$true] %s197_s6 }
  0x1d   : > { %s186_s9 = scalar_lea.sflag [#allocation5], %s185_s24  ;;  %s6488_s13 = sshra.s32 %s196_s7, 4  ;;  %s6489_s13 = int_to_ptr.hbm [resolvable:$true] %s6488_s13 }
  0x1e   : > { %s6490_s14 = scalar_lea.hbm %s6489_s13, 128  ;;  %p6492_p10 = pneg %p6712_p9 }
  0x1f   : > { %p6491_p2 = scmp.ne.s32.totalorder %s6489_s13, %s6490_s14  ;;  %s6495_s28 = scalar_lea.hbm %s9562_s0, 256 }
  0x20   : > { %p6496_p0 = scmp.lt.s32.totalorder %s6489_s13, %s9562_s0  ;;  %p6497_p3 = scmp.lt.s32.totalorder %s6495_s28, %s6490_s14 }
  0x21   : > { %p6493_p12 = pnand %p6492_p10, %p6491_p2 }
  0x22   : > { %p6498_p7 = por %p6497_p3, %p6496_p0 }
  0x23   : > { %p6494_p13 = pneg %p6493_p12 }
  0x25   : > { %p6499_p11 = pnand %p6498_p7, %p6494_p13 }
  0x27   : > { %6502 = shalt.err (!%p6499_p11)
}
  0x28   : > { %5857 = dma.hbm_to_vmem [thread:$0]  (!%p6712_p9), %s196_s7, 2048, %s198_s6, %s186_s9, %s6594_s10, %s6594_s10, %s6595_s11  }
  0x29   : > { %209 = sbr.rel (%p6673_p8) target bundleno = 4286 (0x10be), region = 36 }
  0x2e   : > { %s6732_s24 = sand.u32 1, %s6580_s16  }
  0x2f   : > { %s5520_s5 = sshll.u32 %s6732_s24, 7  ;;  %s212_s13 = scalar_lea.sflag [#allocation5], %s6732_s24 }
  0x30   : > { %s6738_s14 = scalar_lea.vmem [#allocation4], %s5520_s5 }
  0x31   : > { %6563 = dma.done.wait (%p6660_p4), %s212_s13, 2048  }
  0x32   : > { %6565 = vsyncadd (%p6660_p4), %s212_s13, 4294965248 }
  0x33   : > { %6567 = dma.done.wait (%p42_p1), [#allocation8], 8192  }
  0x34   : > { %6569 = vsyncadd (%p42_p1), [#allocation8], 4294959104  ;;  %v313_v0 = vld [vmem:[#allocation7 + $0x170] sm:$0xff]  ;;  %v314_v1 = vld [vmem:[#allocation7 + $0x178] sm:$0xff]  ;;  %s6596_s21 = smov 96   ;;  %s6597_s26 = smov 112  }
  0x35   : > { %v310_v2 = vld [vmem:[#allocation7 + $0x158] sm:$0xff]  ;;  %380 = vmatpush.msra.mxu1 %v313_v0  ;;  %445 = vmatpush.msra.mxu2 %v314_v1  ;;  %v311_v3 = vld [vmem:[#allocation7 + $0x160] sm:$0xff]  ;;  %v308_v5 = vld [vmem:[#allocation7 + $0x148] sm:$0xff]  ;;  %s6598_s10 = smov 80   ;;  %vm622_vm0 = vcmask 130048   ;;  %s6599_s11 = smov 64  }
  0x36   : > { %v307_v4 = vld [vmem:[#allocation7 + $0x140] sm:$0xff]  ;;  %v312_v6 = vld [vmem:[#allocation7 + $0x168] sm:$0xff]  ;;  %v309_v7 = vld [vmem:[#allocation7 + $0x150] sm:$0xff]  ;;  %s6600_s6 = smov 16   ;;  %s6601_s7 = smov 32   ;;  %vm1603_vm1 = vcmask 261248  }
  0x37   : > { %381 = vmatpush.msra.mxu1 %v310_v2  ;;  %446 = vmatpush.msra.mxu2 %v311_v3  ;;  %v304_v8 = vld [vmem:[#allocation7 + $0x128] sm:$0xff]  ;;  %v305_v9 = vld [vmem:[#allocation7 + $0x130] sm:$0xff]  ;;  %v306_v10 = vld [vmem:[#allocation7 + $0x138] sm:$0xff]  ;;  %vm2214_vm2 = vcmask 392448   ;;  %s6602_s8 = smov 48   ;;  %vm2825_vm3 = vcmask 523648  }
  0x38   : > { %315 = vmatpush.msra.mxu0 %v312_v6  ;;  %v301_v11 = vld [vmem:[#allocation7 + $0x110] sm:$0xff]  ;;  %v302_v12 = vld [vmem:[#allocation7 + $0x118] sm:$0xff]  ;;  %v303_v13 = vld [vmem:[#allocation7 + $0x120] sm:$0xff]  ;;  %vm3436_vm4 = vcmask 654848   ;;  %vm4047_vm5 = vcmask 786048   ;;  %vm4658_vm6 = vcmask 917248  }
  0x39   : > { %382 = vmatpush.msra.mxu1 %v307_v4  ;;  %447 = vmatpush.msra.mxu2 %v308_v5  ;;  %v298_v14 = vld [vmem:[#allocation7 + $0xf8] sm:$0xff]  ;;  %v299_v15 = vld [vmem:[#allocation7 + $0x100] sm:$0xff]  ;;  %v300_v16 = vld [vmem:[#allocation7 + $0x108] sm:$0xff]  ;;  %vm5269_vm7 = vcmask 1048448   ;;  %s9390_s25 = scalar_lea.vmem [#allocation10], %s5520_s5  ;;  %s5786_s28 = sshll.u32 %s6651_s19, 7 }
  0x3a   : > { %316 = vmatpush.msra.mxu0 %v309_v7  ;;  %v295_v17 = vld [vmem:[#allocation7 + $0xe0] sm:$0xff]  ;;  %v296_v18 = vld [vmem:[#allocation7 + $0xe8] sm:$0xff]  ;;  %v297_v19 = vld [vmem:[#allocation7 + $0xf0] sm:$0xff]  ;;  %s5415_s5 = scalar_lea.hbm %s9566_s4, %s5786_s28  ;;  %s5416_s13 = sshll.u32 %s9390_s25, 4  ;;  %s5417_s13 = int_to_ptr.vmem [resolvable:$true] %s5416_s13 }
  0x3b   : > { %383 = vmatpush.msra.mxu1 %v304_v8  ;;  %448 = vmatpush.msra.mxu2 %v305_v9  ;;  %v292_v20 = vld [vmem:[#allocation7 + $0xc8] sm:$0xff]  ;;  %v293_v21 = vld [vmem:[#allocation7 + $0xd0] sm:$0xff]  ;;  %v294_v22 = vld [vmem:[#allocation7 + $0xd8] sm:$0xff] }
  0x3c   : > { %317 = vmatpush.msra.mxu0 %v306_v10  ;;  %v289_v23 = vld [vmem:[#allocation7 + $0xb0] sm:$0xff]  ;;  %v290_v24 = vld [vmem:[#allocation7 + $0xb8] sm:$0xff]  ;;  %v291_v25 = vld [vmem:[#allocation7 + $0xc0] sm:$0xff] }
  0x3d   : > { %384 = vmatpush.msra.mxu1 %v301_v11  ;;  %449 = vmatpush.msra.mxu2 %v302_v12  ;;  %v286_v26 = vld [vmem:[#allocation7 + $0x98] sm:$0xff]  ;;  %v287_v27 = vld [vmem:[#allocation7 + $0xa0] sm:$0xff]  ;;  %v288_v28 = vld [vmem:[#allocation7 + $0xa8] sm:$0xff] }
  0x3e   : > { %318 = vmatpush.msra.mxu0 %v303_v13  ;;  %v283_v29 = vld [vmem:[#allocation7 + $0x80] sm:$0xff]  ;;  %v284_v30 = vld [vmem:[#allocation7 + $0x88] sm:$0xff]  ;;  %v285_v31 = vld [vmem:[#allocation7 + $0x90] sm:$0xff] }
  0x3f   : > { %385 = vmatpush.msra.mxu1 %v298_v14  ;;  %450 = vmatpush.msra.mxu2 %v299_v15  ;;  %v280_v32 = vld [vmem:[#allocation7 + $0x68] sm:$0xff]  ;;  %v281_v33 = vld [vmem:[#allocation7 + $0x70] sm:$0xff]  ;;  %v282_v34 = vld [vmem:[#allocation7 + $0x78] sm:$0xff] }
  0x40   : > { %319 = vmatpush.msra.mxu0 %v300_v16  ;;  %v277_v35 = vld [vmem:[#allocation7 + $0x50] sm:$0xff]  ;;  %v278_v36 = vld [vmem:[#allocation7 + $0x58] sm:$0xff]  ;;  %v279_v37 = vld [vmem:[#allocation7 + $0x60] sm:$0xff] }
  0x41   : > { %386 = vmatpush.msra.mxu1 %v295_v17  ;;  %451 = vmatpush.msra.mxu2 %v296_v18  ;;  %v274_v38 = vld [vmem:[#allocation7 + $0x38] sm:$0xff]  ;;  %v275_v39 = vld [vmem:[#allocation7 + $0x40] sm:$0xff]  ;;  %v276_v40 = vld [vmem:[#allocation7 + $0x48] sm:$0xff] }
  0x42   : > { %320 = vmatpush.msra.mxu0 %v297_v19  ;;  %v271_v41 = vld [vmem:[#allocation7 + $0x20] sm:$0xff]  ;;  %v272_v42 = vld [vmem:[#allocation7 + $0x28] sm:$0xff]  ;;  %v273_v43 = vld [vmem:[#allocation7 + $0x30] sm:$0xff] }
  0x43   : > { %387 = vmatpush.msra.mxu1 %v292_v20  ;;  %452 = vmatpush.msra.mxu2 %v293_v21  ;;  %v268_v44 = vld [vmem:[#allocation7 + $0x8] sm:$0xff]  ;;  %v269_v45 = vld [vmem:[#allocation7 + $0x10] sm:$0xff]  ;;  %v251_v46 = vld [vmem:[%s6738_s14] sm:$0xff] }
  0x44   : > { %321 = vmatpush.msra.mxu0 %v294_v22  ;;  %v270_v47 = vld [vmem:[#allocation7 + $0x18] sm:$0xff]  ;;  %v267_v48 = vld [vmem:[#allocation7] sm:$0xff]  ;;  %v252_v49 = vld [vmem:[%s6738_s14 + $0x8] sm:$0xff] }
  0x45   : > { %388 = vmatpush.msra.mxu1 %v289_v23  ;;  %453 = vmatpush.msra.mxu2 %v290_v24  ;;  %v253_v50 = vld [vmem:[%s6738_s14 + $0x10] sm:$0xff]  ;;  %v254_v51 = vld [vmem:[%s6738_s14 + $0x18] sm:$0xff]  ;;  %v255_v52 = vld [vmem:[%s6738_s14 + $0x20] sm:$0xff] }
  0x46   : > { %322 = vmatpush.msra.mxu0 %v291_v25  ;;  %v256_v53 = vld [vmem:[%s6738_s14 + $0x28] sm:$0xff]  ;;  %v257_v54 = vld [vmem:[%s6738_s14 + $0x30] sm:$0xff]  ;;  %v258_v55 = vld [vmem:[%s6738_s14 + $0x38] sm:$0xff] }
  0x47   : > { %389 = vmatpush.msra.mxu1 %v286_v26  ;;  %454 = vmatpush.msra.mxu2 %v287_v27  ;;  %v259_v56 = vld [vmem:[%s6738_s14 + $0x40] sm:$0xff]  ;;  %v260_v57 = vld [vmem:[%s6738_s14 + $0x48] sm:$0xff]  ;;  %v261_v58 = vld [vmem:[%s6738_s14 + $0x50] sm:$0xff] }
  0x48   : > { %323 = vmatpush.msra.mxu0 %v288_v28  ;;  %v262_v59 = vld [vmem:[%s6738_s14 + $0x58] sm:$0xff]  ;;  %v263_v60 = vld [vmem:[%s6738_s14 + $0x60] sm:$0xff]  ;;  %v264_v61 = vld [vmem:[%s6738_s14 + $0x68] sm:$0xff] }
  0x49   : > { %390 = vmatpush.msra.mxu1 %v283_v29  ;;  %455 = vmatpush.msra.mxu2 %v284_v30  ;;  %v265_v62 = vld [vmem:[%s6738_s14 + $0x70] sm:$0xff]  ;;  %v266_v63 = vld [vmem:[%s6738_s14 + $0x78] sm:$0xff]  ;;  %s5418_s14 = sshll.u32 %s5415_s5, 4  ;;  %s5419_s14 = int_to_ptr.hbm [resolvable:$true] %s5418_s14 }
  0x4a   : > { %324 = vmatpush.msra.mxu0 %v285_v31 }
  0x4b   : > { %391 = vmatpush.msra.mxu1 %v280_v32  ;;  %456 = vmatpush.msra.mxu2 %v281_v33 }
  0x4c   : > { %325 = vmatpush.msra.mxu0 %v282_v34 }
  0x4d   : > { %392 = vmatpush.msra.mxu1 %v277_v35  ;;  %457 = vmatpush.msra.mxu2 %v278_v36 }
  0x4e   : > { %326 = vmatpush.msra.mxu0 %v279_v37 }
  0x4f   : > { %393 = vmatpush.msra.mxu1 %v274_v38  ;;  %458 = vmatpush.msra.mxu2 %v275_v39 }
  0x50   : > { %327 = vmatpush.msra.mxu0 %v276_v40 }
  0x51   : > { %394 = vmatpush.msra.mxu1 %v271_v41  ;;  %459 = vmatpush.msra.mxu2 %v272_v42 }
  0x52   : > { %328 = vmatpush.msra.mxu0 %v273_v43 }
  0x53   : > { %395 = vmatpush.msra.mxu1 %v268_v44  ;;  %460 = vmatpush.msra.mxu2 %v269_v45 }
  0x54   : > { %396 = vmatmul.f32.vlgmr.msra.gmra.mxu1 %v251_v46  ;;  %461 = vmatmul.f32.vlgmr.msra.gmra.mxu2 %v251_v46 }
  0x55   : > { %329 = vmatpush.msra.mxu0 %v270_v47 }
  0x57   : > { %330 = vmatpush.msra.mxu0 %v267_v48 }
  0x58   : > { %331 = vmatmul.f32.vlgmr.msra.gmra.mxu0 %v251_v46 }
  0x5c   : > { %399 = vmatmul.f32.gmra.mxu1 %v252_v49  ;;  %464 = vmatmul.f32.gmra.mxu2 %v252_v49 }
  0x60   : > { %334 = vmatmul.f32.gmra.mxu0 %v252_v49 }
  0x64   : > { %402 = vmatmul.f32.gmra.mxu1 %v253_v50  ;;  %467 = vmatmul.f32.gmra.mxu2 %v253_v50 }
  0x68   : > { %337 = vmatmul.f32.gmra.mxu0 %v253_v50 }
  0x6c   : > { %405 = vmatmul.f32.gmra.mxu1 %v254_v51  ;;  %470 = vmatmul.f32.gmra.mxu2 %v254_v51 }
  0x70   : > { %340 = vmatmul.f32.gmra.mxu0 %v254_v51 }
  0x74   : > { %408 = vmatmul.f32.gmra.mxu1 %v255_v52  ;;  %473 = vmatmul.f32.gmra.mxu2 %v255_v52 }
  0x78   : > { %343 = vmatmul.f32.gmra.mxu0 %v255_v52 }
  0x7c   : > { %411 = vmatmul.f32.gmra.mxu1 %v256_v53  ;;  %476 = vmatmul.f32.gmra.mxu2 %v256_v53 }
  0x80   : > { %346 = vmatmul.f32.gmra.mxu0 %v256_v53 }
  0x84   : > { %414 = vmatmul.f32.gmra.mxu1 %v257_v54  ;;  %479 = vmatmul.f32.gmra.mxu2 %v257_v54 }
  0x88   : > { %349 = vmatmul.f32.gmra.mxu0 %v257_v54 }
  0x8c   : > { %417 = vmatmul.f32.gmra.mxu1 %v258_v55  ;;  %482 = vmatmul.f32.gmra.mxu2 %v258_v55 }
  0x90   : > { %352 = vmatmul.f32.gmra.mxu0 %v258_v55 }
  0x94   : > { %420 = vmatmul.f32.gmra.mxu1 %v259_v56  ;;  %485 = vmatmul.f32.gmra.mxu2 %v259_v56 }
  0x98   : > { %355 = vmatmul.f32.gmra.mxu0 %v259_v56 }
  0x9c   : > { %423 = vmatmul.f32.gmra.mxu1 %v260_v57  ;;  %488 = vmatmul.f32.gmra.mxu2 %v260_v57 }
  0xa0   : > { %358 = vmatmul.f32.gmra.mxu0 %v260_v57 }
  0xa4   : > { %426 = vmatmul.f32.gmra.mxu1 %v261_v58  ;;  %491 = vmatmul.f32.gmra.mxu2 %v261_v58 }
  0xa8   : > { %361 = vmatmul.f32.gmra.mxu0 %v261_v58 }
  0xac   : > { %429 = vmatmul.f32.gmra.mxu1 %v262_v59  ;;  %494 = vmatmul.f32.gmra.mxu2 %v262_v59 }
  0xb0   : > { %364 = vmatmul.f32.gmra.mxu0 %v262_v59 }
  0xb4   : > { %432 = vmatmul.f32.gmra.mxu1 %v263_v60  ;;  %497 = vmatmul.f32.gmra.mxu2 %v263_v60 }
  0xb8   : > { %367 = vmatmul.f32.gmra.mxu0 %v263_v60 }
  0xbc   : > { %435 = vmatmul.f32.gmra.mxu1 %v264_v61  ;;  %500 = vmatmul.f32.gmra.mxu2 %v264_v61 }
  0xc0   : > { %370 = vmatmul.f32.gmra.mxu0 %v264_v61 }
  0xc4   : > { %438 = vmatmul.f32.gmra.mxu1 %v265_v62  ;;  %503 = vmatmul.f32.gmra.mxu2 %v265_v62 }
  0xc8   : > { %373 = vmatmul.f32.gmra.mxu0 %v265_v62 }
  0xcc   : > { %441 = vmatmul.f32.gmra.mxu1 %v266_v63  ;;  %506 = vmatmul.f32.gmra.mxu2 %v266_v63 }
  0xd0   : > { %376 = vmatmul.f32.gmra.mxu0 %v266_v63 }
  0xd1   : > { %v6764_v0 = vpop.f32.mrf.mxu1 }
  0xd2   : > { %9652 = vst [vmem:[#allocation14_spill] sm:$0xff] %v6764_v0  ;;  %1748 = vrot.lane.b32.xlu2 %v6764_v0, %s6596_s21  ;;  %1137 = vrot.lane.b32.xlu0 %v6764_v0, %s6597_s26 }
  0xd5   : > { %v332_v1 = vpop.f32.mrf.mxu0 }
  0xd6   : > { %v6770_v2 = vmul.f32 0.25, %v332_v1 }
  0xd7   : > { %v462_v3 = vpop.f32.mrf.mxu2 }
  0xd8   : > { %9653 = vst [vmem:[#allocation15_spill] sm:$0xff] %v6770_v2  ;;  %1700 = vrot.lane.b32.xlu1 %v6770_v2, %s6596_s21 }
  0xd9   : > { %v6774_v4 = vpop.f32.mrf.mxu1 }
  0xda   : > { %9654 = vst [vmem:[#allocation16_spill] sm:$0xff] %v6774_v4  ;;  %2311 = vrot.lane.b32.xlu0 %v6770_v2, %s6598_s10  ;;  %1089 = vrot.lane.b32.xlu2 %v6770_v2, %s6597_s26 }
  0xdd   : > { %v335_v7 = vpop.f32.mrf.mxu0 }
  0xde   : > { %v6788_v8 = vmul.f32 0.25, %v335_v7 }
  0xdf   : > { %v465_v5 = vpop.f32.mrf.mxu2 }
  0xe0   : > { %9656 = vst [vmem:[#allocation18_spill] sm:$0xff] %v6788_v8  ;;  %v6800_v14 = vpack.c.bf16 %v465_v5, %v462_v3 }
  0xe1   : > { %v6780_v6 = vpop.f32.mrf.mxu1 }
  0xe2   : > { %9655 = vst [vmem:[#allocation17_spill] sm:$0xff] %v6780_v6  ;;  %1750 = vrot.lane.b32.xlu0 %v6774_v4, %s6596_s21  ;;  %1141 = vrot.lane.b32.xlu1 %v6780_v6, %s6597_s26 }
  0xe3   : > { %1139 = vrot.lane.b32.xlu2 %v6774_v4, %s6597_s26  ;;  %9659 = vst [vmem:[#allocation21_spill] sm:$0xff] %v6800_v14 }
  0xe5   : > { %v338_v11 = vpop.f32.mrf.mxu0 }
  0xe6   : > { %v6798_v12 = vmul.f32 0.25, %v338_v11 }
  0xe7   : > { %v468_v9 = vpop.f32.mrf.mxu2 }
  0xe8   : > { %9658 = vst [vmem:[#allocation20_spill] sm:$0xff] %v6798_v12 }
  0xe9   : > { %v6790_v10 = vpop.f32.mrf.mxu1 }
  0xea   : > { %9657 = vst [vmem:[#allocation19_spill] sm:$0xff] %v6790_v10  ;;  %1752 = vrot.lane.b32.xlu1 %v6780_v6, %s6596_s21  ;;  %1091 = vrot.lane.b32.xlu0 %v6788_v8, %s6597_s26 }
  0xeb   : > { %1702 = vrot.lane.b32.xlu2 %v6788_v8, %s6596_s21 }
  0xed   : > { %v341_v18 = vpop.f32.mrf.mxu0 }
  0xee   : > { %v6818_v19 = vmul.f32 0.25, %v341_v18 }
  0xef   : > { %v471_v13 = vpop.f32.mrf.mxu2 }
  0xf0   : > { %9662 = vst [vmem:[#allocation24_spill] sm:$0xff] %v6818_v19  ;;  %v6852_v30 = vpack.c.bf16 %v471_v13, %v468_v9 }
  0xf1   : > { %v6802_v15 = vpop.f32.mrf.mxu1 }
  0xf2   : > { %9660 = vst [vmem:[#allocation22_spill] sm:$0xff] %v6802_v15  ;;  %1434 = vrot.lane.b32.xlu0 %v6800_v14, %s6597_s26  ;;  %1093 = vrot.lane.b32.xlu1 %v6798_v12, %s6597_s26 }
  0xf3   : > { %2313 = vrot.lane.b32.xlu2 %v6788_v8, %s6598_s10  ;;  %9667 = vst [vmem:[#allocation29_spill] sm:$0xff] %v6852_v30 }
  0xf5   : > { %v344_v24 = vpop.f32.mrf.mxu0 }
  0xf6   : > { %v6864_v33 = vmul.f32 0.25, %v344_v24 }
  0xf7   : > { %v474_v16 = vpop.f32.mrf.mxu2 }
  0xf8   : > { %9670 = vst [vmem:[#allocation32_spill] sm:$0xff] %v6864_v33 }
  0xf9   : > { %v6810_v17 = vpop.f32.mrf.mxu1 }
  0xfa   : > { %9661 = vst [vmem:[#allocation23_spill] sm:$0xff] %v6810_v17  ;;  %1704 = vrot.lane.b32.xlu0 %v6798_v12, %s6596_s21  ;;  %2315 = vrot.lane.b32.xlu1 %v6798_v12, %s6598_s10 }
  0xfb   : > { %2045 = vrot.lane.b32.xlu2 %v6800_v14, %s6596_s21 }
  0xfd   : > { %v347_v27 = vpop.f32.mrf.mxu0 }
  0xfe   : > { %v6848_v28 = vmul.f32 0.25, %v347_v27 }
  0xff   : > { %v477_v20 = vpop.f32.mrf.mxu2 }
 0x100   : > { %9666 = vst [vmem:[#allocation28_spill] sm:$0xff] %v6848_v28  ;;  %v6862_v32 = vpack.c.bf16 %v477_v20, %v474_v16 }
 0x101   : > { %v6820_v21 = vpop.f32.mrf.mxu1 }
 0x102   : > { %9663 = vst [vmem:[#allocation25_spill] sm:$0xff] %v6820_v21  ;;  %1143 = vrot.lane.b32.xlu0 %v6790_v10, %s6597_s26  ;;  %1706 = vrot.lane.b32.xlu1 %v6818_v19, %s6596_s21 }
 0x103   : > { %1754 = vrot.lane.b32.xlu2 %v6790_v10, %s6596_s21  ;;  %9669 = vst [vmem:[#allocation31_spill] sm:$0xff] %v6862_v32 }
 0x105   : > { %v350_v38 = vpop.f32.mrf.mxu0 }
 0x106   : > { %v6886_v40 = vmul.f32 0.25, %v350_v38 }
 0x107   : > { %v6828_v22 = vpop.f32.mrf.mxu2 }
 0x108   : > { %9674 = vst [vmem:[#allocation36_spill] sm:$0xff] %v6886_v40 }
 0x109   : > { %v6830_v23 = vpop.f32.mrf.mxu1 }
 0x10a   : > { %9664 = vst [vmem:[#allocation26_spill] sm:$0xff] %v6830_v23  ;;  %2317 = vrot.lane.b32.xlu0 %v6818_v19, %s6598_s10  ;;  %1147 = vrot.lane.b32.xlu1 %v6810_v17, %s6597_s26 }
 0x10b   : > { %1095 = vrot.lane.b32.xlu2 %v6818_v19, %s6597_s26 }
 0x10d   : > { %v353_v46 = vpop.f32.mrf.mxu0 }
 0x10e   : > { %v6920_v53 = vmul.f32 0.25, %v353_v46 }
 0x10f   : > { %v6838_v25 = vpop.f32.mrf.mxu2 }
 0x110   : > { %9682 = vst [vmem:[#allocation44_spill] sm:$0xff] %v6920_v53  ;;  %v6948_v1 = vpack.c.bf16 %v6838_v25, %v6828_v22 }
 0x111   : > { %v6840_v26 = vpop.f32.mrf.mxu1 }
 0x112   : > { %9665 = vst [vmem:[#allocation27_spill] sm:$0xff] %v6840_v26  ;;  %1756 = vrot.lane.b32.xlu0 %v6802_v15, %s6596_s21  ;;  %1758 = vrot.lane.b32.xlu1 %v6810_v17, %s6596_s21 }
 0x113   : > { %1145 = vrot.lane.b32.xlu2 %v6802_v15, %s6597_s26  ;;  %9690 = vst [vmem:[#allocation52_spill] sm:$0xff] %v6948_v1 }
 0x115   : > { %v356_v50 = vpop.f32.mrf.mxu0 }
 0x116   : > { %v6940_v60 = vmul.f32 0.25, %v356_v50 }
 0x117   : > { %v6850_v29 = vpop.f32.mrf.mxu2 }
 0x118   : > { %9687 = vst [vmem:[#allocation49_spill] sm:$0xff] %v6940_v60 }
 0x119   : > { %v6854_v31 = vpop.f32.mrf.mxu1 }
 0x11a   : > { %9668 = vst [vmem:[#allocation30_spill] sm:$0xff] %v6854_v31  ;;  %2047 = vrot.lane.b32.xlu0 %v6852_v30, %s6596_s21  ;;  %2321 = vrot.lane.b32.xlu1 %v6848_v28, %s6598_s10 }
 0x11b   : > { %1436 = vrot.lane.b32.xlu2 %v6852_v30, %s6597_s26 }
 0x11d   : > { %v359_v59 = vpop.f32.mrf.mxu0 }
 0x11e   : > { %v6942_v62 = vmul.f32 0.25, %v359_v59 }
 0x11f   : > { %v6866_v34 = vpop.f32.mrf.mxu2 }
 0x120   : > { %9688 = vst [vmem:[#allocation50_spill] sm:$0xff] %v6942_v62  ;;  %v6974_v13 = vpack.c.bf16 %v6866_v34, %v6850_v29 }
 0x121   : > { %v6868_v35 = vpop.f32.mrf.mxu1 }
 0x122   : > { %9671 = vst [vmem:[#allocation33_spill] sm:$0xff] %v6868_v35  ;;  %1097 = vrot.lane.b32.xlu0 %v6864_v33, %s6597_s26  ;;  %1438 = vrot.lane.b32.xlu1 %v6862_v32, %s6597_s26 }
 0x123   : > { %1708 = vrot.lane.b32.xlu2 %v6864_v33, %s6596_s21  ;;  %9695 = vst [vmem:[#allocation57_spill] sm:$0xff] %v6974_v13 }
 0x125   : > { %v362_v22 = vpop.f32.mrf.mxu0 }
 0x126   : > { %v7046_v50 = vmul.f32 0.25, %v362_v22 }
 0x127   : > { %v492_v36 = vpop.f32.mrf.mxu2 }
 0x128   : > { %9704 = vst [vmem:[#allocation66_spill] sm:$0xff] %v7046_v50 }
 0x129   : > { %v6876_v37 = vpop.f32.mrf.mxu1 }
 0x12a   : > { %9672 = vst [vmem:[#allocation34_spill] sm:$0xff] %v6876_v37  ;;  %2049 = vrot.lane.b32.xlu1 %v6862_v32, %s6596_s21  ;;  %1710 = vrot.lane.b32.xlu0 %v6848_v28, %s6596_s21 }
 0x12b   : > { %2319 = vrot.lane.b32.xlu2 %v6864_v33, %s6598_s10 }
 0x12c   : > { %v6884_v39 = vpop.permute.xlu2 %1748 }
 0x12d   : > { %9673 = vst [vmem:[#allocation35_spill] sm:$0xff] %v6884_v39  ;;  %v365_v29 = vpop.f32.mrf.mxu0 }
 0x12f   : > { %v495_v41 = vpop.f32.mrf.mxu2 }
 0x130   : > { %v6967_v11 = vpack.c.bf16 %v495_v41, %v492_v36 }
 0x131   : > { %v6888_v42 = vpop.f32.mrf.mxu1 }
 0x132   : > { %9675 = vst [vmem:[#allocation37_spill] sm:$0xff] %v6888_v42  ;;  %1149 = vrot.lane.b32.xlu0 %v6820_v21, %s6597_s26  ;;  %1101 = vrot.lane.b32.xlu1 %v6886_v40, %s6597_s26 }
 0x133   : > { %1099 = vrot.lane.b32.xlu2 %v6848_v28, %s6597_s26  ;;  %9694 = vst [vmem:[#allocation56_spill] sm:$0xff] %v6967_v11 }
 0x134   : > { %v6896_v43 = vpop.permute.xlu2 %1089 }
 0x135   : > { %9676 = vst [vmem:[#allocation38_spill] sm:$0xff] %v6896_v43 }
 0x137   : > { %v498_v44 = vpop.f32.mrf.mxu2 }
 0x139   : > { %v6898_v45 = vpop.f32.mrf.mxu1 }
 0x13a   : > { %9677 = vst [vmem:[#allocation39_spill] sm:$0xff] %v6898_v45  ;;  %2323 = vrot.lane.b32.xlu0 %v6886_v40, %s6598_s10  ;;  %1712 = vrot.lane.b32.xlu1 %v6886_v40, %s6596_s21 }
 0x13b   : > { %1760 = vrot.lane.b32.xlu2 %v6820_v21, %s6596_s21 }
 0x13d   : > { %v6906_v47 = vpop.permute.xlu2 %1139 }
 0x13e   : > { %9678 = vst [vmem:[#allocation40_spill] sm:$0xff] %v6906_v47 }
 0x13f   : > { %v501_v48 = vpop.f32.mrf.mxu2 }
 0x140   : > { %v6950_v3 = vpack.c.bf16 %v501_v48, %v498_v44  ;;  %v368_v48 = vpop.f32.mrf.mxu0 }
 0x141   : > { %v6908_v49 = vpop.f32.mrf.mxu1 }
 0x142   : > { %9679 = vst [vmem:[#allocation41_spill] sm:$0xff] %v6908_v49  ;;  %1762 = vrot.lane.b32.xlu0 %v6830_v23, %s6596_s21  ;;  %1153 = vrot.lane.b32.xlu1 %v6840_v26, %s6597_s26 }
 0x143   : > { %1151 = vrot.lane.b32.xlu2 %v6830_v23, %s6597_s26  ;;  %9691 = vst [vmem:[#allocation53_spill] sm:$0xff] %v6950_v3 }
 0x144   : > { %v6916_v51 = vpop.permute.xlu0 %1137 }
 0x145   : > { %9680 = vst [vmem:[#allocation42_spill] sm:$0xff] %v6916_v51  ;;  %v6918_v52 = vpop.permute.xlu2 %1702 }
 0x146   : > { %9681 = vst [vmem:[#allocation43_spill] sm:$0xff] %v6918_v52 }
 0x147   : > { %v504_v54 = vpop.f32.mrf.mxu2 }
 0x149   : > { %v6922_v55 = vpop.f32.mrf.mxu1 }
 0x14a   : > { %9683 = vst [vmem:[#allocation45_spill] sm:$0xff] %v6922_v55  ;;  %5524 = vmatpush.xpose.msk.msra.mxu3 %vm622_vm0, %v6922_v55  ;;  %1764 = vrot.lane.b32.xlu1 %v6840_v26, %s6596_s21  ;;  %v6928_v56 = vpop.permute.xlu1 %1700 }
 0x14b   : > { %9684 = vst [vmem:[#allocation46_spill] sm:$0xff] %v6928_v56  ;;  %1714 = vrot.lane.b32.xlu2 %v6920_v53, %s6596_s21  ;;  %1103 = vrot.lane.b32.xlu0 %v6920_v53, %s6597_s26 }
 0x14c   : > { %v6934_v57 = vpop.permute.xlu0 %2311 }
 0x14d   : > { %9685 = vst [vmem:[#allocation47_spill] sm:$0xff] %v6934_v57  ;;  %v6936_v58 = vpop.permute.xlu2 %2313 }
 0x14e   : > { %9686 = vst [vmem:[#allocation48_spill] sm:$0xff] %v6936_v58  ;;  %5525 = vmatpush.xpose.msk.msra.mxu3 %vm622_vm0, %v6908_v49 }
 0x14f   : > { %v507_v61 = vpop.f32.mrf.mxu2 }
 0x150   : > { %v6944_v63 = vpack.c.bf16 %v507_v61, %v504_v54  ;;  %v7048_v54 = vmul.f32 0.25, %v368_v48  ;;  %v7066_v48 = vmul.f32 0.25, %v365_v29  ;;  %v371_v29 = vpop.f32.mrf.mxu0 }
 0x152   : > { %9689 = vst [vmem:[#allocation51_spill] sm:$0xff] %v6944_v63  ;;  %5526 = vmatpush.xpose.msk.msra.mxu3 %vm622_vm0, %v6898_v45  ;;  %912 = vmatpush.bf16.msrb.mxu0 %v6944_v63 }
 0x153   : > { %1440 = vrot.lane.b32.xlu0 %v6948_v1, %s6597_s26  ;;  %1105 = vrot.lane.b32.xlu2 %v6940_v60, %s6597_s26  ;;  %9705 = vst [vmem:[#allocation67_spill] sm:$0xff] %v7048_v54 }
 0x154   : > { %1107 = vrot.lane.b32.xlu1 %v6942_v62, %s6597_s26  ;;  %v6961_v5 = vpop.permute.xlu0 %1750  ;;  %v6963_v7 = vpop.permute.xlu1 %1141  ;;  %9709 = vst [vmem:[#allocation71_spill] sm:$0xff] %v7066_v48 }
 0x155   : > { %9692 = vst [vmem:[#allocation54_spill] sm:$0xff] %v6961_v5  ;;  %v6965_v9 = vpop.permute.xlu2 %2045 }
 0x156   : > { %9693 = vst [vmem:[#allocation55_spill] sm:$0xff] %v6963_v7  ;;  %5527 = vmatpush.xpose.msk.msra.mxu3 %vm622_vm0, %v6888_v42  ;;  %913 = vmatpush.bf16.msrb.mxu0 %v6950_v3 }
 0x15a   : > { %5528 = vmatpush.xpose.msk.msra.mxu3 %vm622_vm0, %v6876_v37  ;;  %914 = vmatpush.bf16.msrb.mxu0 %v6967_v11 }
 0x15b   : > { %2051 = vrot.lane.b32.xlu0 %v6948_v1, %s6596_s21  ;;  %1766 = vrot.lane.b32.xlu2 %v6854_v31, %s6596_s21 }
 0x15c   : > { %1718 = vrot.lane.b32.xlu1 %v6942_v62, %s6596_s21  ;;  %v6985_v16 = vpop.permute.xlu1 %1752  ;;  %v6987_v18 = vpop.permute.xlu0 %1091 }
 0x15d   : > { %9696 = vst [vmem:[#allocation58_spill] sm:$0xff] %v6987_v18  ;;  %v6989_v20 = vpop.permute.xlu2 %1754 }
 0x15e   : > { %5529 = vmatpush.xpose.msk.msra.mxu3 %vm622_vm0, %v6868_v35  ;;  %915 = vmatpush.bf16.msrb.mxu0 %v6974_v13 }
 0x162   : > { %5530 = vmatpush.xpose.msk.msra.mxu3 %vm622_vm0, %v6854_v31  ;;  %916 = vmatpush.bf16.msrb.mxu0 %v6948_v1 }
 0x163   : > { %1716 = vrot.lane.b32.xlu0 %v6940_v60, %s6596_s21  ;;  %1157 = vrot.lane.b32.xlu2 %v6868_v35, %s6597_s26 }
 0x164   : > { %1159 = vrot.lane.b32.xlu1 %v6876_v37, %s6597_s26  ;;  %v7003_v24 = vpop.permute.xlu0 %1434  ;;  %v7005_v25 = vpop.permute.xlu1 %1093 }
 0x165   : > { %9697 = vst [vmem:[#allocation59_spill] sm:$0xff] %v7005_v25  ;;  %v7007_v27 = vpop.permute.xlu2 %1095  ;;  %v374_v25 = vpop.f32.mrf.mxu0 }
 0x166   : > { %9698 = vst [vmem:[#allocation60_spill] sm:$0xff] %v7007_v27  ;;  %5531 = vmatpush.xpose.msk.msra.mxu3 %vm622_vm0, %v6840_v26  ;;  %917 = vmatpush.bf16.msrb.mxu0 %v6862_v32  ;;  %v7128_v47 = vmul.f32 0.25, %v374_v25 }
 0x168   : > { %9717 = vst [vmem:[#allocation79_spill] sm:$0xff] %v7128_v47 }
 0x16a   : > { %5532 = vmatpush.xpose.msk.msra.mxu3 %vm622_vm0, %v6830_v23  ;;  %918 = vmatpush.bf16.msrb.mxu0 %v6852_v30 }
 0x16b   : > { %1155 = vrot.lane.b32.xlu0 %v6854_v31, %s6597_s26  ;;  %1442 = vrot.lane.b32.xlu2 %v6974_v13, %s6597_s26 }
 0x16c   : > { %1770 = vrot.lane.b32.xlu1 %v6876_v37, %s6596_s21  ;;  %v7021_v34 = vpop.permute.xlu0 %1704  ;;  %v7023_v36 = vpop.permute.xlu1 %2315 }
 0x16d   : > { %9699 = vst [vmem:[#allocation61_spill] sm:$0xff] %v7021_v34  ;;  %v7025_v38 = vpop.permute.xlu2 %1145 }
 0x16e   : > { %9700 = vst [vmem:[#allocation62_spill] sm:$0xff] %v7023_v36  ;;  %5533 = vmatpush.xpose.msk.msra.mxu3 %vm622_vm0, %v6820_v21  ;;  %919 = vmatpush.bf16.msrb.mxu0 %v6800_v14 }
 0x16f   : > { %9701 = vst [vmem:[#allocation63_spill] sm:$0xff] %v7025_v38 }
 0x172   : > { %5534 = vmatpush.xpose.msk.msra.mxu3 %vm622_vm0, %v6810_v17 }
 0x173   : > { %1768 = vrot.lane.b32.xlu0 %v6868_v35, %s6596_s21  ;;  %2053 = vrot.lane.b32.xlu2 %v6974_v13, %s6596_s21 }
 0x174   : > { %2055 = vrot.lane.b32.xlu1 %v6967_v11, %s6596_s21  ;;  %v7038_v41 = vpop.permute.xlu0 %1143  ;;  %v7040_v44 = vpop.permute.xlu1 %1706 }
 0x175   : > { %9702 = vst [vmem:[#allocation64_spill] sm:$0xff] %v7038_v41  ;;  %v7042_v46 = vpop.permute.xlu2 %1436 }
 0x176   : > { %9703 = vst [vmem:[#allocation65_spill] sm:$0xff] %v7040_v44  ;;  %5535 = vmatpush.xpose.msk.msra.mxu3 %vm622_vm0, %v6802_v15 }
 0x17a   : > { %5536 = vmatpush.xpose.msk.msra.mxu3 %vm622_vm0, %v6790_v10 }
 0x17b   : > { %1720 = vrot.lane.b32.xlu2 %v7046_v50, %s6596_s21  ;;  %1109 = vrot.lane.b32.xlu0 %v7046_v50, %s6597_s26 }
 0x17c   : > { %1113 = vrot.lane.b32.xlu1 %v7048_v54, %s6597_s26  ;;  %v7058_v59 = vpop.permute.xlu0 %2317  ;;  %v7060_v61 = vpop.permute.xlu1 %1147 }
 0x17d   : > { %9706 = vst [vmem:[#allocation68_spill] sm:$0xff] %v7058_v59  ;;  %v7062_v22 = vpop.permute.xlu2 %1708 }
 0x17e   : > { %9707 = vst [vmem:[#allocation69_spill] sm:$0xff] %v7060_v61  ;;  %5537 = vmatpush.xpose.msk.msra.mxu3 %vm622_vm0, %v6780_v6 }
 0x17f   : > { %9708 = vst [vmem:[#allocation70_spill] sm:$0xff] %v7062_v22 }
 0x182   : > { %5538 = vmatpush.xpose.msk.msra.mxu3 %vm622_vm0, %v6774_v4 }
 0x183   : > { %1722 = vrot.lane.b32.xlu0 %v7066_v48, %s6596_s21  ;;  %1111 = vrot.lane.b32.xlu2 %v7066_v48, %s6597_s26 }
 0x184   : > { %1724 = vrot.lane.b32.xlu1 %v7048_v54, %s6596_s21  ;;  %v7076_v59 = vpop.permute.xlu0 %1756  ;;  %v7078_v36 = vpop.permute.xlu1 %1758 }
 0x185   : > { %v7080_v58 = vpop.permute.xlu2 %2319 }
 0x186   : > { %9710 = vst [vmem:[#allocation72_spill] sm:$0xff] %v7080_v58  ;;  %5539 = vmatpush.xpose.msk.msra.mxu3 %vm622_vm0, %v6764_v0 }
 0x189   : > { %5540 = vmatmul.msk.f32.vlgmr.msra.gmra.mxu3 %vm622_vm0, %v6770_v2 }
 0x18b   : > { %1161 = vrot.lane.b32.xlu0 %v6888_v42, %s6597_s26  ;;  %1772 = vrot.lane.b32.xlu2 %v6888_v42, %s6596_s21 }
 0x18c   : > { %1165 = vrot.lane.b32.xlu1 %v6908_v49, %s6597_s26  ;;  %v7092_v57 = vpop.permute.xlu0 %2047  ;;  %v7094_v27 = vpop.permute.xlu1 %2321 }
 0x18d   : > { %9711 = vst [vmem:[#allocation73_spill] sm:$0xff] %v7094_v27  ;;  %v7096_v58 = vpop.permute.xlu2 %1099 }
 0x18e   : > { %9712 = vst [vmem:[#allocation74_spill] sm:$0xff] %v7096_v58  ;;  %v7112_v58 = vmul.f32 0.25, %v371_v29  ;;  %v377_v29 = vpop.f32.mrf.mxu0 }
 0x18f   : > { %v7130_v7 = vmul.f32 0.25, %v377_v29 }
 0x190   : > { %9714 = vst [vmem:[#allocation76_spill] sm:$0xff] %v7112_v58 }
 0x191   : > { %5541 = vmatmul.msk.f32.gmra.mxu3 %vm622_vm0, %v6788_v8  ;;  %9718 = vst [vmem:[#allocation80_spill] sm:$0xff] %v7130_v7 }
 0x193   : > { %1444 = vrot.lane.b32.xlu0 %v6967_v11, %s6597_s26  ;;  %1163 = vrot.lane.b32.xlu2 %v6898_v45, %s6597_s26 }
 0x194   : > { %1446 = vrot.lane.b32.xlu1 %v6950_v3, %s6597_s26  ;;  %v7106_v18 = vpop.permute.xlu0 %1097  ;;  %v7108_v43 = vpop.permute.xlu1 %1438 }
 0x195   : > { %9713 = vst [vmem:[#allocation75_spill] sm:$0xff] %v7106_v18  ;;  %v7110_v27 = vpop.permute.xlu2 %1760 }
 0x199   : > { %5542 = vmatmul.msk.f32.gmra.mxu3 %vm622_vm0, %v6798_v12 }
 0x19b   : > { %1774 = vrot.lane.b32.xlu0 %v6898_v45, %s6596_s21  ;;  %1726 = vrot.lane.b32.xlu2 %v7112_v58, %s6596_s21 }
 0x19c   : > { %1776 = vrot.lane.b32.xlu1 %v6908_v49, %s6596_s21  ;;  %v7122_v51 = vpop.permute.xlu1 %2049  ;;  %v7124_v18 = vpop.permute.xlu0 %1710 }
 0x19d   : > { %9715 = vst [vmem:[#allocation77_spill] sm:$0xff] %v7124_v18  ;;  %v7126_v22 = vpop.permute.xlu2 %1151 }
 0x19e   : > { %9716 = vst [vmem:[#allocation78_spill] sm:$0xff] %v7126_v22 }
 0x1a1   : > { %5543 = vmatmul.msk.f32.gmra.mxu3 %vm622_vm0, %v6818_v19 }
 0x1a3   : > { %1115 = vrot.lane.b32.xlu0 %v7112_v58, %s6597_s26  ;;  %1117 = vrot.lane.b32.xlu2 %v7128_v47, %s6597_s26 }
 0x1a4   : > { %1119 = vrot.lane.b32.xlu1 %v7130_v7, %s6597_s26  ;;  %v7140_v18 = vpop.permute.xlu0 %1149  ;;  %v7142_v44 = vpop.permute.xlu1 %1101 }
 0x1a5   : > { %9719 = vst [vmem:[#allocation81_spill] sm:$0xff] %v7140_v18  ;;  %v7144_v25 = vpop.permute.xlu2 %1714 }
 0x1a6   : > { %9720 = vst [vmem:[#allocation82_spill] sm:$0xff] %v7142_v44 }
 0x1a7   : > { %9721 = vst [vmem:[#allocation83_spill] sm:$0xff] %v7144_v25 }
 0x1a9   : > { %5544 = vmatmul.msk.f32.gmra.mxu3 %vm622_vm0, %v6864_v33 }
 0x1ab   : > { %2057 = vrot.lane.b32.xlu0 %v6950_v3, %s6596_s21  ;;  %1778 = vrot.lane.b32.xlu2 %v6922_v55, %s6596_s21 }
 0x1ac   : > { %1730 = vrot.lane.b32.xlu1 %v7130_v7, %s6596_s21  ;;  %v7154_v29 = vpop.permute.xlu0 %2323  ;;  %v7156_v41 = vpop.permute.xlu1 %1712 }
 0x1ad   : > { %9722 = vst [vmem:[#allocation84_spill] sm:$0xff] %v7154_v29  ;;  %v7158_v38 = vpop.permute.xlu2 %1105 }
 0x1ae   : > { %9723 = vst [vmem:[#allocation85_spill] sm:$0xff] %v7156_v41 }
 0x1af   : > { %9724 = vst [vmem:[#allocation86_spill] sm:$0xff] %v7158_v38 }
 0x1b1   : > { %5545 = vmatmul.msk.f32.gmra.mxu3 %vm622_vm0, %v6848_v28 }
 0x1b3   : > { %1728 = vrot.lane.b32.xlu0 %v7128_v47, %s6596_s21  ;;  %1448 = vrot.lane.b32.xlu2 %v6944_v63, %s6597_s26 }
 0x1b4   : > { %2327 = vrot.lane.b32.xlu1 %v6940_v60, %s6598_s10  ;;  %v7168_v44 = vpop.permute.xlu0 %1762  ;;  %v7170_v25 = vpop.permute.xlu1 %1153 }
 0x1b5   : > { %9725 = vst [vmem:[#allocation87_spill] sm:$0xff] %v7170_v25  ;;  %v7172_v29 = vpop.permute.xlu2 %1766 }
 0x1b9   : > { %5546 = vmatmul.msk.f32.gmra.mxu3 %vm622_vm0, %v6886_v40 }
 0x1bb   : > { %1167 = vrot.lane.b32.xlu0 %v6922_v55, %s6597_s26  ;;  %2059 = vrot.lane.b32.xlu2 %v6944_v63, %s6596_s21 }
 0x1bc   : > { %2333 = vrot.lane.b32.xlu1 %v7066_v48, %s6598_s10  ;;  %v7182_v38 = vpop.permute.xlu1 %1764 }
 0x1bd   : > { %v7184_v41 = vpop.permute.xlu0 %1103  ;;  %v7186_v34 = vpop.permute.xlu2 %1157 }
 0x1be   : > { %9726 = vst [vmem:[#allocation88_spill] sm:$0xff] %v7184_v41 }
 0x1c1   : > { %5547 = vmatmul.msk.f32.gmra.mxu3 %vm622_vm0, %v6920_v53 }
 0x1c3   : > { %2329 = vrot.lane.b32.xlu0 %v6942_v62, %s6598_s10  ;;  %2325 = vrot.lane.b32.xlu2 %v6920_v53, %s6598_s10 }
 0x1c4   : > { %2339 = vrot.lane.b32.xlu1 %v7128_v47, %s6598_s10 }
 0x1c5   : > { %v7196_v61 = vpop.permute.xlu0 %1440  ;;  %v7198_v18 = vpop.permute.xlu2 %1442 }
 0x1c6   : > { %v7200_v52 = vpop.permute.xlu1 %1107 }
 0x1c7   : > { %9727 = vst [vmem:[#allocation89_spill] sm:$0xff] %v7200_v52 }
 0x1c9   : > { %5548 = vmatmul.msk.f32.gmra.mxu3 %vm622_vm0, %v6940_v60 }
 0x1cb   : > { %2335 = vrot.lane.b32.xlu0 %v7048_v54, %s6598_s10  ;;  %2331 = vrot.lane.b32.xlu2 %v7046_v50, %s6598_s10 }
 0x1cc   : > { %2361 = vrot.lane.b32.xlu1 %v6774_v4, %s6598_s10 }
 0x1cd   : > { %v7210_v41 = vpop.permute.xlu0 %2051  ;;  %v7212_v22 = vpop.permute.xlu2 %2053 }
 0x1ce   : > { %v7214_v25 = vpop.permute.xlu1 %1718 }
 0x1cf   : > { %9728 = vst [vmem:[#allocation90_spill] sm:$0xff] %v7214_v25 }
 0x1d1   : > { %5549 = vmatmul.msk.f32.gmra.mxu3 %vm622_vm0, %v6942_v62 }
 0x1d3   : > { %2337 = vrot.lane.b32.xlu2 %v7112_v58, %s6598_s10  ;;  %2341 = vrot.lane.b32.xlu0 %v7130_v7, %s6598_s10 }
 0x1d4   : > { %2367 = vrot.lane.b32.xlu1 %v6802_v15, %s6598_s10 }
 0x1d5   : > { %v7224_v52 = vpop.permute.xlu0 %1716  ;;  %v7226_v56 = vpop.permute.xlu2 %1720 }
 0x1d6   : > { %9729 = vst [vmem:[#allocation91_spill] sm:$0xff] %v7224_v52  ;;  %v7228_v39 = vpop.permute.xlu1 %1159 }
 0x1d7   : > { %9730 = vst [vmem:[#allocation92_spill] sm:$0xff] %v7226_v56 }
 0x1d9   : > { %5550 = vmatmul.msk.f32.gmra.mxu3 %vm622_vm0, %v7046_v50 }
 0x1db   : > { %2359 = vrot.lane.b32.xlu2 %v6764_v0, %s6598_s10  ;;  %2363 = vrot.lane.b32.xlu0 %v6780_v6, %s6598_s10 }
 0x1dc   : > { %2373 = vrot.lane.b32.xlu1 %v6830_v23, %s6598_s10 }
 0x1dd   : > { %v7238_v25 = vpop.permute.xlu0 %1155  ;;  %v7240_v5 = vpop.permute.xlu2 %1111 }
 0x1de   : > { %9731 = vst [vmem:[#allocation93_spill] sm:$0xff] %v7240_v5  ;;  %v1771_v52 = vpop.permute.xlu1 %1770 }
 0x1e1   : > { %5551 = vmatmul.msk.f32.gmra.mxu3 %vm622_vm0, %v7066_v48 }
 0x1e3   : > { %2365 = vrot.lane.b32.xlu2 %v6790_v10, %s6598_s10  ;;  %2369 = vrot.lane.b32.xlu0 %v6810_v17, %s6598_s10 }
 0x1e4   : > { %2379 = vrot.lane.b32.xlu1 %v6868_v35, %s6598_s10 }
 0x1e5   : > { %v7250_v56 = vpop.permute.xlu0 %1768  ;;  %v1773_v23 = vpop.permute.xlu2 %1772 }
 0x1e6   : > { %v7252_v6 = vpop.permute.xlu1 %2055 }
 0x1e9   : > { %5552 = vmatmul.msk.f32.gmra.mxu3 %vm622_vm0, %v7048_v54 }
 0x1eb   : > { %2371 = vrot.lane.b32.xlu2 %v6820_v21, %s6598_s10  ;;  %2375 = vrot.lane.b32.xlu0 %v6840_v26, %s6598_s10 }
 0x1ec   : > { %2385 = vrot.lane.b32.xlu1 %v6898_v45, %s6598_s10 }
 0x1ed   : > { %v7262_v17 = vpop.permute.xlu0 %1109  ;;  %v7264_v35 = vpop.permute.xlu2 %1163 }
 0x1ee   : > { %v7266_v5 = vpop.permute.xlu1 %1113 }
 0x1ef   : > { %9732 = vst [vmem:[#allocation94_spill] sm:$0xff] %v7266_v5 }
 0x1f1   : > { %5553 = vmatmul.msk.f32.gmra.mxu3 %vm622_vm0, %v7112_v58 }
 0x1f3   : > { %2377 = vrot.lane.b32.xlu2 %v6854_v31, %s6598_s10  ;;  %2381 = vrot.lane.b32.xlu0 %v6876_v37, %s6598_s10 }
 0x1f4   : > { %2658 = vrot.lane.b32.xlu1 %v6852_v30, %s6598_s10 }
 0x1f5   : > { %v7276_v26 = vpop.permute.xlu0 %1722  ;;  %v7278_v45 = vpop.permute.xlu2 %1726 }
 0x1f6   : > { %v7280_v21 = vpop.permute.xlu1 %1724 }
 0x1f9   : > { %5554 = vmatmul.msk.f32.gmra.mxu3 %vm622_vm0, %v7128_v47 }
 0x1fb   : > { %2383 = vrot.lane.b32.xlu2 %v6888_v42, %s6598_s10  ;;  %2387 = vrot.lane.b32.xlu0 %v6908_v49, %s6598_s10 }
 0x1fc   : > { %2666 = vrot.lane.b32.xlu1 %v6967_v11, %s6598_s10 }
 0x1fd   : > { %v7290_v37 = vpop.permute.xlu0 %1161  ;;  %v7292_v30 = vpop.permute.xlu2 %1117 }
 0x1fe   : > { %9733 = vst [vmem:[#allocation95_spill] sm:$0xff] %v7292_v30  ;;  %v7294_v31 = vpop.permute.xlu1 %1165 }
 0x201   : > { %5555 = vmatmul.msk.f32.gmra.mxu3 %vm622_vm0, %v7130_v7 }
 0x203   : > { %2389 = vrot.lane.b32.xlu2 %v6922_v55, %s6598_s10  ;;  %2660 = vrot.lane.b32.xlu0 %v6862_v32, %s6598_s10 }
 0x204   : > { %2926 = vrot.lane.b32.xlu1 %v6798_v12, %s6599_s11 }
 0x205   : > { %v1445_v11 = vpop.permute.xlu0 %1444  ;;  %v1779_v42 = vpop.permute.xlu2 %1778 }
 0x206   : > { %v1447_v49 = vpop.permute.xlu1 %1446  ;;  %5588 = vmatpush.xpose.msk.msrb.mxu3 %vm622_vm0, %v1779_v42 }
 0x20b   : > { %2656 = vrot.lane.b32.xlu2 %v6800_v14, %s6598_s10  ;;  %2664 = vrot.lane.b32.xlu0 %v6974_v13, %s6598_s10 }
 0x20c   : > { %2932 = vrot.lane.b32.xlu1 %v6848_v28, %s6599_s11  ;;  %v7311_v55 = vpop.f32.mrf.mxu3 }
 0x20d   : > { %v1775_v32 = vpop.permute.xlu0 %1774  ;;  %v1449_v30 = vpop.permute.xlu2 %1448 }
 0x20e   : > { %v1777_v5 = vpop.permute.xlu1 %1776  ;;  %1458 = vmatpush.bf16.msrb.mxu2 %v1449_v30 }
 0x20f   : > { %5589 = vmatpush.xpose.msk.msrb.mxu3 %vm622_vm0, %v1777_v5 }
 0x212   : > { %1459 = vmatpush.bf16.msrb.mxu2 %v1447_v49 }
 0x213   : > { %5590 = vmatpush.xpose.msk.msrb.mxu3 %vm622_vm0, %v1775_v32  ;;  %2662 = vrot.lane.b32.xlu2 %v6948_v1, %s6598_s10 }
 0x214   : > { %2670 = vrot.lane.b32.xlu0 %v6944_v63, %s6598_s10  ;;  %2938 = vrot.lane.b32.xlu1 %v6940_v60, %s6599_s11  ;;  %v7321_v42 = vpop.f32.mrf.mxu3 }
 0x215   : > { %v7323_v28 = vpop.permute.xlu0 %1115  ;;  %v2060_v12 = vpop.permute.xlu2 %2059 }
 0x216   : > { %1460 = vmatpush.bf16.msrb.mxu2 %v1445_v11  ;;  %2069 = vmatpush.bf16.msra.mxu0 %v2060_v12  ;;  %v7326_v30 = vpop.permute.xlu1 %1119 }
 0x217   : > { %5591 = vmatpush.xpose.msk.msrb.mxu3 %vm622_vm0, %v1773_v23 }
 0x21a   : > { %1461 = vmatpush.bf16.msrb.mxu2 %v7198_v18 }
 0x21b   : > { %5592 = vmatpush.xpose.msk.msrb.mxu3 %vm622_vm0, %v1771_v52  ;;  %2668 = vrot.lane.b32.xlu2 %v6950_v3, %s6598_s10 }
 0x21c   : > { %2924 = vrot.lane.b32.xlu0 %v6788_v8, %s6599_s11  ;;  %2944 = vrot.lane.b32.xlu1 %v7066_v48, %s6599_s11  ;;  %v7336_v32 = vpop.f32.mrf.mxu3 }
 0x21d   : > { %v2058_v12 = vpop.permute.xlu0 %2057  ;;  %v7338_v49 = vpop.permute.xlu2 %2325 }
 0x21e   : > { %1462 = vmatpush.bf16.msrb.mxu2 %v7196_v61  ;;  %2070 = vmatpush.bf16.msra.mxu0 %v2058_v12  ;;  %v7343_v23 = vpop.permute.xlu1 %1730  ;;  %v9738_v61 = vld [vmem:[#allocation78_spill] sm:$0xff] }
 0x21f   : > { %5593 = vmatpush.xpose.msk.msrb.mxu3 %vm622_vm0, %v7250_v56 }
 0x222   : > { %1463 = vmatpush.bf16.msrb.mxu2 %v7108_v43  ;;  %2071 = vmatpush.bf16.msra.mxu0 %v7252_v6 }
 0x223   : > { %5594 = vmatpush.xpose.msk.msrb.mxu3 %vm622_vm0, %v7172_v29  ;;  %2922 = vrot.lane.b32.xlu2 %v6770_v2, %s6599_s11  ;;  %v9741_v29 = vld [vmem:[#allocation17_spill] sm:$0xff] }
 0x224   : > { %2930 = vrot.lane.b32.xlu0 %v6864_v33, %s6599_s11  ;;  %2950 = vrot.lane.b32.xlu1 %v7128_v47, %s6599_s11  ;;  %v7355_v52 = vpop.f32.mrf.mxu3  ;;  %v9745_v47 = vld [vmem:[#allocation64_spill] sm:$0xff]  ;;  %v9780_v33 = vld [vmem:[#allocation47_spill] sm:$0xff] }
 0x225   : > { %v7357_v56 = vpop.permute.xlu0 %1728  ;;  %v7359_v5 = vpop.permute.xlu2 %2331 }
 0x226   : > { %1464 = vmatpush.bf16.msrb.mxu2 %v7042_v46  ;;  %2072 = vmatpush.bf16.msra.mxu0 %v7212_v22  ;;  %v7371_v6 = vpop.permute.xlu1 %2327  ;;  %v9739_v22 = vld [vmem:[#allocation43_spill] sm:$0xff] }
 0x227   : > { %5595 = vmatpush.xpose.msk.msrb.mxu3 %vm622_vm0, %v7182_v38  ;;  %v9736_v38 = vld [vmem:[#allocation46_spill] sm:$0xff] }
 0x22a   : > { %1465 = vmatpush.bf16.msrb.mxu2 %v7003_v24  ;;  %2073 = vmatpush.bf16.msra.mxu0 %v7210_v41  ;;  %v9737_v41 = vld [vmem:[#allocation87_spill] sm:$0xff] }
 0x22b   : > { %5596 = vmatpush.xpose.msk.msrb.mxu3 %vm622_vm0, %v7168_v44  ;;  %2928 = vrot.lane.b32.xlu2 %v6818_v19, %s6599_s11 }
 0x22c   : > { %2936 = vrot.lane.b32.xlu0 %v6920_v53, %s6599_s11  ;;  %2972 = vrot.lane.b32.xlu1 %v6774_v4, %s6599_s11  ;;  %v7377_v43 = vpop.f32.mrf.mxu3 }
 0x22d   : > { %v1168_v11 = vpop.permute.xlu0 %1167  ;;  %v7379_v18 = vpop.permute.xlu2 %2337 }
 0x22e   : > { %5556 = vmatpush.xpose.msk.msrb.mxu1 %vm622_vm0, %v1168_v11  ;;  %2074 = vmatpush.bf16.msra.mxu0 %v7122_v51 }
 0x22f   : > { %5597 = vmatpush.xpose.msk.msrb.mxu3 %vm622_vm0, %v7110_v27  ;;  %v7400_v27 = vpop.permute.xlu1 %2333 }
 0x232   : > { %5557 = vmatpush.xpose.msk.msrb.mxu1 %vm622_vm0, %v7294_v31  ;;  %2075 = vmatpush.bf16.msra.mxu0 %v7092_v57 }
 0x233   : > { %5598 = vmatpush.xpose.msk.msrb.mxu3 %vm622_vm0, %v7078_v36  ;;  %2934 = vrot.lane.b32.xlu2 %v6886_v40, %s6599_s11  ;;  %v9752_v40 = vld [vmem:[#allocation77_spill] sm:$0xff] }
 0x234   : > { %2942 = vrot.lane.b32.xlu0 %v7046_v50, %s6599_s11  ;;  %2978 = vrot.lane.b32.xlu1 %v6802_v15, %s6599_s11  ;;  %v7396_v51 = vpop.f32.mrf.mxu3  ;;  %v9750_v50 = vld [vmem:[#allocation42_spill] sm:$0xff] }
 0x235   : > { %v7398_v24 = vpop.permute.xlu0 %2329  ;;  %v7407_v31 = vpop.permute.xlu2 %2359 }
 0x236   : > { %5558 = vmatpush.xpose.msk.msrb.mxu1 %vm622_vm0, %v7264_v35  ;;  %2076 = vmatpush.bf16.msra.mxu0 %v6965_v9 }
 0x237   : > { %5599 = vmatpush.xpose.msk.msrb.mxu3 %vm622_vm0, %v7076_v59 }
 0x23a   : > { %5559 = vmatpush.xpose.msk.msrb.mxu1 %vm622_vm0, %v7290_v37  ;;  %v7425_v37 = vpop.permute.xlu1 %2339 }
 0x23b   : > { %5600 = vmatpush.xpose.msk.msrb.mxu3 %vm622_vm0, %v6989_v20  ;;  %2940 = vrot.lane.b32.xlu2 %v6942_v62, %s6599_s11  ;;  %v9734_v20 = vld [vmem:[#allocation54_spill] sm:$0xff] }
 0x23c   : > { %2948 = vrot.lane.b32.xlu0 %v7112_v58, %s6599_s11  ;;  %v7417_v35 = vpop.f32.mrf.mxu3 }
 0x23d   : > { %v7419_v57 = vpop.permute.xlu0 %2335  ;;  %v7427_v9 = vpop.permute.xlu2 %2365 }
 0x23e   : > { %5560 = vmatpush.xpose.msk.msrb.mxu1 %vm622_vm0, %v7228_v39 }
 0x23f   : > { %5601 = vmatpush.xpose.msk.msrb.mxu3 %vm622_vm0, %v6985_v16  ;;  %v9735_v16 = vld [vmem:[#allocation35_spill] sm:$0xff] }
 0x242   : > { %5561 = vmatpush.xpose.msk.msrb.mxu1 %vm622_vm0, %v7186_v34  ;;  %v7445_v34 = vpop.permute.xlu1 %2361 }
 0x243   : > { %5602 = vmatpush.xpose.msk.msrb.mxu3 %vm622_vm0, %v9734_v20  ;;  %2946 = vrot.lane.b32.xlu2 %v7048_v54, %s6599_s11  ;;  %v9746_v54 = vld [vmem:[#allocation65_spill] sm:$0xff] }
 0x244   : > { %2970 = vrot.lane.b32.xlu0 %v6764_v0, %s6599_s11  ;;  %v7437_v39 = vpop.f32.mrf.mxu3 }
 0x245   : > { %v7439_v36 = vpop.permute.xlu0 %2341  ;;  %v7453_v44 = vpop.permute.xlu2 %2371 }
 0x246   : > { %5562 = vmatpush.xpose.msk.msrb.mxu1 %vm622_vm0, %v7238_v25  ;;  %v9740_v25 = vld [vmem:[#allocation81_spill] sm:$0xff] }
 0x247   : > { %5603 = vmatpush.xpose.msk.msrb.mxu3 %vm622_vm0, %v9735_v16 }
 0x24a   : > { %5604 = vmatmul.msk.f32.vlgmr.msrb.gmra.mxu3 %vm622_vm0, %v9736_v38  ;;  %5563 = vmatpush.xpose.msk.msrb.mxu1 %vm622_vm0, %v9737_v41  ;;  %v7469_v12 = vpop.permute.xlu1 %2367  ;;  %v9742_v38 = vld [vmem:[#allocation69_spill] sm:$0xff] }
 0x24b   : > { %2952 = vrot.lane.b32.xlu2 %v7130_v7, %s6599_s11  ;;  %v9743_v41 = vld [vmem:[#allocation61_spill] sm:$0xff] }
 0x24c   : > { %2976 = vrot.lane.b32.xlu0 %v6790_v10, %s6599_s11  ;;  %v7457_v46 = vpop.f32.mrf.mxu3 }
 0x24d   : > { %v7459_v59 = vpop.permute.xlu0 %2363  ;;  %v2378_v16 = vpop.permute.xlu2 %2377 }
 0x24e   : > { %5564 = vmatpush.xpose.msk.msrb.mxu1 %vm622_vm0, %v9738_v61  ;;  %v9744_v61 = vld [vmem:[#allocation63_spill] sm:$0xff] }
 0x252   : > { %5605 = vmatmul.msk.f32.gmra.mxu3 %vm622_vm0, %v9739_v22  ;;  %5565 = vmatpush.xpose.msk.msrb.mxu1 %vm622_vm0, %v9740_v25  ;;  %v2374_v25 = vpop.permute.xlu1 %2373 }
 0x253   : > { %2974 = vrot.lane.b32.xlu2 %v9741_v29, %s6599_s11 }
 0x254   : > { %v7471_v11 = vpop.f32.mrf.mxu3 }
 0x255   : > { %v7473_v20 = vpop.permute.xlu0 %2369  ;;  %v2384_v48 = vpop.permute.xlu2 %2383 }
 0x256   : > { %5566 = vmatpush.xpose.msk.msrb.mxu1 %vm622_vm0, %v9742_v38  ;;  %v9747_v38 = vld [vmem:[#allocation55_spill] sm:$0xff] }
 0x25a   : > { %5606 = vmatmul.msk.f32.gmra.mxu3 %vm622_vm0, %v9743_v41  ;;  %5567 = vmatpush.xpose.msk.msrb.mxu1 %vm622_vm0, %v9744_v61  ;;  %v9748_v61 = vld [vmem:[#allocation40_spill] sm:$0xff]  ;;  %v2380_v58 = vpop.permute.xlu1 %2379 }
 0x25c   : > { %v7484_v7 = vpop.f32.mrf.mxu3 }
 0x25d   : > { %v2376_v22 = vpop.permute.xlu0 %2375  ;;  %v2390_v62 = vpop.permute.xlu2 %2389 }
 0x25e   : > { %788 = vmax.xlane.f32.xlu1 %v7336_v32  ;;  %5568 = vmatpush.xpose.msk.msrb.mxu1 %vm622_vm0, %v9745_v47  ;;  %v9749_v47 = vld [vmem:[#allocation70_spill] sm:$0xff] }
 0x262   : > { %5607 = vmatmul.msk.f32.gmra.mxu3 %vm622_vm0, %v9746_v54  ;;  %5569 = vmatpush.xpose.msk.msrb.mxu1 %vm622_vm0, %v9747_v38  ;;  %v9751_v54 = vld [vmem:[#allocation38_spill] sm:$0xff] }
 0x264   : > { %v7493_v60 = vpop.f32.mrf.mxu3 }
 0x265   : > { %v2382_v41 = vpop.permute.xlu0 %2381 }
 0x266   : > { %790 = vmax.xlane.f32.xlu1 %v7355_v52  ;;  %5570 = vmatpush.xpose.msk.msrb.mxu1 %vm622_vm0, %v9748_v61  ;;  %v2386_v61 = vpop.permute.xlu1 %2385 }
 0x26a   : > { %5608 = vmatmul.msk.f32.gmra.mxu3 %vm622_vm0, %v9749_v47  ;;  %5571 = vmatpush.xpose.msk.msrb.mxu1 %vm622_vm0, %v9750_v50  ;;  %v9753_v47 = vld [vmem:[#allocation58_spill] sm:$0xff]  ;;  %v2657_v50 = vpop.permute.xlu2 %2656 }
 0x26c   : > { %v7506_v53 = vpop.f32.mrf.mxu3 }
 0x26d   : > { %5572 = vmatmul.msk.f32.vlgmr.msrb.gmra.mxu1 %vm622_vm0, %v9751_v54  ;;  %v2388_v38 = vpop.permute.xlu0 %2387  ;;  %v9754_v54 = vld [vmem:[#allocation85_spill] sm:$0xff] }
 0x26e   : > { %5620 = vmatpush.xpose.msk.msra.mxu1 %vm622_vm0, %v2390_v62  ;;  %798 = vmax.xlane.f32.xlu1 %v7437_v39 }
 0x272   : > { %5621 = vmatpush.xpose.msk.msra.mxu1 %vm622_vm0, %v2388_v38  ;;  %5609 = vmatmul.msk.f32.gmra.mxu3 %vm622_vm0, %v9752_v40  ;;  %v9755_v38 = vld [vmem:[#allocation59_spill] sm:$0xff] }
 0x274   : > { %v7518_v40 = vpop.f32.mrf.mxu3 }
 0x275   : > { %5573 = vmatmul.msk.f32.gmra.mxu1 %vm622_vm0, %v9753_v47  ;;  %v2661_v62 = vpop.permute.xlu0 %2660  ;;  %v9756_v47 = vld [vmem:[#allocation83_spill] sm:$0xff] }
 0x276   : > { %5622 = vmatpush.xpose.msk.msra.mxu1 %vm622_vm0, %v2386_v61  ;;  %784 = vmax.xlane.f32.xlu0 %v7311_v55 }
 0x277   : > { %804 = vmax.xlane.f32.xlu1 %v7484_v7 }
 0x27a   : > { %5623 = vmatpush.xpose.msk.msra.mxu1 %vm622_vm0, %v2384_v48  ;;  %5610 = vmatmul.msk.f32.gmra.mxu3 %vm622_vm0, %v9754_v54  ;;  %v2663_v48 = vpop.permute.xlu2 %2662  ;;  %v9757_v54 = vld [vmem:[#allocation60_spill] sm:$0xff] }
 0x27c   : > { %792 = vmax.xlane.f32.xlu2 %v7377_v43 }
 0x27d   : > { %5574 = vmatmul.msk.f32.gmra.mxu1 %vm622_vm0, %v9755_v38  ;;  %v2665_v61 = vpop.permute.xlu0 %2664 }
 0x27e   : > { %5624 = vmatpush.xpose.msk.msra.mxu1 %vm622_vm0, %v2382_v41  ;;  %786 = vmax.xlane.f32.xlu0 %v7321_v42  ;;  %v2659_v41 = vpop.permute.xlu1 %2658 }
 0x27f   : > { %810 = vmax.xlane.f32.xlu1 %v7518_v40 }
 0x282   : > { %5625 = vmatpush.xpose.msk.msra.mxu1 %vm622_vm0, %v2380_v58  ;;  %5611 = vmatmul.msk.f32.gmra.mxu3 %vm622_vm0, %v9756_v47  ;;  %v2669_v19 = vpop.permute.xlu2 %2668  ;;  %v9758_v58 = vld [vmem:[#allocation91_spill] sm:$0xff] }
 0x284   : > { %794 = vmax.xlane.f32.xlu2 %v7396_v51 }
 0x285   : > { %5575 = vmatmul.msk.f32.gmra.mxu1 %vm622_vm0, %v9757_v54  ;;  %v7544_v54 = vpop.f32.mrf.mxu3 }
 0x286   : > { %5626 = vmatpush.xpose.msk.msra.mxu1 %vm622_vm0, %v2378_v16  ;;  %796 = vmax.xlane.f32.xlu0 %v7417_v35  ;;  %v2671_v38 = vpop.permute.xlu0 %2670  ;;  %v9759_v16 = vld [vmem:[#allocation75_spill] sm:$0xff]  ;;  %v2667_v47 = vpop.permute.xlu1 %2666 }
 0x287   : > { %2680 = vmatpush.bf16.msra.mxu2 %v2671_v38 }
 0x28a   : > { %5627 = vmatpush.xpose.msk.msra.mxu1 %vm622_vm0, %v2376_v22  ;;  %5612 = vmatmul.msk.f32.gmra.mxu3 %vm622_vm0, %v9758_v58  ;;  %v9760_v22 = vld [vmem:[#allocation90_spill] sm:$0xff] }
 0x28b   : > { %2681 = vmatpush.bf16.msra.mxu2 %v2669_v19  ;;  %v9761_v19 = vld [vmem:[#allocation74_spill] sm:$0xff] }
 0x28c   : > { %800 = vmax.xlane.f32.xlu2 %v7457_v46  ;;  %v9773_v58 = vld [vmem:[#allocation94_spill] sm:$0xff] }
 0x28d   : > { %5576 = vmatmul.msk.f32.gmra.mxu1 %vm622_vm0, %v9759_v16 }
 0x28e   : > { %5628 = vmatpush.xpose.msk.msra.mxu1 %vm622_vm0, %v2374_v25  ;;  %802 = vmax.xlane.f32.xlu0 %v7471_v11  ;;  %v7558_v25 = vpop.f32.mrf.mxu3 }
 0x28f   : > { %2682 = vmatpush.bf16.msra.mxu2 %v2667_v47 }
 0x292   : > { %5629 = vmatpush.xpose.msk.msra.mxu1 %vm622_vm0, %v7453_v44  ;;  %5613 = vmatmul.msk.f32.gmra.mxu3 %vm622_vm0, %v9760_v22  ;;  %v9762_v44 = vld [vmem:[#allocation92_spill] sm:$0xff] }
 0x293   : > { %2683 = vmatpush.bf16.msra.mxu2 %v2665_v61 }
 0x294   : > { %806 = vmax.xlane.f32.xlu2 %v7493_v60 }
 0x295   : > { %5577 = vmatmul.msk.f32.gmra.mxu1 %vm622_vm0, %v9761_v19  ;;  %v9777_v19 = vld [vmem:[#allocation95_spill] sm:$0xff] }
 0x296   : > { %5630 = vmatpush.xpose.msk.msra.mxu1 %vm622_vm0, %v7473_v20  ;;  %808 = vmax.xlane.f32.xlu0 %v7506_v53  ;;  %v9763_v20 = vld [vmem:[#allocation82_spill] sm:$0xff] }
 0x297   : > { %2684 = vmatpush.bf16.msra.mxu2 %v2663_v48 }
 0x29a   : > { %5631 = vmatpush.xpose.msk.msra.mxu1 %vm622_vm0, %v7469_v12  ;;  %5614 = vmatmul.msk.f32.gmra.mxu3 %vm622_vm0, %v9762_v44  ;;  %v7569_v12 = vpop.permute.xlu0 %2924 }
 0x29b   : > { %2685 = vmatpush.bf16.msra.mxu2 %v2661_v62  ;;  %v7577_v62 = vpop.permute.xlu1 %2926 }
 0x29d   : > { %5578 = vmatmul.msk.f32.gmra.mxu1 %vm622_vm0, %v9763_v20 }
 0x29e   : > { %5632 = vmatpush.xpose.msk.msra.mxu1 %vm622_vm0, %v7427_v9  ;;  %814 = vmax.xlane.f32.xlu0 %v7558_v25  ;;  %v9764_v9 = vld [vmem:[#allocation88_spill] sm:$0xff] }
 0x29f   : > { %2686 = vmatpush.bf16.msra.mxu2 %v2659_v41  ;;  %v9770_v41 = vld [vmem:[#allocation93_spill] sm:$0xff] }
 0x2a2   : > { %5633 = vmatpush.xpose.msk.msra.mxu1 %vm622_vm0, %v7459_v59  ;;  %5615 = vmatmul.msk.f32.gmra.mxu3 %vm622_vm0, %v7276_v26  ;;  %v9765_v59 = vld [vmem:[#allocation86_spill] sm:$0xff]  ;;  %v7581_v26 = vpop.permute.xlu0 %2930 }
 0x2a3   : > { %2687 = vmatpush.bf16.msra.mxu2 %v2657_v50  ;;  %v9766_v50 = vld [vmem:[#allocation89_spill] sm:$0xff] }
 0x2a5   : > { %5579 = vmatmul.msk.f32.gmra.mxu1 %vm622_vm0, %v9764_v9 }
 0x2a6   : > { %5634 = vmatpush.xpose.msk.msra.mxu1 %vm622_vm0, %v7445_v34  ;;  %v7585_v34 = vpop.permute.xlu1 %2932 }
 0x2aa   : > { %5635 = vmatpush.xpose.msk.msra.mxu1 %vm622_vm0, %v7407_v31  ;;  %5616 = vmatmul.msk.f32.gmra.mxu3 %vm622_vm0, %v7280_v21  ;;  %v7589_v61 = vpop.permute.xlu0 %2936  ;;  %v7593_v21 = vpop.permute.xlu2 %2922 }
 0x2ab   : > { %9767 = vst [vmem:[#allocation54_spill] sm:$0xff] %v7589_v61 }
 0x2ad   : > { %5580 = vmatmul.msk.f32.gmra.mxu1 %vm622_vm0, %v9765_v59 }
 0x2ae   : > { %v7597_v31 = vpop.permute.xlu1 %2938 }
 0x2af   : > { %9768 = vst [vmem:[#allocation35_spill] sm:$0xff] %v7597_v31 }
 0x2b2   : > { %5617 = vmatmul.msk.f32.gmra.mxu3 %vm622_vm0, %v7278_v45  ;;  %v7601_v45 = vpop.permute.xlu0 %2942  ;;  %v7603_v48 = vpop.permute.xlu2 %2928 }
 0x2b3   : > { %9769 = vst [vmem:[#allocation46_spill] sm:$0xff] %v7601_v45 }
 0x2b5   : > { %5581 = vmatmul.msk.f32.gmra.mxu1 %vm622_vm0, %v9766_v50 }
 0x2b6   : > { %v7607_v38 = vpop.permute.xlu1 %2944 }
 0x2b7   : > { %9771 = vst [vmem:[#allocation87_spill] sm:$0xff] %v7607_v38 }
 0x2ba   : > { %5618 = vmatmul.msk.f32.gmra.mxu3 %vm622_vm0, %v7357_v56  ;;  %v7609_v56 = vpop.permute.xlu0 %2948 }
 0x2bb   : > { %9772 = vst [vmem:[#allocation78_spill] sm:$0xff] %v7609_v56 }
 0x2bd   : > { %5582 = vmatmul.msk.f32.gmra.mxu1 %vm622_vm0, %v7262_v17  ;;  %v7613_v17 = vpop.permute.xlu2 %2934 }
 0x2be   : > { %9774 = vst [vmem:[#allocation43_spill] sm:$0xff] %v7613_v17  ;;  %v7615_v16 = vpop.permute.xlu1 %2950 }
 0x2bf   : > { %9775 = vst [vmem:[#allocation81_spill] sm:$0xff] %v7615_v16 }
 0x2c2   : > { %5619 = vmatmul.msk.f32.gmra.mxu3 %vm622_vm0, %v7343_v23  ;;  %v7619_v23 = vpop.permute.xlu0 %2970 }
 0x2c5   : > { %5583 = vmatmul.msk.f32.gmra.mxu1 %vm622_vm0, %v9770_v41  ;;  %v7621_v47 = vpop.permute.xlu2 %2940 }
 0x2c6   : > { %9776 = vst [vmem:[#allocation69_spill] sm:$0xff] %v7621_v47  ;;  %v7623_v22 = vpop.permute.xlu1 %2972 }
 0x2ca   : > { %v7627_v44 = vpop.permute.xlu0 %2976 }
 0x2cd   : > { %5584 = vmatmul.msk.f32.gmra.mxu1 %vm622_vm0, %v9773_v58  ;;  %v7629_v20 = vpop.f32.mrf.mxu3  ;;  %v7631_v9 = vpop.permute.xlu2 %2946 }
 0x2ce   : > { %9778 = vst [vmem:[#allocation61_spill] sm:$0xff] %v7631_v9  ;;  %v7635_v59 = vpop.permute.xlu1 %2978 }
 0x2d5   : > { %5585 = vmatmul.msk.f32.gmra.mxu1 %vm622_vm0, %v7323_v28  ;;  %v7639_v41 = vpop.f32.mrf.mxu3 }
 0x2d6   : > { %v789_v0 = vpop.xlane.xlu1 %788 }
 0x2dd   : > { %5586 = vmatmul.msk.f32.gmra.mxu1 %vm622_vm0, %v9777_v19  ;;  %v7643_v19 = vpop.permute.xlu2 %2952  ;;  %v7652_v10 = vpop.f32.mrf.mxu3 }
 0x2de   : > { %9779 = vst [vmem:[#allocation63_spill] sm:$0xff] %v7643_v19 }
 0x2e5   : > { %5587 = vmatmul.msk.f32.gmra.mxu1 %vm622_vm0, %v7326_v30 }
 0x2e9   : > { %v785_v28 = vpop.xlane.xlu0 %784 }
 0x2ea   : > { %v7637_v50 = vpop.f32.mrf.mxu1  ;;  %v816_v58 = vsub.f32 %v7311_v55, %v785_v28  ;;  %v9781_v55 = vld [vmem:[#allocation48_spill] sm:$0xff]  ;;  %v791_v28 = vpop.xlane.xlu1 %790 }
 0x2eb   : > { %1298 = vmax.xlane.f32.xlu2 %v7637_v50 }
 0x2ec   : > { %v832_v2 = vmul.f32 1.442695, %v816_v58 }
 0x2ed   : > { %5636 = vmatmul.msk.f32.vlgmr.msra.gmra.mxu1 %vm622_vm0, %v9780_v33  ;;  %v7656_v33 = vpop.permute.xlu2 %2974 }
 0x2ee   : > { %5916 = vpow2.f32 %v832_v2  ;;  %v819_v2 = vsub.f32 %v7355_v52, %v791_v28 }
 0x2f0   : > { %v838_v3 = vmul.f32 1.442695, %v819_v2  ;;  %v9784_v2 = vld [vmem:[#allocation72_spill] sm:$0xff] }
 0x2f1   : > { %v787_v8 = vpop.xlane.xlu0 %786 }
 0x2f2   : > { %v817_v30 = vsub.f32 %v7321_v42, %v787_v8  ;;  %v7648_v29 = vpop.f32.mrf.mxu1  ;;  %v818_v8 = vsub.f32 %v7336_v32, %v789_v0  ;;  %v9783_v0 = vld [vmem:[#allocation68_spill] sm:$0xff] }
 0x2f3   : > { %812 = vmax.xlane.f32.xlu2 %v7544_v54  ;;  %1300 = vmax.xlane.f32.xlu1 %v7648_v29 }
 0x2f4   : > { %v834_v4 = vmul.f32 1.442695, %v817_v30  ;;  %v5917_v58 = vpop.eup %5916  ;;  %v9782_v30 = vld [vmem:[#allocation62_spill] sm:$0xff] }
 0x2f5   : > { %5637 = vmatmul.msk.f32.gmra.mxu1 %vm622_vm0, %v9781_v55  ;;  %v836_v55 = vmul.f32 1.442695, %v818_v8  ;;  %v793_v13 = vpop.xlane.xlu2 %792 }
 0x2f6   : > { %5918 = vpow2.f32 %v834_v4  ;;  %v7665_v4 = vpop.f32.mrf.mxu3 }
 0x2f7   : > { %5920 = vpow2.f32 %v836_v55 }
 0x2f8   : > { %5922 = vpow2.f32 %v838_v3 }
 0x2fa   : > { %v7658_v15 = vpop.f32.mrf.mxu1 }
 0x2fb   : > { %864 = vadd.xlane.f32.xlu1 %v5917_v58  ;;  %1302 = vmax.xlane.f32.xlu0 %v7658_v15 }
 0x2fc   : > { %v5919_v42 = vpop.eup %5918 }
 0x2fd   : > { %5638 = vmatmul.msk.f32.gmra.mxu1 %vm622_vm0, %v9782_v30  ;;  %v896_v63 = vpack.c.bf16 %v5919_v42, %v5917_v58  ;;  %v5921_v32 = vpop.eup %5920  ;;  %v795_v28 = vpop.xlane.xlu2 %794  ;;  %v820_v30 = vsub.f32 %v7377_v43, %v793_v13 }
 0x2fe   : > { %v7674_v52 = vpop.f32.mrf.mxu3  ;;  %v5923_v58 = vpop.eup %5922  ;;  %v821_v8 = vsub.f32 %v7396_v51, %v795_v28  ;;  %v9785_v51 = vld [vmem:[#allocation73_spill] sm:$0xff] }
 0x2ff   : > { %920 = vmatmul.bf16.vlgmr.msrb.gmra.mxu0 %v896_v63  ;;  %v897_v3 = vpack.c.bf16 %v5923_v58, %v5921_v32  ;;  %v799_v43 = vpop.xlane.xlu1 %798 }
 0x300   : > { %v842_v55 = vmul.f32 1.442695, %v821_v8 }
 0x302   : > { %v7667_v1 = vpop.f32.mrf.mxu1  ;;  %5924 = vpow2.f32 %v842_v55 }
 0x303   : > { %1304 = vmax.xlane.f32.xlu2 %v7667_v1  ;;  %1909 = vmax.xlane.f32.xlu0 %v7629_v20 }
 0x304   : > { %1911 = vmax.xlane.f32.xlu1 %v7639_v41 }
 0x305   : > { %5639 = vmatmul.msk.f32.gmra.mxu1 %vm622_vm0, %v9783_v0  ;;  %v840_v0 = vmul.f32 1.442695, %v820_v30  ;;  %v823_v30 = vsub.f32 %v7437_v39, %v799_v43 }
 0x306   : > { %v7685_v19 = vpop.f32.mrf.mxu3 }
 0x307   : > { %5926 = vpow2.f32 %v840_v0  ;;  %v846_v0 = vmul.f32 1.442695, %v823_v30 }
 0x30a   : > { %v7676_v63 = vpop.f32.mrf.mxu1 }
 0x30b   : > { %866 = vadd.xlane.f32.xlu2 %v5919_v42  ;;  %868 = vadd.xlane.f32.xlu0 %v5921_v32  ;;  %v797_v42 = vpop.xlane.xlu0 %796  ;;  %v5925_v32 = vpop.eup %5924 }
 0x30c   : > { %1306 = vmax.xlane.f32.xlu1 %v7676_v63  ;;  %v822_v8 = vsub.f32 %v7417_v35, %v797_v42  ;;  %v801_v42 = vpop.xlane.xlu2 %800 }
 0x30d   : > { %5640 = vmatmul.msk.f32.gmra.mxu1 %vm622_vm0, %v9784_v2  ;;  %v5927_v28 = vpop.eup %5926  ;;  %v824_v43 = vsub.f32 %v7457_v46, %v801_v42 }
 0x30e   : > { %v7697_v2 = vpop.f32.mrf.mxu3  ;;  %v844_v55 = vmul.f32 1.442695, %v822_v8 }
 0x30f   : > { %925 = vmatmul.bf16.gmra.mxu0 %v897_v3  ;;  %v898_v3 = vpack.c.bf16 %v5925_v32, %v5927_v28  ;;  %v848_v8 = vmul.f32 1.442695, %v824_v43 }
 0x310   : > { %5928 = vpow2.f32 %v844_v55 }
 0x311   : > { %5930 = vpow2.f32 %v846_v0  ;;  %v805_v0 = vpop.xlane.xlu1 %804 }
 0x312   : > { %v7683_v14 = vpop.f32.mrf.mxu1  ;;  %5932 = vpow2.f32 %v848_v8 }
 0x313   : > { %1308 = vmax.xlane.f32.xlu0 %v7683_v14  ;;  %1913 = vmax.xlane.f32.xlu2 %v7652_v10 }
 0x314   : > { %870 = vadd.xlane.f32.xlu1 %v5923_v58  ;;  %v9786_v58 = vld [vmem:[#allocation84_spill] sm:$0xff]  ;;  %v807_v46 = vpop.xlane.xlu2 %806 }
 0x315   : > { %5641 = vmatmul.msk.f32.gmra.mxu1 %vm622_vm0, %v9785_v51 }
 0x316   : > { %v7707_v35 = vpop.f32.mrf.mxu3  ;;  %v5929_v16 = vpop.eup %5928 }
 0x31a   : > { %v7691_v13 = vpop.f32.mrf.mxu1 }
 0x31b   : > { %1310 = vmax.xlane.f32.xlu2 %v7691_v13  ;;  %1915 = vmax.xlane.f32.xlu0 %v7665_v4 }
 0x31c   : > { %1917 = vmax.xlane.f32.xlu1 %v7674_v52 }
 0x31d   : > { %5642 = vmatmul.msk.f32.gmra.mxu1 %vm622_vm0, %v9786_v58  ;;  %v803_v58 = vpop.xlane.xlu0 %802 }
 0x31e   : > { %v7717_v30 = vpop.f32.mrf.mxu3 }
 0x31f   : > { %930 = vmatmul.bf16.gmra.mxu0 %v898_v3 }
 0x322   : > { %v7702_v51 = vpop.f32.mrf.mxu1 }
 0x323   : > { %872 = vadd.xlane.f32.xlu2 %v5927_v28  ;;  %874 = vadd.xlane.f32.xlu0 %v5925_v32  ;;  %v5931_v32 = vpop.eup %5930  ;;  %v825_v28 = vsub.f32 %v7471_v11, %v803_v58  ;;  %v827_v58 = vsub.f32 %v7493_v60, %v807_v46 }
 0x324   : > { %1312 = vmax.xlane.f32.xlu1 %v7702_v51 }
 0x325   : > { %5643 = vmatmul.msk.f32.gmra.mxu1 %vm622_vm0, %v7338_v49  ;;  %v899_v49 = vpack.c.bf16 %v5931_v32, %v5929_v16  ;;  %v850_v3 = vmul.f32 1.442695, %v825_v28  ;;  %v854_v28 = vmul.f32 1.442695, %v827_v58 }
 0x326   : > { %v7728_v42 = vpop.f32.mrf.mxu3 }
 0x327   : > { %5934 = vpow2.f32 %v850_v3  ;;  %v811_v3 = vpop.xlane.xlu1 %810 }
 0x328   : > { %5936 = vpow2.f32 %v854_v28 }
 0x32a   : > { %v7709_v39 = vpop.f32.mrf.mxu1 }
 0x32b   : > { %1314 = vmax.xlane.f32.xlu0 %v7709_v39  ;;  %1919 = vmax.xlane.f32.xlu2 %v7685_v19 }
 0x32c   : > { %876 = vadd.xlane.f32.xlu1 %v5929_v16 }
 0x32d   : > { %5644 = vmatmul.msk.f32.gmra.mxu1 %vm622_vm0, %v7371_v6  ;;  %v5933_v6 = vpop.eup %5932 }
 0x32e   : > { %v5935_v11 = vpop.eup %5934  ;;  %v7739_v60 = vpop.f32.mrf.mxu3 }
 0x32f   : > { %935 = vmatmul.bf16.gmra.mxu0 %v899_v49  ;;  %v900_v43 = vpack.c.bf16 %v5935_v11, %v5933_v6 }
 0x332   : > { %v7719_v55 = vpop.f32.mrf.mxu1 }
 0x333   : > { %1316 = vmax.xlane.f32.xlu2 %v7719_v55  ;;  %1921 = vmax.xlane.f32.xlu0 %v7697_v2 }
 0x334   : > { %1923 = vmax.xlane.f32.xlu1 %v7707_v35 }
 0x335   : > { %5645 = vmatmul.msk.f32.gmra.mxu1 %vm622_vm0, %v7398_v24  ;;  %v826_v24 = vsub.f32 %v7484_v7, %v805_v0 }
 0x336   : > { %v7752_v0 = vpop.f32.mrf.mxu3 }
 0x337   : > { %v852_v49 = vmul.f32 1.442695, %v826_v24 }
 0x339   : > { %5938 = vpow2.f32 %v852_v49 }
 0x33a   : > { %v7726_v16 = vpop.f32.mrf.mxu1 }
 0x33b   : > { %878 = vadd.xlane.f32.xlu2 %v5931_v32  ;;  %880 = vadd.xlane.f32.xlu0 %v5933_v6  ;;  %v5937_v32 = vpop.eup %5936 }
 0x33c   : > { %1318 = vmax.xlane.f32.xlu1 %v7726_v16 }
 0x33d   : > { %5646 = vmatmul.msk.f32.gmra.mxu1 %vm622_vm0, %v7359_v5  ;;  %v809_v5 = vpop.xlane.xlu0 %808 }
 0x33e   : > { %v828_v46 = vsub.f32 %v7506_v53, %v809_v5  ;;  %v7759_v53 = vpop.f32.mrf.mxu3 }
 0x33f   : > { %940 = vmatmul.bf16.gmra.mxu0 %v900_v43  ;;  %v5939_v6 = vpop.eup %5938 }
 0x340   : > { %v856_v58 = vmul.f32 1.442695, %v828_v46 }
 0x342   : > { %v7735_v8 = vpop.f32.mrf.mxu1  ;;  %5940 = vpow2.f32 %v856_v58 }
 0x343   : > { %1320 = vmax.xlane.f32.xlu0 %v7735_v8  ;;  %1925 = vmax.xlane.f32.xlu2 %v7717_v30 }
 0x344   : > { %882 = vadd.xlane.f32.xlu1 %v5935_v11  ;;  %v901_v11 = vpack.c.bf16 %v5937_v32, %v5939_v6 }
 0x345   : > { %5647 = vmatmul.msk.f32.gmra.mxu1 %vm622_vm0, %v7400_v27  ;;  %v829_v27 = vsub.f32 %v7518_v40, %v811_v3 }
 0x347   : > { %v858_v43 = vmul.f32 1.442695, %v829_v27 }
 0x349   : > { %5942 = vpow2.f32 %v858_v43 }
 0x34a   : > { %v7743_v7 = vpop.f32.mrf.mxu1 }
 0x34b   : > { %1322 = vmax.xlane.f32.xlu2 %v7743_v7  ;;  %1927 = vmax.xlane.f32.xlu0 %v7728_v42 }
 0x34c   : > { %1929 = vmax.xlane.f32.xlu1 %v7739_v60 }
 0x34d   : > { %5648 = vmatmul.msk.f32.gmra.mxu1 %vm622_vm0, %v7419_v57  ;;  %v5941_v57 = vpop.eup %5940 }
 0x34f   : > { %945 = vmatmul.bf16.gmra.mxu0 %v901_v11  ;;  %v5943_v28 = vpop.eup %5942  ;;  %v7771_v11 = vpop.f32.mrf.mxu3 }
 0x350   : > { %v902_v49 = vpack.c.bf16 %v5943_v28, %v5941_v57 }
 0x352   : > { %v7754_v24 = vpop.f32.mrf.mxu1 }
 0x353   : > { %884 = vadd.xlane.f32.xlu2 %v5939_v6  ;;  %886 = vadd.xlane.f32.xlu0 %v5937_v32  ;;  %v815_v32 = vpop.xlane.xlu0 %814 }
 0x354   : > { %1324 = vmax.xlane.f32.xlu1 %v7754_v24  ;;  %v831_v6 = vsub.f32 %v7558_v25, %v815_v32 }
 0x355   : > { %5649 = vmatmul.msk.f32.gmra.mxu1 %vm622_vm0, %v7379_v18 }
 0x35a   : > { %v7761_v40 = vpop.f32.mrf.mxu1 }
 0x35b   : > { %1326 = vmax.xlane.f32.xlu0 %v7761_v40  ;;  %1931 = vmax.xlane.f32.xlu2 %v7752_v0 }
 0x35c   : > { %888 = vadd.xlane.f32.xlu1 %v5941_v57 }
 0x35d   : > { %5650 = vmatmul.msk.f32.gmra.mxu1 %vm622_vm0, %v7425_v37  ;;  %v862_v37 = vmul.f32 1.442695, %v831_v6 }
 0x35e   : > { %v1299_v5 = vpop.xlane.xlu2 %1298 }
 0x35f   : > { %v1330_v18 = vsub.f32 %v7637_v50, %v1299_v5  ;;  %950 = vmatmul.bf16.gmra.mxu0 %v902_v49 }
 0x361   : > { %v1346_v3 = vmul.f32 1.442695, %v1330_v18 }
 0x362   : > { %v7769_v46 = vpop.f32.mrf.mxu1 }
 0x363   : > { %5944 = vpow2.f32 %v1346_v3  ;;  %1328 = vmax.xlane.f32.xlu2 %v7769_v46  ;;  %1933 = vmax.xlane.f32.xlu0 %v7759_v53 }
 0x364   : > { %1935 = vmax.xlane.f32.xlu1 %v7771_v11  ;;  %5946 = vpow2.f32 %v862_v37 }
 0x365   : > { %5651 = vmatmul.msk.f32.gmra.mxu1 %vm622_vm0, %v7439_v36 }
 0x366   : > { %v813_v50 = vpop.xlane.xlu2 %812  ;;  %v1301_v27 = vpop.xlane.xlu1 %1300 }
 0x367   : > { %v830_v58 = vsub.f32 %v7544_v54, %v813_v50  ;;  %v1331_v25 = vsub.f32 %v7648_v29, %v1301_v27  ;;  %v7783_v50 = vpop.f32.mrf.mxu3 }
 0x369   : > { %v5945_v43 = vpop.eup %5944  ;;  %v860_v57 = vmul.f32 1.442695, %v830_v58  ;;  %v1348_v49 = vmul.f32 1.442695, %v1331_v25 }
 0x36a   : > { %v7780_v5 = vpop.f32.mrf.mxu1  ;;  %v5947_v3 = vpop.eup %5946 }
 0x36b   : > { %5948 = vpow2.f32 %v860_v57  ;;  %890 = vadd.xlane.f32.xlu2 %v5943_v28 }
 0x36c   : > { %5950 = vpow2.f32 %v1348_v49  ;;  %1378 = vadd.xlane.f32.xlu1 %v5945_v43 }
 0x36e   : > { %v865_v32 = vpop.xlane.xlu1 %864  ;;  %v1303_v18 = vpop.xlane.xlu0 %1302 }
 0x36f   : > { %v1332_v36 = vsub.f32 %v7658_v15, %v1303_v18 }
 0x371   : > { %v5949_v6 = vpop.eup %5948  ;;  %v1350_v56 = vmul.f32 1.442695, %v1332_v36 }
 0x372   : > { %v5951_v54 = vpop.eup %5950  ;;  %v7785_v29 = vpop.f32.mrf.mxu1  ;;  %892 = vadd.xlane.f32.xlu0 %v5949_v6  ;;  %v903_v37 = vpack.c.bf16 %v5947_v3, %v5949_v6 }
 0x373   : > { %5952 = vpow2.f32 %v1350_v56  ;;  %1937 = vmax.xlane.f32.xlu2 %v7783_v50  ;;  %v1410_v28 = vpack.c.bf16 %v5951_v54, %v5945_v43 }
 0x374   : > { %2520 = vmax.xlane.f32.xlu1 %v7780_v5  ;;  %955 = vmatmul.bf16.gmra.mxu0 %v903_v37  ;;  %5954 = vrcp.f32 %v865_v32 }
 0x375   : > { %1466 = vmatmul.bf16.vlgmr.msrb.gmra.mxu2 %v1410_v28 }
 0x376   : > { %v1305_v15 = vpop.xlane.xlu2 %1304  ;;  %v1910_v27 = vpop.xlane.xlu0 %1909 }
 0x377   : > { %v1333_v58 = vsub.f32 %v7667_v1, %v1305_v15  ;;  %v1941_v25 = vsub.f32 %v7629_v20, %v1910_v27  ;;  %v1912_v57 = vpop.xlane.xlu1 %1911 }
 0x378   : > { %v1942_v49 = vsub.f32 %v7639_v41, %v1912_v57 }
 0x379   : > { %v5953_v18 = vpop.eup %5952  ;;  %v1352_v36 = vmul.f32 1.442695, %v1333_v58  ;;  %v1957_v56 = vmul.f32 1.442695, %v1941_v25 }
 0x37a   : > { %v1959_v6 = vmul.f32 1.442695, %v1942_v49  ;;  %v7792_v9 = vpop.f32.mrf.mxu1  ;;  %1380 = vadd.xlane.f32.xlu0 %v5951_v54  ;;  %v5955_v43 = vpop.eup %5954 }
 0x37b   : > { %5956 = vpow2.f32 %v1352_v36  ;;  %1382 = vadd.xlane.f32.xlu2 %v5953_v18 }
 0x37c   : > { %5958 = vpow2.f32 %v1957_v56  ;;  %v921_v32 = vpop.f32.mrf.mxu0  ;;  %894 = vadd.xlane.f32.xlu1 %v5947_v3 }
 0x37d   : > { %5960 = vpow2.f32 %v1959_v6  ;;  %v977_v1 = vmul.f32 %v5955_v43, %v921_v32 }
 0x37e   : > { %v867_v37 = vpop.xlane.xlu2 %866  ;;  %v869_v20 = vpop.xlane.xlu0 %868 }
 0x37f   : > { %993 = vst.msk [vmem:[#allocation3] sm:$0xff] %vm622_vm0, %v977_v1  ;;  %5962 = vrcp.f32 %v867_v37  ;;  %v1307_v41 = vpop.xlane.xlu1 %1306 }
 0x380   : > { %v1334_v27 = vsub.f32 %v7676_v63, %v1307_v41  ;;  %5964 = vrcp.f32 %v869_v20 }
 0x381   : > { %v5957_v28 = vpop.eup %5956 }
 0x382   : > { %v5959_v15 = vpop.eup %5958  ;;  %v7796_v58 = vpop.f32.mrf.mxu1  ;;  %2522 = vmax.xlane.f32.xlu0 %v7785_v29  ;;  %v1411_v54 = vpack.c.bf16 %v5957_v28, %v5953_v18  ;;  %v1354_v36 = vmul.f32 1.442695, %v1334_v27 }
 0x383   : > { %v5961_v25 = vpop.eup %5960  ;;  %2524 = vmax.xlane.f32.xlu2 %v7792_v9  ;;  %v7802_v18 = vpop.f32.mrf.mxu3 }
 0x384   : > { %v2021_v3 = vpack.c.bf16 %v5961_v25, %v5959_v15  ;;  %v923_v57 = vpop.f32.mrf.mxu0  ;;  %1989 = vadd.xlane.f32.xlu1 %v5959_v15  ;;  %5966 = vpow2.f32 %v1354_v36 }
 0x385   : > { %v5963_v49 = vpop.eup %5962  ;;  %1471 = vmatmul.bf16.gmra.mxu2 %v1411_v54 }
 0x386   : > { %v978_v56 = vmul.f32 %v5963_v49, %v923_v57  ;;  %2077 = vmatmul.bf16.vlgmr.msra.gmra.mxu0 %v2021_v3  ;;  %v1309_v6 = vpop.xlane.xlu0 %1308  ;;  %v1914_v43 = vpop.xlane.xlu2 %1913 }
 0x387   : > { %v1335_v63 = vsub.f32 %v7683_v14, %v1309_v6  ;;  %v871_v32 = vpop.xlane.xlu1 %870  ;;  %v1943_v20 = vsub.f32 %v7652_v10, %v1914_v43  ;;  %v5965_v41 = vpop.eup %5964 }
 0x388   : > { %994 = vst.msk [vmem:[#allocation3 + $0x8] sm:$0xff] %vm622_vm0, %v978_v56 }
 0x389   : > { %v1356_v1 = vmul.f32 1.442695, %v1335_v63  ;;  %v1961_v3 = vmul.f32 1.442695, %v1943_v20 }
 0x38a   : > { %v7804_v37 = vpop.f32.mrf.mxu1  ;;  %1939 = vmax.xlane.f32.xlu0 %v7802_v18  ;;  %v5967_v36 = vpop.eup %5966 }
 0x38b   : > { %5968 = vpow2.f32 %v1356_v1  ;;  %1991 = vadd.xlane.f32.xlu2 %v5961_v25 }
 0x38c   : > { %v926_v15 = vpop.f32.mrf.mxu0  ;;  %1384 = vadd.xlane.f32.xlu1 %v5957_v28  ;;  %5970 = vrcp.f32 %v871_v32 }
 0x38d   : > { %v979_v27 = vmul.f32 %v5965_v41, %v926_v15  ;;  %5972 = vpow2.f32 %v1961_v3 }
 0x38e   : > { %v1311_v14 = vpop.xlane.xlu2 %1310  ;;  %v1916_v54 = vpop.xlane.xlu0 %1915 }
 0x38f   : > { %995 = vst.msk [vmem:[#allocation3 + $0x10] sm:$0xff] %vm622_vm0, %v979_v27  ;;  %v1944_v57 = vsub.f32 %v7665_v4, %v1916_v54  ;;  %v1918_v49 = vpop.xlane.xlu1 %1917  ;;  %v1336_v63 = vsub.f32 %v7691_v13, %v1311_v14 }
 0x390   : > { %v1945_v28 = vsub.f32 %v7674_v52, %v1918_v49 }
 0x391   : > { %v5969_v56 = vpop.eup %5968  ;;  %v1963_v6 = vmul.f32 1.442695, %v1944_v57  ;;  %v1358_v1 = vmul.f32 1.442695, %v1336_v63 }
 0x392   : > { %v7811_v10 = vpop.f32.mrf.mxu1  ;;  %1386 = vadd.xlane.f32.xlu0 %v5967_v36  ;;  %v1412_v25 = vpack.c.bf16 %v5969_v56, %v5967_v36  ;;  %v5971_v43 = vpop.eup %5970  ;;  %v1965_v15 = vmul.f32 1.442695, %v1945_v28 }
 0x393   : > { %1388 = vadd.xlane.f32.xlu2 %v5969_v56  ;;  %5974 = vpow2.f32 %v1963_v6  ;;  %v5973_v14 = vpop.eup %5972 }
 0x394   : > { %v928_v32 = vpop.f32.mrf.mxu0  ;;  %2526 = vmax.xlane.f32.xlu1 %v7796_v58 }
 0x395   : > { %v980_v4 = vmul.f32 %v5971_v43, %v928_v32  ;;  %1476 = vmatmul.bf16.gmra.mxu2 %v1412_v25 }
 0x396   : > { %v873_v20 = vpop.xlane.xlu2 %872  ;;  %v875_v41 = vpop.xlane.xlu0 %874 }
 0x397   : > { %996 = vst.msk [vmem:[#allocation3 + $0x18] sm:$0xff] %vm622_vm0, %v980_v4  ;;  %5976 = vrcp.f32 %v873_v20  ;;  %v1313_v13 = vpop.xlane.xlu1 %1312 }
 0x398   : > { %v1337_v27 = vsub.f32 %v7702_v51, %v1313_v13  ;;  %5978 = vpow2.f32 %v1358_v1 }
 0x399   : > { %v5975_v52 = vpop.eup %5974  ;;  %5980 = vpow2.f32 %v1965_v15 }
 0x39a   : > { %v1360_v54 = vmul.f32 1.442695, %v1337_v27  ;;  %v7817_v3 = vpop.f32.mrf.mxu1  ;;  %2528 = vmax.xlane.f32.xlu0 %v7804_v37  ;;  %v2022_v57 = vpack.c.bf16 %v5975_v52, %v5973_v14 }
 0x39b   : > { %2530 = vmax.xlane.f32.xlu2 %v7811_v10 }
 0x39c   : > { %5982 = vpow2.f32 %v1360_v54  ;;  %v931_v49 = vpop.f32.mrf.mxu0  ;;  %1995 = vadd.xlane.f32.xlu1 %v5975_v52  ;;  %2082 = vmatmul.bf16.gmra.mxu0 %v2022_v57 }
 0x39d   : > { %v5977_v36 = vpop.eup %5976  ;;  %5984 = vrcp.f32 %v875_v41 }
 0x39e   : > { %v981_v56 = vmul.f32 %v5977_v36, %v931_v49  ;;  %v1315_v51 = vpop.xlane.xlu0 %1314  ;;  %v1920_v6 = vpop.xlane.xlu2 %1919 }
 0x39f   : > { %v1338_v63 = vsub.f32 %v7709_v39, %v1315_v51  ;;  %v877_v25 = vpop.xlane.xlu1 %876  ;;  %v1946_v28 = vsub.f32 %v7685_v19, %v1920_v6  ;;  %v5979_v43 = vpop.eup %5978 }
 0x3a0   : > { %997 = vst.msk [vmem:[#allocation3 + $0x20] sm:$0xff] %vm622_vm0, %v981_v56  ;;  %v5981_v32 = vpop.eup %5980 }
 0x3a1   : > { %v1362_v4 = vmul.f32 1.442695, %v1338_v63  ;;  %v1967_v1 = vmul.f32 1.442695, %v1946_v28 }
 0x3a2   : > { %v5983_v20 = vpop.eup %5982  ;;  %v7824_v15 = vpop.f32.mrf.mxu1  ;;  %1993 = vadd.xlane.f32.xlu0 %v5973_v14 }
 0x3a3   : > { %5986 = vpow2.f32 %v1362_v4  ;;  %1997 = vadd.xlane.f32.xlu2 %v5981_v32  ;;  %v1413_v41 = vpack.c.bf16 %v5983_v20, %v5979_v43  ;;  %v5985_v13 = vpop.eup %5984 }
 0x3a4   : > { %5988 = vpow2.f32 %v1967_v1  ;;  %v933_v27 = vpop.f32.mrf.mxu0  ;;  %1390 = vadd.xlane.f32.xlu1 %v5979_v43 }
 0x3a5   : > { %v982_v39 = vmul.f32 %v5985_v13, %v933_v27  ;;  %1481 = vmatmul.bf16.gmra.mxu2 %v1413_v41  ;;  %5990 = vrcp.f32 %v877_v25 }
 0x3a6   : > { %v1317_v19 = vpop.xlane.xlu2 %1316  ;;  %v1922_v52 = vpop.xlane.xlu0 %1921 }
 0x3a7   : > { %998 = vst.msk [vmem:[#allocation3 + $0x28] sm:$0xff] %vm622_vm0, %v982_v39  ;;  %v1339_v54 = vsub.f32 %v7719_v55, %v1317_v19  ;;  %v1947_v57 = vsub.f32 %v7697_v2, %v1922_v52  ;;  %v1924_v49 = vpop.xlane.xlu1 %1923 }
 0x3a8   : > { %v1948_v6 = vsub.f32 %v7707_v35, %v1924_v49 }
 0x3a9   : > { %v5987_v14 = vpop.eup %5986  ;;  %v1364_v36 = vmul.f32 1.442695, %v1339_v54  ;;  %v1969_v56 = vmul.f32 1.442695, %v1947_v57 }
 0x3aa   : > { %v5989_v51 = vpop.eup %5988  ;;  %v7830_v63 = vpop.f32.mrf.mxu1  ;;  %1392 = vadd.xlane.f32.xlu0 %v5983_v20  ;;  %v1971_v2 = vmul.f32 1.442695, %v1948_v6 }
 0x3ab   : > { %5992 = vpow2.f32 %v1364_v36  ;;  %1394 = vadd.xlane.f32.xlu2 %v5987_v14  ;;  %v2023_v25 = vpack.c.bf16 %v5989_v51, %v5981_v32  ;;  %v5991_v28 = vpop.eup %5990 }
 0x3ac   : > { %5994 = vpow2.f32 %v1969_v56  ;;  %v936_v43 = vpop.f32.mrf.mxu0  ;;  %2532 = vmax.xlane.f32.xlu1 %v7817_v3 }
 0x3ad   : > { %v983_v55 = vmul.f32 %v5991_v28, %v936_v43  ;;  %2087 = vmatmul.bf16.gmra.mxu0 %v2023_v25 }
 0x3ae   : > { %v879_v4 = vpop.xlane.xlu2 %878  ;;  %v881_v1 = vpop.xlane.xlu0 %880 }
 0x3af   : > { %999 = vst.msk [vmem:[#allocation3 + $0x30] sm:$0xff] %vm622_vm0, %v983_v55  ;;  %5996 = vrcp.f32 %v879_v4  ;;  %v1319_v35 = vpop.xlane.xlu1 %1318 }
 0x3b0   : > { %5998 = vpow2.f32 %v1971_v2  ;;  %v1340_v20 = vsub.f32 %v7726_v16, %v1319_v35 }
 0x3b1   : > { %v5993_v41 = vpop.eup %5992  ;;  %6000 = vrcp.f32 %v881_v1 }
 0x3b2   : > { %v5995_v13 = vpop.eup %5994  ;;  %v7835_v32 = vpop.f32.mrf.mxu1  ;;  %2534 = vmax.xlane.f32.xlu0 %v7824_v15  ;;  %v1414_v27 = vpack.c.bf16 %v5993_v41, %v5987_v14  ;;  %v1366_v52 = vmul.f32 1.442695, %v1340_v20 }
 0x3b3   : > { %2536 = vmax.xlane.f32.xlu2 %v7830_v63 }
 0x3b4   : > { %v938_v39 = vpop.f32.mrf.mxu0  ;;  %2001 = vadd.xlane.f32.xlu1 %v5995_v13  ;;  %6002 = vpow2.f32 %v1366_v52 }
 0x3b5   : > { %v5997_v19 = vpop.eup %5996  ;;  %1486 = vmatmul.bf16.gmra.mxu2 %v1414_v27 }
 0x3b6   : > { %v984_v54 = vmul.f32 %v5997_v19, %v938_v39  ;;  %v1321_v57 = vpop.xlane.xlu0 %1320  ;;  %v1926_v49 = vpop.xlane.xlu2 %1925 }
 0x3b7   : > { %v1341_v36 = vsub.f32 %v7735_v8, %v1321_v57  ;;  %v883_v56 = vpop.xlane.xlu1 %882  ;;  %v5999_v16 = vpop.eup %5998  ;;  %v1949_v25 = vsub.f32 %v7717_v30, %v1926_v49 }
 0x3b8   : > { %1000 = vst.msk [vmem:[#allocation3 + $0x38] sm:$0xff] %vm622_vm0, %v984_v54  ;;  %v2024_v28 = vpack.c.bf16 %v5999_v16, %v5995_v13  ;;  %v6001_v43 = vpop.eup %6000 }
 0x3b9   : > { %v1368_v6 = vmul.f32 1.442695, %v1341_v36  ;;  %v1973_v1 = vmul.f32 1.442695, %v1949_v25 }
 0x3ba   : > { %v7841_v14 = vpop.f32.mrf.mxu1  ;;  %1999 = vadd.xlane.f32.xlu0 %v5989_v51  ;;  %v6003_v51 = vpop.eup %6002 }
 0x3bb   : > { %6004 = vpow2.f32 %v1368_v6  ;;  %2003 = vadd.xlane.f32.xlu2 %v5999_v16 }
 0x3bc   : > { %v941_v55 = vpop.f32.mrf.mxu0  ;;  %1396 = vadd.xlane.f32.xlu1 %v5993_v41  ;;  %6006 = vrcp.f32 %v883_v56 }
 0x3bd   : > { %v985_v2 = vmul.f32 %v6001_v43, %v941_v55  ;;  %2092 = vmatmul.bf16.gmra.mxu0 %v2024_v28  ;;  %6008 = vpow2.f32 %v1973_v1 }
 0x3be   : > { %v1323_v8 = vpop.xlane.xlu2 %1322  ;;  %v1928_v4 = vpop.xlane.xlu0 %1927 }
 0x3bf   : > { %1001 = vst.msk [vmem:[#allocation3 + $0x40] sm:$0xff] %vm622_vm0, %v985_v2  ;;  %v1950_v35 = vsub.f32 %v7728_v42, %v1928_v4  ;;  %v1930_v20 = vpop.xlane.xlu1 %1929  ;;  %v1342_v30 = vsub.f32 %v7743_v7, %v1323_v8 }
 0x3c0   : > { %v1951_v41 = vsub.f32 %v7739_v60, %v1930_v20 }
 0x3c1   : > { %v6005_v27 = vpop.eup %6004  ;;  %v1975_v39 = vmul.f32 1.442695, %v1950_v35  ;;  %v1370_v57 = vmul.f32 1.442695, %v1342_v30 }
 0x3c2   : > { %1398 = vadd.xlane.f32.xlu0 %v6003_v51  ;;  %v1415_v13 = vpack.c.bf16 %v6005_v27, %v6003_v51  ;;  %v7848_v19 = vpop.f32.mrf.mxu1  ;;  %v6007_v52 = vpop.eup %6006  ;;  %v1977_v56 = vmul.f32 1.442695, %v1951_v41 }
 0x3c3   : > { %1400 = vadd.xlane.f32.xlu2 %v6005_v27  ;;  %6010 = vpow2.f32 %v1975_v39  ;;  %v6009_v16 = vpop.eup %6008 }
 0x3c4   : > { %v943_v54 = vpop.f32.mrf.mxu0  ;;  %2538 = vmax.xlane.f32.xlu1 %v7835_v32 }
 0x3c5   : > { %v986_v42 = vmul.f32 %v6007_v52, %v943_v54  ;;  %1491 = vmatmul.bf16.gmra.mxu2 %v1415_v13 }
 0x3c6   : > { %v885_v49 = vpop.xlane.xlu2 %884  ;;  %v887_v36 = vpop.xlane.xlu0 %886 }
 0x3c7   : > { %1002 = vst.msk [vmem:[#allocation3 + $0x48] sm:$0xff] %vm622_vm0, %v986_v42  ;;  %6012 = vrcp.f32 %v885_v49  ;;  %v1325_v7 = vpop.xlane.xlu1 %1324 }
 0x3c8   : > { %v1343_v60 = vsub.f32 %v7754_v24, %v1325_v7  ;;  %6014 = vpow2.f32 %v1370_v57 }
 0x3c9   : > { %v6011_v6 = vpop.eup %6010  ;;  %6016 = vpow2.f32 %v1977_v56 }
 0x3ca   : > { %v1372_v25 = vmul.f32 1.442695, %v1343_v60  ;;  %2540 = vmax.xlane.f32.xlu0 %v7841_v14  ;;  %v2025_v28 = vpack.c.bf16 %v6011_v6, %v6009_v16  ;;  %v7855_v2 = vpop.f32.mrf.mxu1 }
 0x3cb   : > { %2542 = vmax.xlane.f32.xlu2 %v7848_v19 }
 0x3cc   : > { %6018 = vpow2.f32 %v1372_v25  ;;  %v946_v43 = vpop.f32.mrf.mxu0  ;;  %2007 = vadd.xlane.f32.xlu1 %v6011_v6 }
 0x3cd   : > { %v6013_v55 = vpop.eup %6012  ;;  %2097 = vmatmul.bf16.gmra.mxu0 %v2025_v28  ;;  %6020 = vrcp.f32 %v887_v36 }
 0x3ce   : > { %v987_v8 = vmul.f32 %v6013_v55, %v946_v43  ;;  %v1327_v24 = vpop.xlane.xlu0 %1326  ;;  %v1932_v4 = vpop.xlane.xlu2 %1931 }
 0x3cf   : > { %v1344_v1 = vsub.f32 %v7761_v40, %v1327_v24  ;;  %v889_v35 = vpop.xlane.xlu1 %888  ;;  %v1952_v20 = vsub.f32 %v7752_v0, %v1932_v4  ;;  %v6015_v51 = vpop.eup %6014 }
 0x3d0   : > { %1003 = vst.msk [vmem:[#allocation3 + $0x50] sm:$0xff] %vm622_vm0, %v987_v8  ;;  %v6017_v27 = vpop.eup %6016 }
 0x3d1   : > { %v1374_v39 = vmul.f32 1.442695, %v1344_v1  ;;  %v1979_v30 = vmul.f32 1.442695, %v1952_v20 }
 0x3d2   : > { %v6019_v13 = vpop.eup %6018  ;;  %2005 = vadd.xlane.f32.xlu0 %v6009_v16  ;;  %v7863_v56 = vpop.f32.mrf.mxu1 }
 0x3d3   : > { %6022 = vpow2.f32 %v1374_v39  ;;  %2009 = vadd.xlane.f32.xlu2 %v6017_v27  ;;  %v1416_v41 = vpack.c.bf16 %v6019_v13, %v6015_v51  ;;  %v6021_v52 = vpop.eup %6020 }
 0x3d4   : > { %6024 = vpow2.f32 %v1979_v30  ;;  %v948_v54 = vpop.f32.mrf.mxu0  ;;  %1402 = vadd.xlane.f32.xlu1 %v6015_v51 }
 0x3d5   : > { %v988_v42 = vmul.f32 %v6021_v52, %v948_v54  ;;  %1496 = vmatmul.bf16.gmra.mxu2 %v1416_v41  ;;  %6026 = vrcp.f32 %v889_v35 }
 0x3d6   : > { %v1329_v40 = vpop.xlane.xlu2 %1328  ;;  %v1934_v0 = vpop.xlane.xlu0 %1933 }
 0x3d7   : > { %1004 = vst.msk [vmem:[#allocation3 + $0x58] sm:$0xff] %vm622_vm0, %v988_v42  ;;  %v1345_v57 = vsub.f32 %v7769_v46, %v1329_v40  ;;  %v1953_v49 = vsub.f32 %v7759_v53, %v1934_v0  ;;  %v1936_v36 = vpop.xlane.xlu1 %1935 }
 0x3d8   : > { %v1954_v25 = vsub.f32 %v7771_v11, %v1936_v36 }
 0x3d9   : > { %v6023_v7 = vpop.eup %6022  ;;  %v1376_v60 = vmul.f32 1.442695, %v1345_v57  ;;  %v1981_v16 = vmul.f32 1.442695, %v1953_v49 }
 0x3da   : > { %v6025_v6 = vpop.eup %6024  ;;  %1404 = vadd.xlane.f32.xlu0 %v6019_v13  ;;  %v1983_v53 = vmul.f32 1.442695, %v1954_v25  ;;  %v7870_v1 = vpop.f32.mrf.mxu1 }
 0x3db   : > { %6028 = vpow2.f32 %v1376_v60  ;;  %1406 = vadd.xlane.f32.xlu2 %v6023_v7  ;;  %v2026_v28 = vpack.c.bf16 %v6025_v6, %v6017_v27  ;;  %v6027_v43 = vpop.eup %6026 }
 0x3dc   : > { %6030 = vpow2.f32 %v1981_v16  ;;  %v951_v55 = vpop.f32.mrf.mxu0  ;;  %2544 = vmax.xlane.f32.xlu1 %v7855_v2 }
 0x3dd   : > { %v989_v46 = vmul.f32 %v6027_v43, %v951_v55  ;;  %2102 = vmatmul.bf16.gmra.mxu0 %v2026_v28 }
 0x3de   : > { %v891_v8 = vpop.xlane.xlu2 %890 }
 0x3df   : > { %1005 = vst.msk [vmem:[#allocation3 + $0x60] sm:$0xff] %vm622_vm0, %v989_v46  ;;  %6032 = vrcp.f32 %v891_v8  ;;  %v7868_v24 = vpop.xlane.xlu1 %1378 }
 0x3e0   : > { %6034 = vpow2.f32 %v1983_v53 }
 0x3e1   : > { %v6029_v4 = vpop.eup %6028 }
 0x3e2   : > { %v6031_v11 = vpop.eup %6030  ;;  %2546 = vmax.xlane.f32.xlu0 %v7863_v56  ;;  %v1417_v35 = vpack.c.bf16 %v6029_v4, %v6023_v7  ;;  %v7880_v7 = vpop.f32.mrf.mxu1 }
 0x3e3   : > { %2548 = vmax.xlane.f32.xlu2 %v7870_v1 }
 0x3e4   : > { %2013 = vadd.xlane.f32.xlu1 %v6031_v11  ;;  %v953_v51 = vpop.f32.mrf.mxu0 }
 0x3e5   : > { %v6033_v20 = vpop.eup %6032  ;;  %1501 = vmatmul.bf16.gmra.mxu2 %v1417_v35  ;;  %v893_v27 = vpop.xlane.xlu0 %892 }
 0x3e6   : > { %v990_v39 = vmul.f32 %v6033_v20, %v953_v51  ;;  %v1938_v30 = vpop.xlane.xlu2 %1937  ;;  %v6035_v41 = vpop.eup %6034  ;;  %6036 = vrcp.f32 %v893_v27 }
 0x3e7   : > { %v2521_v13 = vpop.xlane.xlu1 %2520  ;;  %v2027_v52 = vpack.c.bf16 %v6035_v41, %v6031_v11 }
 0x3e8   : > { %1006 = vst.msk [vmem:[#allocation3 + $0x68] sm:$0xff] %vm622_vm0, %v990_v39  ;;  %v2552_v57 = vsub.f32 %v7780_v5, %v2521_v13  ;;  %v1955_v5 = vsub.f32 %v7783_v50, %v1938_v30  ;;  %v9788_v13 = vld [vmem:[#allocation23_spill] sm:$0xff] }
 0x3ea   : > { %2011 = vadd.xlane.f32.xlu0 %v6025_v6  ;;  %v2568_v60 = vmul.f32 1.442695, %v2552_v57  ;;  %v1985_v8 = vmul.f32 1.442695, %v1955_v5 }
 0x3eb   : > { %2015 = vadd.xlane.f32.xlu2 %v6035_v41 }
 0x3ec   : > { %1408 = vadd.xlane.f32.xlu1 %v6029_v4  ;;  %v6037_v0 = vpop.eup %6036 }
 0x3ed   : > { %2107 = vmatmul.bf16.gmra.mxu0 %v2027_v52  ;;  %v7875_v54 = vpop.xlane.xlu0 %1380 }
 0x3ee   : > { %v7877_v42 = vpop.xlane.xlu2 %1382 }
 0x3ef   : > { %v895_v40 = vpop.xlane.xlu1 %894 }
 0x3f0   : > { %6038 = vrcp.f32 %v895_v40 }
 0x3f1   : > { %v956_v49 = vpop.f32.mrf.mxu0  ;;  %6040 = vpow2.f32 %v2568_v60 }
 0x3f2   : > { %v991_v36 = vmul.f32 %v6037_v0, %v956_v49 }
 0x3f4   : > { %1007 = vst.msk [vmem:[#allocation3 + $0x70] sm:$0xff] %vm622_vm0, %v991_v36  ;;  %2550 = vmax.xlane.f32.xlu1 %v7880_v7 }
 0x3f5   : > { %v2523_v16 = vpop.xlane.xlu0 %2522 }
 0x3f6   : > { %v2553_v6 = vsub.f32 %v7785_v29, %v2523_v16  ;;  %v2525_v25 = vpop.xlane.xlu2 %2524  ;;  %v6039_v55 = vpop.eup %6038  ;;  %v9787_v29 = vld [vmem:[#allocation25_spill] sm:$0xff] }
 0x3f7   : > { %v7885_v28 = vpop.xlane.xlu1 %1989  ;;  %v6041_v20 = vpop.eup %6040  ;;  %v2554_v30 = vsub.f32 %v7792_v9, %v2525_v25  ;;  %v9789_v9 = vld [vmem:[#allocation26_spill] sm:$0xff] }
 0x3f8   : > { %v2570_v43 = vmul.f32 1.442695, %v2553_v6 }
 0x3f9   : > { %v958_v46 = vpop.f32.mrf.mxu0  ;;  %v2572_v40 = vmul.f32 1.442695, %v2554_v30 }
 0x3fa   : > { %6042 = vpow2.f32 %v2570_v43  ;;  %v992_v53 = vmul.f32 %v6039_v55, %v958_v46 }
 0x3fb   : > { %6044 = vpow2.f32 %v1985_v8  ;;  %v9790_v8 = vld [vmem:[#allocation33_spill] sm:$0xff] }
 0x3fc   : > { %1008 = vst.msk [vmem:[#allocation3 + $0x78] sm:$0xff] %vm622_vm0, %v992_v53 }
 0x3fd   : > { %v1940_v4 = vpop.xlane.xlu0 %1939 }
 0x3fe   : > { %v1956_v11 = vsub.f32 %v7802_v18, %v1940_v4  ;;  %v7890_v35 = vpop.xlane.xlu2 %1991  ;;  %2982 = vrot.lane.b32.xlu0 %v9787_v29, %s6599_s11 }
 0x3ff   : > { %v7894_v51 = vpop.xlane.xlu1 %1384 }
 0x400   : > { %v6043_v27 = vpop.eup %6042  ;;  %v1987_v39 = vmul.f32 1.442695, %v1956_v11 }
 0x401   : > { %v2632_v50 = vpack.c.bf16 %v6043_v27, %v6041_v20  ;;  %v6045_v52 = vpop.eup %6044 }
 0x402   : > { %6046 = vpow2.f32 %v1987_v39 }
 0x403   : > { %2688 = vmatmul.bf16.vlgmr.msra.gmra.mxu2 %v2632_v50  ;;  %2980 = vrot.lane.b32.xlu2 %v9788_v13, %s6599_s11  ;;  %6048 = vpow2.f32 %v2572_v40 }
 0x405   : > { %v7899_v18 = vpop.xlane.xlu0 %1386 }
 0x406   : > { %v7901_v41 = vpop.xlane.xlu2 %1388 }
 0x407   : > { %v2527_v0 = vpop.xlane.xlu1 %2526 }
 0x408   : > { %v7903_v57 = vpop.eup %6046  ;;  %v2555_v49 = vsub.f32 %v7796_v58, %v2527_v0 }
 0x409   : > { %v2028_v36 = vpack.c.bf16 %v7903_v57, %v6045_v52  ;;  %v7911_v43 = vpop.eup %6048 }
 0x40a   : > { %v2574_v60 = vmul.f32 1.442695, %v2555_v49 }
 0x40b   : > { %2112 = vmatmul.bf16.gmra.mxu0 %v2028_v36 }
 0x40c   : > { %6050 = vpow2.f32 %v2574_v60 }
 0x40d   : > { %2984 = vrot.lane.b32.xlu1 %v9789_v9, %s6599_s11  ;;  %v2529_v16 = vpop.xlane.xlu0 %2528 }
 0x40e   : > { %v2531_v6 = vpop.xlane.xlu2 %2530  ;;  %v2556_v55 = vsub.f32 %v7804_v37, %v2529_v16 }
 0x40f   : > { %v7909_v25 = vpop.xlane.xlu1 %1995  ;;  %v2557_v58 = vsub.f32 %v7811_v10, %v2531_v6 }
 0x410   : > { %v2576_v53 = vmul.f32 1.442695, %v2556_v55 }
 0x411   : > { %v2578_v11 = vmul.f32 1.442695, %v2557_v58 }
 0x412   : > { %v7914_v5 = vpop.eup %6050  ;;  %6052 = vpow2.f32 %v2576_v53 }
 0x413   : > { %v2633_v46 = vpack.c.bf16 %v7914_v5, %v7911_v43  ;;  %6054 = vpow2.f32 %v2578_v11 }
 0x415   : > { %2990 = vrot.lane.b32.xlu1 %v9790_v8, %s6599_s11  ;;  %2693 = vmatmul.bf16.gmra.mxu2 %v2633_v46  ;;  %v7921_v4 = vpop.xlane.xlu0 %1993 }
 0x416   : > { %v7923_v39 = vpop.xlane.xlu2 %1997 }
 0x417   : > { %v7925_v50 = vpop.xlane.xlu1 %1390 }
 0x418   : > { %v7931_v30 = vpop.eup %6052 }
 0x419   : > { %v7933_v0 = vpop.eup %6054 }
 0x41a   : > { %v2634_v36 = vpack.c.bf16 %v7933_v0, %v7931_v30 }
 0x41d   : > { %v7927_v37 = vpop.xlane.xlu0 %1392 }
 0x41e   : > { %v7929_v10 = vpop.xlane.xlu2 %1394 }
 0x41f   : > { %v2533_v40 = vpop.xlane.xlu1 %2532 }
 0x420   : > { %v2558_v49 = vsub.f32 %v7817_v3, %v2533_v40  ;;  %v1467_v40 = vpop.f32.mrf.mxu2 }
 0x422   : > { %v2580_v60 = vmul.f32 1.442695, %v2558_v49 }
 0x424   : > { %6056 = vpow2.f32 %v2580_v60 }
 0x425   : > { %2698 = vmatmul.bf16.gmra.mxu2 %v2634_v36  ;;  %v2535_v16 = vpop.xlane.xlu0 %2534 }
 0x426   : > { %v2559_v6 = vsub.f32 %v7824_v15, %v2535_v16  ;;  %v2537_v55 = vpop.xlane.xlu2 %2536 }
 0x427   : > { %v7939_v58 = vpop.xlane.xlu1 %2001 }
 0x428   : > { %v2582_v46 = vmul.f32 1.442695, %v2559_v6  ;;  %2600 = vadd.xlane.f32.xlu0 %v6041_v20  ;;  %v2560_v20 = vsub.f32 %v7830_v63, %v2537_v55  ;;  %v1469_v9 = vpop.f32.mrf.mxu2 }
 0x42a   : > { %6058 = vpow2.f32 %v2582_v46  ;;  %v7945_v3 = vpop.eup %6056  ;;  %v2584_v16 = vmul.f32 1.442695, %v2560_v20 }
 0x42c   : > { %2602 = vadd.xlane.f32.xlu2 %v6043_v27  ;;  %6060 = vpow2.f32 %v2584_v16  ;;  %v9791_v16 = vld [vmem:[#allocation27_spill] sm:$0xff] }
 0x42d   : > { %v7941_v53 = vpop.xlane.xlu0 %1999 }
 0x42e   : > { %v7943_v11 = vpop.xlane.xlu2 %2003 }
 0x42f   : > { %v7947_v49 = vpop.xlane.xlu1 %1396 }
 0x430   : > { %v7949_v36 = vpop.eup %6058  ;;  %2017 = vadd.xlane.f32.xlu0 %v6045_v52  ;;  %v1472_v20 = vpop.f32.mrf.mxu2 }
 0x431   : > { %v2635_v15 = vpack.c.bf16 %v7949_v36, %v7945_v3 }
 0x432   : > { %v7962_v63 = vpop.eup %6060 }
 0x435   : > { %2703 = vmatmul.bf16.gmra.mxu2 %v2635_v15  ;;  %v7954_v60 = vpop.xlane.xlu0 %1398 }
 0x436   : > { %v7956_v27 = vpop.xlane.xlu2 %1400 }
 0x437   : > { %v2539_v6 = vpop.xlane.xlu1 %2538 }
 0x438   : > { %v2561_v46 = vsub.f32 %v7835_v32, %v2539_v6 }
 0x43a   : > { %v2586_v13 = vmul.f32 1.442695, %v2561_v46 }
 0x43c   : > { %6062 = vpow2.f32 %v2586_v13 }
 0x43d   : > { %v2541_v29 = vpop.xlane.xlu0 %2540  ;;  %6064 = vrcp.f32 %v7868_v24 }
 0x43e   : > { %v2543_v8 = vpop.xlane.xlu2 %2542  ;;  %v2562_v55 = vsub.f32 %v7841_v14, %v2541_v29  ;;  %6066 = vrcp.f32 %v7877_v42 }
 0x43f   : > { %v7959_v52 = vpop.xlane.xlu1 %2007  ;;  %2019 = vadd.xlane.f32.xlu1 %v7903_v57  ;;  %v2563_v32 = vsub.f32 %v7848_v19, %v2543_v8  ;;  %v9792_v57 = vld [vmem:[#allocation30_spill] sm:$0xff] }
 0x440   : > { %v2588_v6 = vmul.f32 1.442695, %v2562_v55  ;;  %v7985_v55 = vpop.f32.mrf.mxu2 }
 0x441   : > { %v2590_v29 = vmul.f32 1.442695, %v2563_v32 }
 0x442   : > { %v7965_v15 = vpop.eup %6062  ;;  %6068 = vpow2.f32 %v2588_v6 }
 0x443   : > { %v2636_v13 = vpack.c.bf16 %v7965_v15, %v7962_v63  ;;  %v6065_v19 = vpop.eup %6064  ;;  %6070 = vpow2.f32 %v2590_v29 }
 0x444   : > { %2986 = vrot.lane.b32.xlu2 %v9791_v16, %s6599_s11  ;;  %2988 = vrot.lane.b32.xlu0 %v9792_v57, %s6599_s11  ;;  %v6067_v42 = vpop.eup %6066  ;;  %v1523_v8 = vmul.f32 %v6065_v19, %v1467_v40  ;;  %6072 = vrcp.f32 %v7875_v54 }
 0x445   : > { %2708 = vmatmul.bf16.gmra.mxu2 %v2636_v13  ;;  %v7976_v14 = vpop.xlane.xlu0 %2005  ;;  %v1525_v46 = vmul.f32 %v6067_v42, %v1472_v20 }
 0x446   : > { %v7981_v38 = vpop.xlane.xlu2 %2009 }
 0x447   : > { %v7978_v24 = vpop.xlane.xlu1 %1402  ;;  %2604 = vadd.xlane.f32.xlu1 %v7911_v43 }
 0x448   : > { %v7989_v13 = vpop.eup %6068 }
 0x449   : > { %v7991_v57 = vpop.eup %6070 }
 0x44a   : > { %v2637_v20 = vpack.c.bf16 %v7991_v57, %v7989_v13 }
 0x44c   : > { %1559 = vrot.lane.b32.xlu2 %v1525_v46, %s6600_s6  ;;  %1555 = vrot.lane.b32.xlu0 %v1523_v8, %s6600_s6  ;;  %v8000_v8 = vpop.f32.mrf.mxu2 }
 0x44d   : > { %v7987_v32 = vpop.xlane.xlu0 %1404 }
 0x44e   : > { %v7996_v19 = vpop.xlane.xlu2 %1406 }
 0x44f   : > { %v2545_v43 = vpop.xlane.xlu1 %2544 }
 0x450   : > { %v2564_v40 = vsub.f32 %v7855_v2, %v2545_v43  ;;  %v6073_v2 = vpop.eup %6072 }
 0x451   : > { %v1524_v43 = vmul.f32 %v6073_v2, %v1469_v9 }
 0x452   : > { %v2592_v6 = vmul.f32 1.442695, %v2564_v40 }
 0x454   : > { %6074 = vpow2.f32 %v2592_v6  ;;  %v1479_v54 = vpop.f32.mrf.mxu2 }
 0x455   : > { %2713 = vmatmul.bf16.gmra.mxu2 %v2637_v20  ;;  %v2547_v29 = vpop.xlane.xlu0 %2546 }
 0x456   : > { %v2565_v42 = vsub.f32 %v7863_v56, %v2547_v29  ;;  %v2549_v56 = vpop.xlane.xlu2 %2548 }
 0x457   : > { %v8002_v46 = vpop.xlane.xlu1 %2013 }
 0x458   : > { %v2594_v16 = vmul.f32 1.442695, %v2565_v42  ;;  %v2078_v42 = vpop.f32.mrf.mxu0 }
 0x45a   : > { %6076 = vpow2.f32 %v2594_v16  ;;  %v8004_v45 = vpop.eup %6074  ;;  %v2566_v16 = vsub.f32 %v7870_v1, %v2549_v56 }
 0x45b   : > { %6078 = vrcp.f32 %v7885_v28 }
 0x45c   : > { %v2596_v2 = vmul.f32 1.442695, %v2566_v16  ;;  %v8017_v61 = vpop.f32.mrf.mxu2 }
 0x45e   : > { %6080 = vpow2.f32 %v2596_v2 }
 0x45f   : > { %v8007_v40 = vpop.xlane.xlu1 %1408 }
 0x460   : > { %v8009_v20 = vpop.eup %6076  ;;  %1557 = vrot.lane.b32.xlu1 %v1524_v43, %s6600_s6 }
 0x461   : > { %v2638_v29 = vpack.c.bf16 %v8009_v20, %v8004_v45  ;;  %v6079_v6 = vpop.eup %6078 }
 0x462   : > { %v2134_v9 = vmul.f32 %v6079_v6, %v2078_v42  ;;  %v8034_v6 = vpop.xlane.xlu2 %2015 }
 0x464   : > { %v8019_v43 = vpop.eup %6080  ;;  %v8025_v56 = vpop.f32.mrf.mxu2 }
 0x465   : > { %2718 = vmatmul.bf16.gmra.mxu2 %v2638_v29 }
 0x467   : > { %v2551_v47 = vpop.xlane.xlu1 %2550 }
 0x468   : > { %v2567_v28 = vsub.f32 %v7880_v7, %v2551_v47  ;;  %2166 = vrot.lane.b32.xlu1 %v2134_v9, %s6601_s7  ;;  %v2080_v47 = vpop.f32.mrf.mxu0 }
 0x46a   : > { %v2598_v31 = vmul.f32 1.442695, %v2567_v28  ;;  %v8043_v9 = vpop.permute.xlu2 %2980 }
 0x46c   : > { %6082 = vpow2.f32 %v2598_v31 }
 0x46d   : > { %6084 = vrcp.f32 %v7890_v35 }
 0x46e   : > { %6086 = vrcp.f32 %v7921_v4 }
 0x46f   : > { %6088 = vrcp.f32 %v7894_v51  ;;  %v8040_v51 = vpop.xlane.xlu0 %2011 }
 0x470   : > { %v2083_v42 = vpop.f32.mrf.mxu0  ;;  %6090 = vrcp.f32 %v7901_v41 }
 0x471   : > { %6092 = vrcp.f32 %v7899_v18 }
 0x472   : > { %v8021_v17 = vpop.eup %6082  ;;  %6094 = vrcp.f32 %v7909_v25 }
 0x473   : > { %v2639_v1 = vpack.c.bf16 %v8021_v17, %v8019_v43  ;;  %v6085_v31 = vpop.eup %6084  ;;  %6096 = vrcp.f32 %v7923_v39 }
 0x474   : > { %v6087_v7 = vpop.eup %6086  ;;  %v2135_v29 = vmul.f32 %v6085_v31, %v2080_v47  ;;  %6098 = vrcp.f32 %v7941_v53  ;;  %v1487_v53 = vpop.f32.mrf.mxu2 }
 0x475   : > { %2723 = vmatmul.bf16.gmra.mxu2 %v2639_v1  ;;  %2608 = vadd.xlane.f32.xlu2 %v7931_v30  ;;  %v2136_v16 = vmul.f32 %v6087_v7, %v2083_v42  ;;  %6100 = vrcp.f32 %v7925_v50 }
 0x476   : > { %2606 = vadd.xlane.f32.xlu0 %v7914_v5  ;;  %v6089_v5 = vpop.eup %6088  ;;  %6102 = vrcp.f32 %v7929_v10 }
 0x477   : > { %v1526_v35 = vmul.f32 %v6089_v5, %v7985_v55  ;;  %v6091_v30 = vpop.eup %6090  ;;  %v8045_v41 = vpop.permute.xlu0 %2982  ;;  %6104 = vrcp.f32 %v7927_v37 }
 0x478   : > { %v1528_v4 = vmul.f32 %v6091_v30, %v1479_v54  ;;  %v2085_v54 = vpop.f32.mrf.mxu0  ;;  %6106 = vrcp.f32 %v7939_v58 }
 0x479   : > { %6108 = vrcp.f32 %v7943_v11 }
 0x47a   : > { %6110 = vrcp.f32 %v7976_v14 }
 0x47b   : > { %6112 = vrcp.f32 %v7947_v49 }
 0x47c   : > { %v1489_v58 = vpop.f32.mrf.mxu2  ;;  %6114 = vrcp.f32 %v7956_v27 }
 0x47d   : > { %6116 = vrcp.f32 %v7954_v60 }
 0x47e   : > { %6118 = vrcp.f32 %v7959_v52 }
 0x47f   : > { %v8057_v47 = vpop.permute.xlu1 %2984  ;;  %6120 = vrcp.f32 %v7981_v38 }
 0x480   : > { %v2088_v5 = vpop.f32.mrf.mxu0  ;;  %6122 = vrcp.f32 %v7978_v24 }
 0x48a   : > { %2168 = vrot.lane.b32.xlu0 %v2135_v29, %s6601_s7 }
 0x48d   : > { %2170 = vrot.lane.b32.xlu2 %v2136_v16, %s6601_s7 }
 0x492   : > { %2610 = vadd.xlane.f32.xlu1 %v7933_v0  ;;  %1561 = vrot.lane.b32.xlu0 %v1526_v35, %s6600_s6  ;;  %v6093_v0 = vpop.eup %6092  ;;  %6124 = vrcp.f32 %v8040_v51 }
 0x493   : > { %v1527_v1 = vmul.f32 %v6093_v0, %v8000_v8  ;;  %v6095_v29 = vpop.eup %6094  ;;  %v8065_v8 = vpop.permute.xlu1 %2990  ;;  %6126 = vrcp.f32 %v7996_v19 }
 0x494   : > { %v2137_v18 = vmul.f32 %v6095_v29, %v2085_v54  ;;  %v6097_v30 = vpop.eup %6096  ;;  %v2090_v0 = vpop.f32.mrf.mxu0 }
 0x495   : > { %1565 = vrot.lane.b32.xlu2 %v1528_v4, %s6600_s6  ;;  %v2138_v4 = vmul.f32 %v6097_v30, %v2088_v5 }
 0x49b   : > { %v8050_v28 = vpop.xlane.xlu0 %2600 }
 0x49f   : > { %v8047_v2 = vpop.xlane.xlu2 %2602 }
 0x4a3   : > { %v8059_v31 = vpop.xlane.xlu0 %2017 }
 0x4a4   : > { %6128 = vrcp.f32 %v8059_v31  ;;  %v9794_v31 = vld [vmem:[#allocation41_spill] sm:$0xff] }
 0x4a7   : > { %v8052_v55 = vpop.permute.xlu2 %2986 }
 0x4ab   : > { %1563 = vrot.lane.b32.xlu1 %v1527_v1, %s6600_s6 }
 0x4af   : > { %v1560_v7 = vpop.permute.xlu2 %1559 }
 0x4b0   : > { %1606 = vst.msk [vmem:[#allocation3 + $0x10] sm:$0xff] %vm1603_vm1, %v1560_v7 }
 0x4b2   : > { %v8070_v16 = vpop.xlane.xlu1 %2019 }
 0x4b3   : > { %2172 = vrot.lane.b32.xlu1 %v2137_v18, %s6601_s7 }
 0x4b6   : > { %v8063_v42 = vpop.permute.xlu0 %2988 }
 0x4ba   : > { %v8073_v35 = vpop.xlane.xlu1 %2604 }
 0x4bc   : > { %2612 = vadd.xlane.f32.xlu0 %v7945_v3  ;;  %v6099_v3 = vpop.eup %6098  ;;  %6130 = vrcp.f32 %v7987_v32 }
 0x4bd   : > { %v2139_v1 = vmul.f32 %v6099_v3, %v2090_v0  ;;  %v6101_v54 = vpop.eup %6100  ;;  %6132 = vrcp.f32 %v8047_v2 }
 0x4be   : > { %2614 = vadd.xlane.f32.xlu2 %v7949_v36  ;;  %v1556_v25 = vpop.permute.xlu0 %1555  ;;  %v1529_v39 = vmul.f32 %v6101_v54, %v8017_v61  ;;  %v6103_v7 = vpop.eup %6102  ;;  %6134 = vrcp.f32 %v8002_v46 }
 0x4bf   : > { %1604 = vst.msk [vmem:[#allocation3] sm:$0xff] %vm1603_vm1, %v1556_v25  ;;  %v1531_v29 = vmul.f32 %v6103_v7, %v1487_v53  ;;  %v6105_v10 = vpop.eup %6104 }
 0x4c0   : > { %v1530_v25 = vmul.f32 %v6105_v10, %v8025_v56 }
 0x4d0   : > { %2174 = vrot.lane.b32.xlu0 %v2138_v4, %s6601_s7  ;;  %v6107_v4 = vpop.eup %6106 }
 0x4d1   : > { %v6109_v0 = vpop.eup %6108 }
 0x4d2   : > { %v1558_v36 = vpop.permute.xlu1 %1557 }
 0x4d3   : > { %1605 = vst.msk [vmem:[#allocation3 + $0x8] sm:$0xff] %vm1603_vm1, %v1558_v36 }
 0x4d6   : > { %2176 = vrot.lane.b32.xlu2 %v2139_v1, %s6601_s7 }
 0x4d8   : > { %1567 = vrot.lane.b32.xlu0 %v1529_v39, %s6600_s6  ;;  %v6111_v39 = vpop.eup %6110 }
 0x4d9   : > { %v6113_v53 = vpop.eup %6112 }
 0x4da   : > { %v2167_v50 = vpop.permute.xlu1 %2166  ;;  %v6115_v49 = vpop.eup %6114 }
 0x4db   : > { %2215 = vst.msk [vmem:[#allocation3] sm:$0xff] %vm2214_vm2, %v2167_v50  ;;  %v1532_v50 = vmul.f32 %v6113_v53, %v1489_v58 }
 0x4dd   : > { %2616 = vadd.xlane.f32.xlu1 %v7962_v63  ;;  %v2093_v63 = vpop.f32.mrf.mxu0 }
 0x4de   : > { %1571 = vrot.lane.b32.xlu2 %v1531_v29, %s6600_s6  ;;  %v2140_v3 = vmul.f32 %v6107_v4, %v2093_v63  ;;  %v6117_v4 = vpop.eup %6116 }
 0x4df   : > { %v6119_v58 = vpop.eup %6118 }
 0x4e5   : > { %v2095_v56 = vpop.f32.mrf.mxu0 }
 0x4e6   : > { %v2141_v1 = vmul.f32 %v6109_v0, %v2095_v56 }
 0x4e8   : > { %v8086_v18 = vpop.xlane.xlu2 %2608 }
 0x4e9   : > { %v8091_v5 = vpop.xlane.xlu0 %2606  ;;  %6136 = vrcp.f32 %v8086_v18  ;;  %v9795_v18 = vld [vmem:[#allocation39_spill] sm:$0xff] }
 0x4ed   : > { %v2098_v7 = vpop.f32.mrf.mxu0 }
 0x4f0   : > { %v2171_v61 = vpop.permute.xlu2 %2170 }
 0x4f1   : > { %2217 = vst.msk [vmem:[#allocation3 + $0x10] sm:$0xff] %vm2214_vm2, %v2171_v61 }
 0x4f5   : > { %v2100_v60 = vpop.f32.mrf.mxu0 }
 0x4f6   : > { %1569 = vrot.lane.b32.xlu1 %v1530_v25, %s6600_s6  ;;  %v2143_v56 = vmul.f32 %v6119_v58, %v2100_v60 }
 0x4f8   : > { %v1566_v30 = vpop.permute.xlu2 %1565 }
 0x4f9   : > { %1609 = vst.msk [vmem:[#allocation3 + $0x28] sm:$0xff] %vm1603_vm1, %v1566_v30 }
 0x4fc   : > { %v2169_v36 = vpop.permute.xlu0 %2168 }
 0x4fd   : > { %2216 = vst.msk [vmem:[#allocation3 + $0x8] sm:$0xff] %vm2214_vm2, %v2169_v36 }
 0x4fe   : > { %2178 = vrot.lane.b32.xlu1 %v2140_v3, %s6601_s7 }
 0x502   : > { %2618 = vadd.xlane.f32.xlu0 %v7965_v15  ;;  %v1492_v15 = vpop.f32.mrf.mxu2 }
 0x503   : > { %v1533_v3 = vmul.f32 %v6117_v4, %v1492_v15 }
 0x504   : > { %v1562_v37 = vpop.permute.xlu0 %1561 }
 0x505   : > { %1607 = vst.msk [vmem:[#allocation3 + $0x18] sm:$0xff] %vm1603_vm1, %v1562_v37  ;;  %v8104_v54 = vpop.xlane.xlu1 %2610 }
 0x507   : > { %2620 = vadd.xlane.f32.xlu2 %v7989_v13  ;;  %v2142_v13 = vmul.f32 %v6111_v39, %v2098_v7  ;;  %v6121_v39 = vpop.eup %6120 }
 0x50a   : > { %v1494_v11 = vpop.f32.mrf.mxu2 }
 0x50b   : > { %v1534_v14 = vmul.f32 %v6115_v49, %v1494_v11 }
 0x512   : > { %v1497_v10 = vpop.f32.mrf.mxu2 }
 0x516   : > { %2180 = vrot.lane.b32.xlu0 %v2141_v1, %s6601_s7  ;;  %v2103_v1 = vpop.f32.mrf.mxu0 }
 0x517   : > { %v2144_v53 = vmul.f32 %v6121_v39, %v2103_v1 }
 0x51a   : > { %v8120_v63 = vpop.f32.mrf.mxu2 }
 0x51d   : > { %v1564_v29 = vpop.permute.xlu1 %1563 }
 0x51e   : > { %1608 = vst.msk [vmem:[#allocation3 + $0x20] sm:$0xff] %vm1603_vm1, %v1564_v29  ;;  %1573 = vrot.lane.b32.xlu0 %v1532_v50, %s6600_s6  ;;  %v6123_v50 = vpop.eup %6122  ;;  %v2105_v7 = vpop.f32.mrf.mxu0 }
 0x51f   : > { %2182 = vrot.lane.b32.xlu2 %v2142_v13, %s6601_s7  ;;  %v1535_v29 = vmul.f32 %v6123_v50, %v1497_v10 }
 0x522   : > { %v1502_v37 = vpop.f32.mrf.mxu2 }
 0x525   : > { %v2173_v61 = vpop.permute.xlu1 %2172 }
 0x526   : > { %2218 = vst.msk [vmem:[#allocation3 + $0x18] sm:$0xff] %vm2214_vm2, %v2173_v61  ;;  %v2108_v24 = vpop.f32.mrf.mxu0 }
 0x527   : > { %1577 = vrot.lane.b32.xlu2 %v1534_v14, %s6600_s6  ;;  %v9793_v14 = vld [vmem:[#allocation34_spill] sm:$0xff] }
 0x528   : > { %2622 = vadd.xlane.f32.xlu1 %v7991_v57 }
 0x52a   : > { %v8129_v52 = vpop.f32.mrf.mxu2 }
 0x52e   : > { %v2110_v10 = vpop.f32.mrf.mxu0 }
 0x52f   : > { %v8117_v30 = vpop.xlane.xlu0 %2612 }
 0x531   : > { %v8114_v25 = vpop.xlane.xlu2 %2614 }
 0x532   : > { %v8133_v15 = vpop.f32.mrf.mxu2  ;;  %6138 = vrcp.f32 %v8114_v25 }
 0x533   : > { %6140 = vrcp.f32 %v8034_v6 }
 0x534   : > { %6142 = vrcp.f32 %v8050_v28 }
 0x535   : > { %6144 = vrcp.f32 %v8007_v40 }
 0x536   : > { %6146 = vrcp.f32 %v8070_v16 }
 0x537   : > { %6148 = vrcp.f32 %v8091_v5 }
 0x538   : > { %6150 = vrcp.f32 %v8117_v30 }
 0x539   : > { %v2177_v27 = vpop.permute.xlu2 %2176  ;;  %6152 = vrcp.f32 %v8073_v35 }
 0x53a   : > { %2220 = vst.msk [vmem:[#allocation3 + $0x28] sm:$0xff] %vm2214_vm2, %v2177_v27  ;;  %v2691_v13 = vpop.f32.mrf.mxu2  ;;  %6154 = vrcp.f32 %v8104_v54 }
 0x541   : > { %1575 = vrot.lane.b32.xlu1 %v1533_v3, %s6600_s6  ;;  %v1572_v36 = vpop.permute.xlu2 %1571 }
 0x542   : > { %1612 = vst.msk [vmem:[#allocation3 + $0x40] sm:$0xff] %vm1603_vm1, %v1572_v36  ;;  %v2175_v57 = vpop.permute.xlu0 %2174  ;;  %v8143_v49 = vpop.f32.mrf.mxu2 }
 0x543   : > { %2219 = vst.msk [vmem:[#allocation3 + $0x20] sm:$0xff] %vm2214_vm2, %v2175_v57  ;;  %v2113_v36 = vpop.f32.mrf.mxu0 }
 0x548   : > { %2624 = vadd.xlane.f32.xlu0 %v8004_v45 }
 0x549   : > { %2184 = vrot.lane.b32.xlu1 %v2143_v56, %s6601_s7 }
 0x54a   : > { %v1568_v0 = vpop.permute.xlu0 %1567  ;;  %v8150_v27 = vpop.f32.mrf.mxu2 }
 0x54b   : > { %1610 = vst.msk [vmem:[#allocation3 + $0x30] sm:$0xff] %vm1603_vm1, %v1568_v0 }
 0x550   : > { %2626 = vadd.xlane.f32.xlu2 %v8009_v20  ;;  %v8138_v45 = vpop.xlane.xlu1 %2616  ;;  %v6125_v20 = vpop.eup %6124 }
 0x551   : > { %v2145_v38 = vmul.f32 %v6125_v20, %v2105_v7  ;;  %v6127_v61 = vpop.eup %6126  ;;  %6156 = vrcp.f32 %v8138_v45 }
 0x552   : > { %v1537_v4 = vmul.f32 %v6127_v61, %v1502_v37  ;;  %v6129_v19 = vpop.eup %6128  ;;  %v2699_v60 = vpop.f32.mrf.mxu2 }
 0x553   : > { %v2148_v57 = vmul.f32 %v6129_v19, %v2113_v36  ;;  %v6131_v56 = vpop.eup %6130  ;;  %v2115_v61 = vpop.f32.mrf.mxu0 }
 0x554   : > { %v1536_v1 = vmul.f32 %v6131_v56, %v8120_v63 }
 0x55a   : > { %v8164_v0 = vpop.f32.mrf.mxu2 }
 0x55c   : > { %2186 = vrot.lane.b32.xlu0 %v2144_v53, %s6601_s7  ;;  %v6133_v53 = vpop.eup %6132 }
 0x55d   : > { %v2746_v32 = vmul.f32 %v6133_v53, %v2691_v13  ;;  %v6135_v50 = vpop.eup %6134 }
 0x55e   : > { %v2146_v63 = vmul.f32 %v6135_v50, %v2108_v24  ;;  %v6137_v7 = vpop.eup %6136 }
 0x55f   : > { %v2749_v46 = vmul.f32 %v6137_v7, %v2699_v60 }
 0x564   : > { %1579 = vrot.lane.b32.xlu0 %v1535_v29, %s6600_s6  ;;  %v2704_v29 = vpop.f32.mrf.mxu2 }
 0x568   : > { %v1570_v11 = vpop.permute.xlu1 %1569  ;;  %2188 = vrot.lane.b32.xlu2 %v2145_v38, %s6601_s7 }
 0x569   : > { %1611 = vst.msk [vmem:[#allocation3 + $0x38] sm:$0xff] %vm1603_vm1, %v1570_v11 }
 0x56c   : > { %v2706_v13 = vpop.f32.mrf.mxu2 }
 0x570   : > { %v2179_v51 = vpop.permute.xlu1 %2178  ;;  %2992 = vrot.lane.b32.xlu2 %v9793_v14, %s6599_s11 }
 0x571   : > { %2221 = vst.msk [vmem:[#allocation3 + $0x30] sm:$0xff] %vm2214_vm2, %v2179_v51 }
 0x573   : > { %2628 = vadd.xlane.f32.xlu1 %v8019_v43 }
 0x575   : > { %v8156_v58 = vpop.xlane.xlu0 %2618 }
 0x576   : > { %6158 = vrcp.f32 %v8156_v58 }
 0x578   : > { %1583 = vrot.lane.b32.xlu2 %v1537_v4, %s6600_s6 }
 0x57a   : > { %v8154_v3 = vpop.xlane.xlu2 %2620 }
 0x57b   : > { %6160 = vrcp.f32 %v8154_v3 }
 0x580   : > { %2194 = vrot.lane.b32.xlu2 %v2148_v57, %s6601_s7 }
 0x582   : > { %v2183_v43 = vpop.permute.xlu2 %2182 }
 0x583   : > { %2223 = vst.msk [vmem:[#allocation3 + $0x40] sm:$0xff] %vm2214_vm2, %v2183_v43 }
 0x588   : > { %2998 = vrot.lane.b32.xlu2 %v9794_v31, %s6599_s11  ;;  %v2181_v37 = vpop.permute.xlu0 %2180 }
 0x589   : > { %2222 = vst.msk [vmem:[#allocation3 + $0x38] sm:$0xff] %vm2214_vm2, %v2181_v37 }
 0x58a   : > { %v1578_v39 = vpop.permute.xlu2 %1577 }
 0x58b   : > { %1615 = vst.msk [vmem:[#allocation3 + $0x58] sm:$0xff] %vm1603_vm1, %v1578_v39  ;;  %v2709_v39 = vpop.f32.mrf.mxu2 }
 0x58c   : > { %1581 = vrot.lane.b32.xlu1 %v1536_v1, %s6600_s6 }
 0x58e   : > { %2630 = vadd.xlane.f32.xlu0 %v8021_v17  ;;  %v6139_v17 = vpop.eup %6138 }
 0x58f   : > { %v6141_v20 = vpop.eup %6140  ;;  %v2752_v38 = vmul.f32 %v6139_v17, %v2706_v13 }
 0x590   : > { %2779 = vrot.lane.b32.xlu2 %v2746_v32, %s6602_s8  ;;  %v1574_v2 = vpop.permute.xlu0 %1573  ;;  %v6143_v11 = vpop.eup %6142  ;;  %v2147_v24 = vmul.f32 %v6141_v20, %v2110_v10 }
 0x591   : > { %1613 = vst.msk [vmem:[#allocation3 + $0x48] sm:$0xff] %vm1603_vm1, %v1574_v2  ;;  %v2745_v6 = vmul.f32 %v6143_v11, %v8133_v15  ;;  %v6145_v28 = vpop.eup %6144  ;;  %v9796_v15 = vld [vmem:[#allocation37_spill] sm:$0xff] }
 0x592   : > { %v6147_v25 = vpop.eup %6146  ;;  %v1538_v51 = vmul.f32 %v6145_v28, %v8129_v52  ;;  %v9797_v52 = vld [vmem:[#allocation45_spill] sm:$0xff] }
 0x593   : > { %v2149_v40 = vmul.f32 %v6147_v25, %v2115_v61  ;;  %v6149_v16 = vpop.eup %6148 }
 0x594   : > { %2190 = vrot.lane.b32.xlu1 %v2146_v63, %s6601_s7  ;;  %v2748_v4 = vmul.f32 %v6149_v16, %v8150_v27  ;;  %v6151_v5 = vpop.eup %6150 }
 0x595   : > { %v2751_v36 = vmul.f32 %v6151_v5, %v2704_v29  ;;  %v6153_v30 = vpop.eup %6152 }
 0x596   : > { %v2747_v27 = vmul.f32 %v6153_v30, %v8143_v49  ;;  %v6155_v43 = vpop.eup %6154 }
 0x597   : > { %v2750_v37 = vmul.f32 %v6155_v43, %v8164_v0  ;;  %v6157_v1 = vpop.eup %6156 }
 0x598   : > { %2785 = vrot.lane.b32.xlu2 %v2749_v46, %s6602_s8  ;;  %v2753_v49 = vmul.f32 %v6157_v1, %v2709_v39 }
 0x59b   : > { %v8191_v10 = vpop.xlane.xlu1 %2622 }
 0x59c   : > { %2996 = vrot.lane.b32.xlu1 %v9795_v18, %s6599_s11  ;;  %6162 = vrcp.f32 %v8191_v10 }
 0x5a0   : > { %2791 = vrot.lane.b32.xlu2 %v2752_v38, %s6602_s8 }
 0x5a2   : > { %2192 = vrot.lane.b32.xlu0 %v2147_v24, %s6601_s7 }
 0x5a4   : > { %2777 = vrot.lane.b32.xlu1 %v2745_v6, %s6602_s8 }
 0x5aa   : > { %1585 = vrot.lane.b32.xlu0 %v1538_v51, %s6600_s6 }
 0x5ac   : > { %2196 = vrot.lane.b32.xlu1 %v2149_v40, %s6601_s7 }
 0x5b2   : > { %2994 = vrot.lane.b32.xlu0 %v9796_v15, %s6599_s11 }
 0x5b3   : > { %v1576_v19 = vpop.permute.xlu1 %1575 }
 0x5b4   : > { %1614 = vst.msk [vmem:[#allocation3 + $0x50] sm:$0xff] %vm1603_vm1, %v1576_v19  ;;  %2783 = vrot.lane.b32.xlu1 %v2748_v4, %s6602_s8  ;;  %v6159_v19 = vpop.eup %6158 }
 0x5ba   : > { %3000 = vrot.lane.b32.xlu0 %v9797_v52, %s6599_s11 }
 0x5bb   : > { %v2185_v57 = vpop.permute.xlu1 %2184  ;;  %v8210_v35 = vpop.xlane.xlu0 %2624 }
 0x5bc   : > { %2224 = vst.msk [vmem:[#allocation3 + $0x48] sm:$0xff] %vm2214_vm2, %v2185_v57  ;;  %2789 = vrot.lane.b32.xlu1 %v2751_v36, %s6602_s8  ;;  %v6161_v57 = vpop.eup %6160  ;;  %6164 = vrcp.f32 %v8210_v35 }
 0x5c2   : > { %2781 = vrot.lane.b32.xlu0 %v2747_v27, %s6602_s8  ;;  %v6163_v27 = vpop.eup %6162 }
 0x5c3   : > { %v8208_v60 = vpop.xlane.xlu2 %2626 }
 0x5c4   : > { %6166 = vrcp.f32 %v8208_v60 }
 0x5ca   : > { %2787 = vrot.lane.b32.xlu0 %v2750_v37, %s6602_s8 }
 0x5cb   : > { %v2189_v56 = vpop.permute.xlu2 %2188 }
 0x5cc   : > { %2226 = vst.msk [vmem:[#allocation3 + $0x58] sm:$0xff] %vm2214_vm2, %v2189_v56 }
 0x5ce   : > { %v2187_v54 = vpop.permute.xlu0 %2186 }
 0x5cf   : > { %2225 = vst.msk [vmem:[#allocation3 + $0x50] sm:$0xff] %vm2214_vm2, %v2187_v54 }
 0x5d2   : > { %2793 = vrot.lane.b32.xlu0 %v2753_v49, %s6602_s8 }
 0x5d3   : > { %v2993_v53 = vpop.permute.xlu2 %2992 }
 0x5d6   : > { %v1580_v32 = vpop.permute.xlu0 %1579 }
 0x5d7   : > { %1616 = vst.msk [vmem:[#allocation3 + $0x60] sm:$0xff] %vm1603_vm1, %v1580_v32  ;;  %v6165_v32 = vpop.eup %6164 }
 0x5db   : > { %v1584_v45 = vpop.permute.xlu2 %1583 }
 0x5dc   : > { %1618 = vst.msk [vmem:[#allocation3 + $0x70] sm:$0xff] %vm1603_vm1, %v1584_v45 }
 0x5e3   : > { %v2195_v0 = vpop.permute.xlu2 %2194 }
 0x5e4   : > { %2229 = vst.msk [vmem:[#allocation3 + $0x70] sm:$0xff] %vm2214_vm2, %v2195_v0 }
 0x5e6   : > { %v8222_v63 = vpop.xlane.xlu1 %2628 }
 0x5e7   : > { %6168 = vrcp.f32 %v8222_v63 }
 0x5eb   : > { %v2999_v2 = vpop.permute.xlu2 %2998 }
 0x5f3   : > { %v2780_v50 = vpop.permute.xlu2 %2779 }
 0x5f4   : > { %2827 = vst.msk [vmem:[#allocation3 + $0x8] sm:$0xff] %vm2825_vm3, %v2780_v50 }
 0x5fb   : > { %v2786_v7 = vpop.permute.xlu2 %2785 }
 0x5fc   : > { %2830 = vst.msk [vmem:[#allocation3 + $0x20] sm:$0xff] %vm2825_vm3, %v2786_v7  ;;  %v6167_v7 = vpop.eup %6166 }
 0x5fe   : > { %v1582_v29 = vpop.permute.xlu1 %1581 }
 0x5ff   : > { %1617 = vst.msk [vmem:[#allocation3 + $0x68] sm:$0xff] %vm1603_vm1, %v1582_v29 }
 0x601   : > { %v8228_v13 = vpop.xlane.xlu0 %2630 }
 0x603   : > { %v2792_v46 = vpop.permute.xlu2 %2791 }
 0x604   : > { %2833 = vst.msk [vmem:[#allocation3 + $0x38] sm:$0xff] %vm2825_vm3, %v2792_v46  ;;  %v6169_v46 = vpop.eup %6168 }
 0x606   : > { %v2191_v17 = vpop.permute.xlu1 %2190 }
 0x607   : > { %2227 = vst.msk [vmem:[#allocation3 + $0x60] sm:$0xff] %vm2214_vm2, %v2191_v17 }
 0x60e   : > { %v2997_v20 = vpop.permute.xlu1 %2996 }
 0x614   : > { %v2193_v38 = vpop.permute.xlu0 %2192 }
 0x615   : > { %2228 = vst.msk [vmem:[#allocation3 + $0x68] sm:$0xff] %vm2214_vm2, %v2193_v38 }
 0x616   : > { %v2778_v11 = vpop.permute.xlu1 %2777 }
 0x617   : > { %2826 = vst.msk [vmem:[#allocation3] sm:$0xff] %vm2825_vm3, %v2778_v11 }
 0x61c   : > { %v1586_v24 = vpop.permute.xlu0 %1585 }
 0x61d   : > { %1619 = vst.msk [vmem:[#allocation3 + $0x78] sm:$0xff] %vm1603_vm1, %v1586_v24 }
 0x61e   : > { %v2197_v6 = vpop.permute.xlu1 %2196 }
 0x61f   : > { %2230 = vst.msk [vmem:[#allocation3 + $0x78] sm:$0xff] %vm2214_vm2, %v2197_v6 }
 0x624   : > { %v2995_v28 = vpop.permute.xlu0 %2994 }
 0x626   : > { %v2784_v25 = vpop.permute.xlu1 %2783 }
 0x627   : > { %2829 = vst.msk [vmem:[#allocation3 + $0x18] sm:$0xff] %vm2825_vm3, %v2784_v25 }
 0x62c   : > { %v3001_v51 = vpop.permute.xlu0 %3000 }
 0x62d   : > { %5652 = vmatpush.xpose.msk.msra.mxu3 %vm622_vm0, %v3001_v51 }
 0x62e   : > { %v2790_v61 = vpop.permute.xlu1 %2789 }
 0x62f   : > { %2832 = vst.msk [vmem:[#allocation3 + $0x30] sm:$0xff] %vm2825_vm3, %v2790_v61 }
 0x631   : > { %5653 = vmatpush.xpose.msk.msra.mxu3 %vm622_vm0, %v2999_v2 }
 0x634   : > { %v2782_v40 = vpop.permute.xlu0 %2781 }
 0x635   : > { %2828 = vst.msk [vmem:[#allocation3 + $0x10] sm:$0xff] %vm2825_vm3, %v2782_v40  ;;  %5654 = vmatpush.xpose.msk.msra.mxu3 %vm622_vm0, %v2997_v20 }
 0x639   : > { %5655 = vmatpush.xpose.msk.msra.mxu3 %vm622_vm0, %v2995_v28 }
 0x63c   : > { %v2788_v16 = vpop.permute.xlu0 %2787 }
 0x63d   : > { %2831 = vst.msk [vmem:[#allocation3 + $0x28] sm:$0xff] %vm2825_vm3, %v2788_v16  ;;  %5656 = vmatpush.xpose.msk.msra.mxu3 %vm622_vm0, %v2993_v53 }
 0x641   : > { %5657 = vmatpush.xpose.msk.msra.mxu3 %vm622_vm0, %v8065_v8 }
 0x644   : > { %v2794_v4 = vpop.permute.xlu0 %2793 }
 0x645   : > { %2834 = vst.msk [vmem:[#allocation3 + $0x40] sm:$0xff] %vm2825_vm3, %v2794_v4  ;;  %5658 = vmatpush.xpose.msk.msra.mxu3 %vm622_vm0, %v8063_v42  ;;  %v2711_v42 = vpop.f32.mrf.mxu2 }
 0x646   : > { %v2754_v36 = vmul.f32 %v6159_v19, %v2711_v42 }
 0x649   : > { %5659 = vmatpush.xpose.msk.msra.mxu3 %vm622_vm0, %v8052_v55 }
 0x64d   : > { %5660 = vmatpush.xpose.msk.msra.mxu3 %vm622_vm0, %v8057_v47  ;;  %v2714_v5 = vpop.f32.mrf.mxu2 }
 0x64e   : > { %v2755_v30 = vmul.f32 %v6161_v57, %v2714_v5 }
 0x651   : > { %5661 = vmatpush.xpose.msk.msra.mxu3 %vm622_vm0, %v8045_v41 }
 0x655   : > { %5662 = vmatpush.xpose.msk.msra.mxu3 %vm622_vm0, %v8043_v9  ;;  %v2716_v43 = vpop.f32.mrf.mxu2 }
 0x656   : > { %v2756_v58 = vmul.f32 %v6163_v27, %v2716_v43 }
 0x659   : > { %5663 = vmatpush.xpose.msk.msra.mxu3 %vm622_vm0, %v7635_v59  ;;  %v9807_v59 = vld [vmem:[#allocation63_spill] sm:$0xff] }
 0x65d   : > { %5664 = vmatpush.xpose.msk.msra.mxu3 %vm622_vm0, %v7627_v44  ;;  %v9806_v44 = vld [vmem:[#allocation81_spill] sm:$0xff]  ;;  %v2719_v54 = vpop.f32.mrf.mxu2 }
 0x65e   : > { %v2757_v0 = vmul.f32 %v6165_v32, %v2719_v54 }
 0x661   : > { %5665 = vmatpush.xpose.msk.msra.mxu3 %vm622_vm0, %v7656_v33 }
 0x665   : > { %5666 = vmatpush.xpose.msk.msra.mxu3 %vm622_vm0, %v7623_v22  ;;  %v9798_v22 = vld [vmem:[#allocation43_spill] sm:$0xff]  ;;  %v2721_v53 = vpop.f32.mrf.mxu2 }
 0x666   : > { %v2758_v35 = vmul.f32 %v6167_v7, %v2721_v53 }
 0x669   : > { %5667 = vmatpush.xpose.msk.msra.mxu3 %vm622_vm0, %v7619_v23  ;;  %v9799_v23 = vld [vmem:[#allocation54_spill] sm:$0xff] }
 0x66c   : > { %5668 = vmatmul.msk.f32.vlgmr.msra.gmra.mxu3 %vm622_vm0, %v7593_v21  ;;  %v9800_v21 = vld [vmem:[#allocation35_spill] sm:$0xff] }
 0x66d   : > { %v2724_v20 = vpop.f32.mrf.mxu2 }
 0x66e   : > { %v2759_v38 = vmul.f32 %v6169_v46, %v2724_v20 }
 0x674   : > { %5669 = vmatmul.msk.f32.gmra.mxu3 %vm622_vm0, %v7569_v12  ;;  %v9801_v12 = vld [vmem:[#allocation69_spill] sm:$0xff] }
 0x67c   : > { %5670 = vmatmul.msk.f32.gmra.mxu3 %vm622_vm0, %v7577_v62  ;;  %v9802_v62 = vld [vmem:[#allocation46_spill] sm:$0xff] }
 0x684   : > { %5671 = vmatmul.msk.f32.gmra.mxu3 %vm622_vm0, %v7603_v48  ;;  %v9803_v48 = vld [vmem:[#allocation87_spill] sm:$0xff] }
 0x68c   : > { %5672 = vmatmul.msk.f32.gmra.mxu3 %vm622_vm0, %v7581_v26  ;;  %v9804_v26 = vld [vmem:[#allocation61_spill] sm:$0xff] }
 0x694   : > { %5673 = vmatmul.msk.f32.gmra.mxu3 %vm622_vm0, %v7585_v34  ;;  %v9805_v34 = vld [vmem:[#allocation78_spill] sm:$0xff] }
 0x69c   : > { %5674 = vmatmul.msk.f32.gmra.mxu3 %vm622_vm0, %v9798_v22 }
 0x6a4   : > { %5675 = vmatmul.msk.f32.gmra.mxu3 %vm622_vm0, %v9799_v23 }
 0x6ac   : > { %5676 = vmatmul.msk.f32.gmra.mxu3 %vm622_vm0, %v9800_v21 }
 0x6b4   : > { %5677 = vmatmul.msk.f32.gmra.mxu3 %vm622_vm0, %v9801_v12 }
 0x6bc   : > { %5678 = vmatmul.msk.f32.gmra.mxu3 %vm622_vm0, %v9802_v62 }
 0x6c4   : > { %5679 = vmatmul.msk.f32.gmra.mxu3 %vm622_vm0, %v9803_v48 }
 0x6cc   : > { %5680 = vmatmul.msk.f32.gmra.mxu3 %vm622_vm0, %v9804_v26 }
 0x6d4   : > { %5681 = vmatmul.msk.f32.gmra.mxu3 %vm622_vm0, %v9805_v34 }
 0x6dc   : > { %5682 = vmatmul.msk.f32.gmra.mxu3 %vm622_vm0, %v9806_v44 }
 0x6e4   : > { %5683 = vmatmul.msk.f32.gmra.mxu3 %vm622_vm0, %v9807_v59  ;;  %v2726_v59 = vpop.f32.mrf.mxu2 }
 0x6ef   : > { %v3083_v33 = vpop.f32.mrf.mxu3 }
 0x6f0   : > { %3131 = vmax.xlane.f32.xlu1 %v3083_v33 }
 0x6f7   : > { %v3086_v9 = vpop.f32.mrf.mxu3 }
 0x6f8   : > { %3133 = vmax.xlane.f32.xlu2 %v3086_v9 }
 0x6ff   : > { %v8298_v41 = vpop.f32.mrf.mxu3 }
 0x700   : > { %3135 = vmax.xlane.f32.xlu0 %v8298_v41 }
 0x707   : > { %v8301_v55 = vpop.f32.mrf.mxu3 }
 0x708   : > { %3137 = vmax.xlane.f32.xlu1 %v8301_v55 }
 0x70f   : > { %v8304_v47 = vpop.f32.mrf.mxu3 }
 0x710   : > { %3139 = vmax.xlane.f32.xlu2 %v8304_v47 }
 0x717   : > { %v8308_v8 = vpop.f32.mrf.mxu3 }
 0x718   : > { %3141 = vmax.xlane.f32.xlu0 %v8308_v8 }
 0x71f   : > { %v8315_v37 = vpop.f32.mrf.mxu3 }
 0x721   : > { %2795 = vrot.lane.b32.xlu1 %v2754_v36, %s6602_s8 }
 0x727   : > { %v8318_v56 = vpop.f32.mrf.mxu3 }
 0x728   : > { %2797 = vrot.lane.b32.xlu2 %v2755_v30, %s6602_s8 }
 0x72c   : > { %2799 = vrot.lane.b32.xlu0 %v2756_v58, %s6602_s8 }
 0x72f   : > { %v8320_v3 = vpop.f32.mrf.mxu3 }
 0x737   : > { %v8322_v1 = vpop.f32.mrf.mxu3 }
 0x73f   : > { %v8326_v10 = vpop.f32.mrf.mxu3 }
 0x747   : > { %v8331_v39 = vpop.f32.mrf.mxu3 }
 0x74b   : > { %3143 = vmax.xlane.f32.xlu1 %v8315_v37 }
 0x74f   : > { %v8346_v24 = vpop.f32.mrf.mxu3 }
 0x751   : > { %3145 = vmax.xlane.f32.xlu2 %v8318_v56 }
 0x753   : > { %3149 = vmax.xlane.f32.xlu1 %v8322_v1 }
 0x756   : > { %3147 = vmax.xlane.f32.xlu0 %v8320_v3 }
 0x757   : > { %v8348_v28 = vpop.f32.mrf.mxu3 }
 0x759   : > { %3151 = vmax.xlane.f32.xlu2 %v8326_v10 }
 0x75e   : > { %3153 = vmax.xlane.f32.xlu0 %v8331_v39 }
 0x75f   : > { %v8353_v40 = vpop.f32.mrf.mxu3 }
 0x763   : > { %v3132_v49 = vpop.xlane.xlu1 %3131 }
 0x764   : > { %v3163_v45 = vsub.f32 %v3083_v33, %v3132_v49 }
 0x766   : > { %v3179_v2 = vmul.f32 1.442695, %v3163_v45 }
 0x767   : > { %v8362_v23 = vpop.f32.mrf.mxu3 }
 0x768   : > { %6170 = vpow2.f32 %v3179_v2 }
 0x76b   : > { %v3134_v50 = vpop.xlane.xlu2 %3133 }
 0x76c   : > { %v3164_v29 = vsub.f32 %v3086_v9, %v3134_v50  ;;  %2801 = vrot.lane.b32.xlu1 %v2757_v0, %s6602_s8 }
 0x76e   : > { %v3181_v17 = vmul.f32 1.442695, %v3164_v29  ;;  %v8340_v60 = vpop.eup %6170 }
 0x770   : > { %6172 = vpow2.f32 %v3181_v17 }
 0x771   : > { %2803 = vrot.lane.b32.xlu2 %v2758_v35, %s6602_s8 }
 0x772   : > { %2805 = vrot.lane.b32.xlu0 %v2759_v38, %s6602_s8 }
 0x773   : > { %v8351_v61 = vpop.xlane.xlu0 %3135 }
 0x774   : > { %v3165_v32 = vsub.f32 %v8298_v41, %v8351_v61 }
 0x776   : > { %v8342_v63 = vpop.eup %6172  ;;  %v3183_v7 = vmul.f32 1.442695, %v3165_v32 }
 0x777   : > { %v3243_v11 = vpack.c.bf16 %v8342_v63, %v8340_v60 }
 0x77b   : > { %v3138_v25 = vpop.xlane.xlu1 %3137 }
 0x77c   : > { %v3166_v22 = vsub.f32 %v8301_v55, %v3138_v25 }
 0x77e   : > { %v3185_v62 = vmul.f32 1.442695, %v3166_v22 }
 0x780   : > { %6174 = vpow2.f32 %v3185_v62 }
 0x783   : > { %v3140_v6 = vpop.xlane.xlu2 %3139 }
 0x784   : > { %v3167_v21 = vsub.f32 %v8304_v47, %v3140_v6 }
 0x786   : > { %v3187_v48 = vmul.f32 1.442695, %v3167_v21  ;;  %v8369_v26 = vpop.eup %6174 }
 0x788   : > { %6176 = vpow2.f32 %v3187_v48 }
 0x789   : > { %6178 = vrcp.f32 %v8228_v13 }
 0x78b   : > { %v2798_v51 = vpop.permute.xlu2 %2797  ;;  %v8356_v4 = vpop.xlane.xlu0 %3141 }
 0x78c   : > { %2836 = vst.msk [vmem:[#allocation3 + $0x50] sm:$0xff] %vm2825_vm3, %v2798_v51  ;;  %v3168_v41 = vsub.f32 %v8308_v8, %v8356_v4 }
 0x78e   : > { %v8372_v34 = vpop.eup %6176  ;;  %v3189_v17 = vmul.f32 1.442695, %v3168_v41 }
 0x78f   : > { %v6179_v44 = vpop.eup %6178 }
 0x790   : > { %v2760_v33 = vmul.f32 %v6179_v44, %v2726_v59 }
 0x793   : > { %v2796_v16 = vpop.permute.xlu1 %2795 }
 0x794   : > { %2835 = vst.msk [vmem:[#allocation3 + $0x48] sm:$0xff] %vm2825_vm3, %v2796_v16 }
 0x796   : > { %3155 = vmax.xlane.f32.xlu1 %v8346_v24 }
 0x79a   : > { %3157 = vmax.xlane.f32.xlu2 %v8348_v28 }
 0x79c   : > { %3159 = vmax.xlane.f32.xlu0 %v8353_v40 }
 0x79e   : > { %3161 = vmax.xlane.f32.xlu1 %v8362_v23  ;;  %v2800_v12 = vpop.permute.xlu0 %2799 }
 0x79f   : > { %2837 = vst.msk [vmem:[#allocation3 + $0x58] sm:$0xff] %vm2825_vm3, %v2800_v12 }
 0x7a2   : > { %3211 = vadd.xlane.f32.xlu2 %v8340_v60 }
 0x7a4   : > { %3213 = vadd.xlane.f32.xlu0 %v8342_v63 }
 0x7aa   : > { %3217 = vadd.xlane.f32.xlu2 %v8369_v26 }
 0x7ac   : > { %3219 = vadd.xlane.f32.xlu0 %v8372_v34 }
 0x7b7   : > { %2807 = vrot.lane.b32.xlu1 %v2760_v33, %s6602_s8 }
 0x7be   : > { %v3144_v9 = vpop.xlane.xlu1 %3143 }
 0x7bf   : > { %v3169_v55 = vsub.f32 %v8315_v37, %v3144_v9 }
 0x7c1   : > { %v3191_v47 = vmul.f32 1.442695, %v3169_v55 }
 0x7c3   : > { %6180 = vpow2.f32 %v3191_v47  ;;  %v9809_v47 = vld [vmem:[#allocation29_spill] sm:$0xff] }
 0x7c4   : > { %v3146_v42 = vpop.xlane.xlu2 %3145 }
 0x7c5   : > { %v3170_v19 = vsub.f32 %v8318_v56, %v3146_v42  ;;  %v9810_v42 = vld [vmem:[#allocation52_spill] sm:$0xff] }
 0x7c6   : > { %v3150_v5 = vpop.xlane.xlu1 %3149 }
 0x7c7   : > { %v3193_v36 = vmul.f32 1.442695, %v3170_v19  ;;  %v3172_v57 = vsub.f32 %v8322_v1, %v3150_v5  ;;  %v9811_v19 = vld [vmem:[#allocation31_spill] sm:$0xff]  ;;  %v9812_v5 = vld [vmem:[#allocation53_spill] sm:$0xff] }
 0x7c9   : > { %v8380_v13 = vpop.eup %6180  ;;  %6182 = vpow2.f32 %v3193_v36  ;;  %v3197_v30 = vmul.f32 1.442695, %v3172_v57  ;;  %v3148_v27 = vpop.xlane.xlu0 %3147  ;;  %v9813_v36 = vld [vmem:[#allocation57_spill] sm:$0xff]  ;;  %v9814_v57 = vld [vmem:[#allocation56_spill] sm:$0xff] }
 0x7ca   : > { %v3171_v43 = vsub.f32 %v8320_v3, %v3148_v27  ;;  %3223 = vadd.xlane.f32.xlu2 %v8380_v13 }
 0x7cb   : > { %6184 = vpow2.f32 %v3197_v30  ;;  %v9815_v30 = vld [vmem:[#allocation51_spill] sm:$0xff] }
 0x7cc   : > { %v3195_v58 = vmul.f32 1.442695, %v3171_v43  ;;  %v3152_v37 = vpop.xlane.xlu2 %3151 }
 0x7cd   : > { %v3173_v54 = vsub.f32 %v8326_v10, %v3152_v37 }
 0x7ce   : > { %6186 = vpow2.f32 %v3195_v58 }
 0x7cf   : > { %v8385_v56 = vpop.eup %6182  ;;  %v3199_v49 = vmul.f32 1.442695, %v3173_v54 }
 0x7d0   : > { %3225 = vadd.xlane.f32.xlu0 %v8385_v56  ;;  %v3246_v1 = vpack.c.bf16 %v8385_v56, %v8380_v13 }
 0x7d1   : > { %v8390_v53 = vpop.eup %6184  ;;  %6188 = vpow2.f32 %v3199_v49  ;;  %v3154_v3 = vpop.xlane.xlu0 %3153 }
 0x7d2   : > { %v3174_v45 = vsub.f32 %v8331_v39, %v3154_v3  ;;  %3229 = vadd.xlane.f32.xlu2 %v8390_v53 }
 0x7d4   : > { %v8396_v10 = vpop.eup %6186  ;;  %v3201_v0 = vmul.f32 1.442695, %v3174_v45  ;;  %v2804_v2 = vpop.permute.xlu2 %2803 }
 0x7d5   : > { %2839 = vst.msk [vmem:[#allocation3 + $0x68] sm:$0xff] %vm2825_vm3, %v2804_v2  ;;  %v3247_v50 = vpack.c.bf16 %v8390_v53, %v8396_v10 }
 0x7d6   : > { %6190 = vpow2.f32 %v3201_v0 }
 0x7d7   : > { %v8401_v29 = vpop.eup %6188  ;;  %6192 = vpow2.f32 %v3183_v7 }
 0x7d8   : > { %3231 = vadd.xlane.f32.xlu0 %v8401_v29  ;;  %6194 = vpow2.f32 %v3189_v17 }
 0x7dc   : > { %v8406_v39 = vpop.eup %6190 }
 0x7dd   : > { %v3248_v46 = vpack.c.bf16 %v8406_v39, %v8401_v29  ;;  %v8411_v35 = vpop.eup %6192 }
 0x7de   : > { %v2802_v20 = vpop.permute.xlu1 %2801  ;;  %v8415_v6 = vpop.eup %6194 }
 0x7df   : > { %2838 = vst.msk [vmem:[#allocation3 + $0x60] sm:$0xff] %vm2825_vm3, %v2802_v20 }
 0x7e1   : > { %3215 = vadd.xlane.f32.xlu1 %v8411_v35 }
 0x7e4   : > { %v2806_v38 = vpop.permute.xlu0 %2805 }
 0x7e5   : > { %2840 = vst.msk [vmem:[#allocation3 + $0x70] sm:$0xff] %vm2825_vm3, %v2806_v38 }
 0x7e9   : > { %3221 = vadd.xlane.f32.xlu1 %v8415_v6 }
 0x7f1   : > { %3227 = vadd.xlane.f32.xlu1 %v8396_v10 }
 0x7f9   : > { %3233 = vadd.xlane.f32.xlu1 %v8406_v39 }
 0x809   : > { %v3156_v8 = vpop.xlane.xlu1 %3155 }
 0x80a   : > { %v3175_v25 = vsub.f32 %v8346_v24, %v3156_v8 }
 0x80c   : > { %v3203_v51 = vmul.f32 1.442695, %v3175_v25 }
 0x80d   : > { %v3158_v61 = vpop.xlane.xlu2 %3157 }
 0x80e   : > { %6196 = vpow2.f32 %v3203_v51  ;;  %v3176_v16 = vsub.f32 %v8348_v28, %v3158_v61 }
 0x80f   : > { %v3160_v4 = vpop.xlane.xlu0 %3159 }
 0x810   : > { %v3205_v22 = vmul.f32 1.442695, %v3176_v16  ;;  %v3177_v21 = vsub.f32 %v8353_v40, %v3160_v4 }
 0x811   : > { %v3162_v12 = vpop.xlane.xlu1 %3161 }
 0x812   : > { %6198 = vpow2.f32 %v3205_v22  ;;  %v3207_v62 = vmul.f32 1.442695, %v3177_v21  ;;  %v3178_v48 = vsub.f32 %v8362_v23, %v3162_v12  ;;  %v9808_v23 = vld [vmem:[#allocation21_spill] sm:$0xff]  ;;  %v3244_v12 = vpack.c.bf16 %v8369_v26, %v8411_v35 }
 0x814   : > { %v8424_v44 = vpop.eup %6196  ;;  %6200 = vpow2.f32 %v3207_v62  ;;  %v3209_v59 = vmul.f32 1.442695, %v3178_v48  ;;  %v3245_v62 = vpack.c.bf16 %v8415_v6, %v8372_v34 }
 0x815   : > { %3235 = vadd.xlane.f32.xlu2 %v8424_v44  ;;  %v3212_v43 = vpop.xlane.xlu2 %3211 }
 0x816   : > { %6202 = vpow2.f32 %v3209_v59 }
 0x817   : > { %v3214_v27 = vpop.xlane.xlu0 %3213  ;;  %6204 = vrcp.f32 %v3212_v43 }
 0x818   : > { %v6199_v24 = vpop.eup %6198  ;;  %6206 = vrcp.f32 %v3214_v27 }
 0x819   : > { %3237 = vadd.xlane.f32.xlu0 %v6199_v24  ;;  %v3249_v28 = vpack.c.bf16 %v6199_v24, %v8424_v44 }
 0x81a   : > { %v6201_v33 = vpop.eup %6200 }
 0x81b   : > { %3239 = vadd.xlane.f32.xlu1 %v6201_v33 }
 0x81c   : > { %v6203_v9 = vpop.eup %6202 }
 0x81d   : > { %3241 = vadd.xlane.f32.xlu2 %v6203_v9  ;;  %v3250_v40 = vpack.c.bf16 %v6203_v9, %v6201_v33  ;;  %v3218_v49 = vpop.xlane.xlu2 %3217  ;;  %v6205_v60 = vpop.eup %6204 }
 0x81e   : > { %v6207_v26 = vpop.eup %6206 }
 0x81f   : > { %v3220_v58 = vpop.xlane.xlu0 %3219 }
 0x829   : > { %v2808_v55 = vpop.permute.xlu1 %2807 }
 0x82a   : > { %2841 = vst.msk [vmem:[#allocation3 + $0x78] sm:$0xff] %vm2825_vm3, %v2808_v55 }
 0x82d   : > { %3267 = vrot.lane.b32.xlu0 %v9808_v23, %s6599_s11 }
 0x834   : > { %3269 = vrot.lane.b32.xlu1 %v9809_v47, %s6599_s11 }
 0x835   : > { %3273 = vrot.lane.b32.xlu0 %v9810_v42, %s6599_s11  ;;  %3271 = vrot.lane.b32.xlu2 %v9811_v19, %s6599_s11 }
 0x83c   : > { %3279 = vrot.lane.b32.xlu1 %v9812_v5, %s6599_s11 }
 0x83d   : > { %3275 = vrot.lane.b32.xlu0 %v9813_v36, %s6599_s11  ;;  %3277 = vrot.lane.b32.xlu2 %v9814_v57, %s6599_s11  ;;  %v8447_v32 = vpop.xlane.xlu2 %3223 }
 0x843   : > { %v8445_v54 = vpop.xlane.xlu0 %3225 }
 0x845   : > { %3281 = vrot.lane.b32.xlu0 %v9815_v30, %s6599_s11  ;;  %v8455_v7 = vpop.xlane.xlu2 %3229 }
 0x84b   : > { %v8449_v45 = vpop.xlane.xlu0 %3231 }
 0x854   : > { %v3216_v37 = vpop.xlane.xlu1 %3215 }
 0x855   : > { %6208 = vrcp.f32 %v3216_v37 }
 0x856   : > { %6210 = vrcp.f32 %v3218_v49 }
 0x857   : > { %6212 = vrcp.f32 %v3220_v58 }
 0x85b   : > { %v6209_v56 = vpop.eup %6208 }
 0x85c   : > { %v3222_v3 = vpop.xlane.xlu1 %3221  ;;  %v6211_v10 = vpop.eup %6210 }
 0x85d   : > { %v6213_v39 = vpop.eup %6212  ;;  %6214 = vrcp.f32 %v3222_v3 }
 0x85e   : > { %6216 = vrcp.f32 %v8447_v32 }
 0x85f   : > { %6218 = vrcp.f32 %v8445_v54 }
 0x863   : > { %v6215_v6 = vpop.eup %6214 }
 0x864   : > { %v8451_v0 = vpop.xlane.xlu1 %3227  ;;  %v6217_v59 = vpop.eup %6216 }
 0x865   : > { %v6219_v33 = vpop.eup %6218  ;;  %6220 = vrcp.f32 %v8451_v0 }
 0x866   : > { %6222 = vrcp.f32 %v8455_v7 }
 0x867   : > { %6224 = vrcp.f32 %v8449_v45 }
 0x86b   : > { %v6221_v55 = vpop.eup %6220 }
 0x86c   : > { %v8457_v17 = vpop.xlane.xlu1 %3233  ;;  %v6223_v58 = vpop.eup %6222 }
 0x86d   : > { %v6225_v54 = vpop.eup %6224  ;;  %6226 = vrcp.f32 %v8457_v17 }
 0x873   : > { %v6227_v0 = vpop.eup %6226 }
 0x888   : > { %v8459_v20 = vpop.xlane.xlu2 %3235 }
 0x889   : > { %6228 = vrcp.f32 %v8459_v20 }
 0x88c   : > { %v8453_v2 = vpop.xlane.xlu0 %3237 }
 0x88d   : > { %6230 = vrcp.f32 %v8453_v2  ;;  %v9819_v2 = vld [vmem:[#allocation25_spill] sm:$0xff] }
 0x88e   : > { %v8461_v8 = vpop.xlane.xlu1 %3239 }
 0x88f   : > { %v6229_v17 = vpop.eup %6228  ;;  %6232 = vrcp.f32 %v8461_v8  ;;  %v9823_v8 = vld [vmem:[#allocation19_spill] sm:$0xff] }
 0x890   : > { %v8463_v25 = vpop.xlane.xlu2 %3241 }
 0x891   : > { %6234 = vrcp.f32 %v8463_v25  ;;  %v9825_v25 = vld [vmem:[#allocation17_spill] sm:$0xff] }
 0x893   : > { %v6231_v20 = vpop.eup %6230 }
 0x898   : > { %v3272_v16 = vpop.permute.xlu2 %3271 }
 0x89f   : > { %v3268_v41 = vpop.permute.xlu0 %3267 }
 0x8a0   : > { %v3278_v21 = vpop.permute.xlu2 %3277 }
 0x8a6   : > { %v3270_v61 = vpop.permute.xlu1 %3269 }
 0x8a7   : > { %v3274_v38 = vpop.permute.xlu0 %3273 }
 0x8ae   : > { %v3280_v22 = vpop.permute.xlu1 %3279 }
 0x8af   : > { %v3276_v51 = vpop.permute.xlu0 %3275 }
 0x8b7   : > { %v3282_v4 = vpop.permute.xlu0 %3281 }
 0x8b8   : > { %3291 = vmatpush.bf16.msrb.mxu0 %v3282_v4 }
 0x8bc   : > { %3292 = vmatpush.bf16.msrb.mxu0 %v3280_v22  ;;  %v9817_v22 = vld [vmem:[#allocation27_spill] sm:$0xff] }
 0x8c0   : > { %3293 = vmatpush.bf16.msrb.mxu0 %v3278_v21  ;;  %v9818_v21 = vld [vmem:[#allocation30_spill] sm:$0xff] }
 0x8c4   : > { %3294 = vmatpush.bf16.msrb.mxu0 %v3276_v51 }
 0x8c8   : > { %3295 = vmatpush.bf16.msrb.mxu0 %v3274_v38 }
 0x8cc   : > { %3296 = vmatpush.bf16.msrb.mxu0 %v3272_v16 }
 0x8d0   : > { %3297 = vmatpush.bf16.msrb.mxu0 %v3270_v61  ;;  %v9816_v61 = vld [vmem:[#allocation33_spill] sm:$0xff] }
 0x8d4   : > { %3298 = vmatpush.bf16.msrb.mxu0 %v3268_v41 }
 0x8d7   : > { %3299 = vmatmul.bf16.vlgmr.msrb.gmra.mxu0 %v3243_v11 }
 0x8e7   : > { %3304 = vmatmul.bf16.gmra.mxu0 %v3244_v12  ;;  %v9820_v12 = vld [vmem:[#allocation23_spill] sm:$0xff] }
 0x8f7   : > { %3309 = vmatmul.bf16.gmra.mxu0 %v3245_v62 }
 0x907   : > { %3314 = vmatmul.bf16.gmra.mxu0 %v3246_v1 }
 0x917   : > { %3319 = vmatmul.bf16.gmra.mxu0 %v3247_v50 }
 0x927   : > { %3324 = vmatmul.bf16.gmra.mxu0 %v3248_v46 }
 0x937   : > { %3329 = vmatmul.bf16.gmra.mxu0 %v3249_v28 }
 0x947   : > { %3334 = vmatmul.bf16.gmra.mxu0 %v3250_v40 }
 0x954   : > { %v3300_v63 = vpop.f32.mrf.mxu0 }
 0x955   : > { %v3356_v11 = vmul.f32 %v6205_v60, %v3300_v63  ;;  %v9821_v60 = vld [vmem:[#allocation26_spill] sm:$0xff] }
 0x957   : > { %3388 = vrot.lane.b32.xlu2 %v3356_v11, %s6599_s11  ;;  %v6233_v11 = vpop.eup %6232 }
 0x95c   : > { %v3302_v34 = vpop.f32.mrf.mxu0 }
 0x95d   : > { %v3357_v13 = vmul.f32 %v6207_v26, %v3302_v34  ;;  %v9822_v34 = vld [vmem:[#allocation22_spill] sm:$0xff] }
 0x95f   : > { %3390 = vrot.lane.b32.xlu1 %v3357_v13, %s6599_s11 }
 0x964   : > { %v3305_v1 = vpop.f32.mrf.mxu0 }
 0x965   : > { %v3358_v53 = vmul.f32 %v6209_v56, %v3305_v1  ;;  %v6235_v1 = vpop.eup %6234 }
 0x967   : > { %3392 = vrot.lane.b32.xlu0 %v3358_v53, %s6599_s11 }
 0x96c   : > { %v3307_v50 = vpop.f32.mrf.mxu0 }
 0x96d   : > { %v3359_v29 = vmul.f32 %v6211_v10, %v3307_v50  ;;  %v9824_v10 = vld [vmem:[#allocation16_spill] sm:$0xff] }
 0x96f   : > { %3394 = vrot.lane.b32.xlu2 %v3359_v29, %s6599_s11  ;;  %v9826_v29 = vld [vmem:[#allocation18_spill] sm:$0xff] }
 0x974   : > { %v3310_v46 = vpop.f32.mrf.mxu0 }
 0x975   : > { %v3360_v35 = vmul.f32 %v6213_v39, %v3310_v46  ;;  %v9827_v39 = vld [vmem:[#allocation15_spill] sm:$0xff]  ;;  %v9828_v46 = vld [vmem:[#allocation14_spill] sm:$0xff] }
 0x977   : > { %3396 = vrot.lane.b32.xlu1 %v3360_v35, %s6599_s11 }
 0x97c   : > { %v3312_v48 = vpop.f32.mrf.mxu0 }
 0x97d   : > { %v3361_v44 = vmul.f32 %v6215_v6, %v3312_v48  ;;  %v9829_v6 = vld [vmem:[#allocation32_spill] sm:$0xff] }
 0x97e   : > { %v9830_v48 = vld [vmem:[#allocation24_spill] sm:$0xff] }
 0x97f   : > { %3398 = vrot.lane.b32.xlu0 %v3361_v44, %s6599_s11  ;;  %v9831_v44 = vld [vmem:[#allocation20_spill] sm:$0xff] }
 0x984   : > { %v3315_v24 = vpop.f32.mrf.mxu0 }
 0x985   : > { %v3362_v28 = vmul.f32 %v6217_v59, %v3315_v24  ;;  %v9832_v24 = vld [vmem:[#allocation44_spill] sm:$0xff] }
 0x987   : > { %3400 = vrot.lane.b32.xlu2 %v3362_v28, %s6599_s11  ;;  %v9833_v28 = vld [vmem:[#allocation36_spill] sm:$0xff] }
 0x98c   : > { %v3317_v9 = vpop.f32.mrf.mxu0 }
 0x98d   : > { %v3363_v40 = vmul.f32 %v6219_v33, %v3317_v9  ;;  %v9834_v33 = vld [vmem:[#allocation28_spill] sm:$0xff] }
 0x98f   : > { %3402 = vrot.lane.b32.xlu1 %v3363_v40, %s6599_s11  ;;  %v9835_v40 = vld [vmem:[#allocation66_spill] sm:$0xff] }
 0x994   : > { %v3320_v27 = vpop.f32.mrf.mxu0 }
 0x995   : > { %v3364_v43 = vmul.f32 %v6221_v55, %v3320_v27  ;;  %v9836_v55 = vld [vmem:[#allocation50_spill] sm:$0xff]  ;;  %v9837_v27 = vld [vmem:[#allocation49_spill] sm:$0xff] }
 0x997   : > { %3404 = vrot.lane.b32.xlu0 %v3364_v43, %s6599_s11 }
 0x99c   : > { %v3322_v37 = vpop.f32.mrf.mxu0 }
 0x99d   : > { %v3365_v49 = vmul.f32 %v6223_v58, %v3322_v37  ;;  %v9838_v58 = vld [vmem:[#allocation76_spill] sm:$0xff]  ;;  %v9839_v37 = vld [vmem:[#allocation67_spill] sm:$0xff] }
 0x99f   : > { %3611 = vrot.lane.b32.xlu0 %v9797_v52, %s6602_s8  ;;  %3406 = vrot.lane.b32.xlu2 %v3365_v49, %s6599_s11  ;;  %v9840_v49 = vld [vmem:[#allocation71_spill] sm:$0xff] }
 0x9a4   : > { %v3325_v3 = vpop.f32.mrf.mxu0 }
 0x9a5   : > { %v3366_v32 = vmul.f32 %v6225_v54, %v3325_v3 }
 0x9a7   : > { %3607 = vrot.lane.b32.xlu0 %v9795_v18, %s6602_s8  ;;  %3609 = vrot.lane.b32.xlu2 %v9794_v31, %s6602_s8 }
 0x9a8   : > { %3408 = vrot.lane.b32.xlu1 %v3366_v32, %s6599_s11  ;;  %v9841_v32 = vld [vmem:[#allocation80_spill] sm:$0xff] }
 0x9ac   : > { %v3327_v45 = vpop.f32.mrf.mxu0 }
 0x9ad   : > { %v3367_v7 = vmul.f32 %v6227_v0, %v3327_v45  ;;  %v9842_v0 = vld [vmem:[#allocation79_spill] sm:$0xff] }
 0x9af   : > { %3605 = vrot.lane.b32.xlu2 %v9796_v15, %s6602_s8 }
 0x9b0   : > { %3410 = vrot.lane.b32.xlu1 %v3367_v7, %s6599_s11 }
 0x9b1   : > { %v3389_v41 = vpop.permute.xlu2 %3388 }
 0x9b2   : > { %3437 = vst.msk [vmem:[#allocation3] sm:$0xff] %vm3436_vm4, %v3389_v41 }
 0x9b4   : > { %v3330_v38 = vpop.f32.mrf.mxu0 }
 0x9b5   : > { %v3368_v51 = vmul.f32 %v6229_v17, %v3330_v38 }
 0x9b7   : > { %3601 = vrot.lane.b32.xlu2 %v9816_v61, %s6602_s8  ;;  %3412 = vrot.lane.b32.xlu0 %v3368_v51, %s6599_s11 }
 0x9b8   : > { %3603 = vrot.lane.b32.xlu1 %v9793_v14, %s6602_s8 }
 0x9bc   : > { %v3332_v16 = vpop.f32.mrf.mxu0 }
 0x9bd   : > { %v3369_v4 = vmul.f32 %v6231_v20, %v3332_v16 }
 0x9bf   : > { %3597 = vrot.lane.b32.xlu0 %v9817_v22, %s6602_s8  ;;  %3414 = vrot.lane.b32.xlu2 %v3369_v4, %s6599_s11 }
 0x9c0   : > { %3599 = vrot.lane.b32.xlu1 %v9818_v21, %s6602_s8 }
 0x9c4   : > { %v3335_v62 = vpop.f32.mrf.mxu0 }
 0x9c5   : > { %v3370_v26 = vmul.f32 %v6233_v11, %v3335_v62 }
 0x9c7   : > { %3593 = vrot.lane.b32.xlu0 %v9819_v2, %s6602_s8  ;;  %3591 = vrot.lane.b32.xlu2 %v9820_v12, %s6602_s8 }
 0x9c8   : > { %3595 = vrot.lane.b32.xlu1 %v9821_v60, %s6602_s8 }
 0x9c9   : > { %v3395_v63 = vpop.permute.xlu2 %3394 }
 0x9ca   : > { %3440 = vst.msk [vmem:[#allocation3 + $0x18] sm:$0xff] %vm3436_vm4, %v3395_v63 }
 0x9cc   : > { %v3337_v56 = vpop.f32.mrf.mxu0 }
 0x9cd   : > { %v3371_v53 = vmul.f32 %v6235_v1, %v3337_v56 }
 0x9cf   : > { %3589 = vrot.lane.b32.xlu0 %v9822_v34, %s6602_s8  ;;  %3587 = vrot.lane.b32.xlu2 %v9823_v8, %s6602_s8 }
 0x9d0   : > { %3416 = vrot.lane.b32.xlu1 %v3370_v26, %s6599_s11 }
 0x9d1   : > { %v3391_v13 = vpop.permute.xlu1 %3390 }
 0x9d2   : > { %3438 = vst.msk [vmem:[#allocation3 + $0x8] sm:$0xff] %vm3436_vm4, %v3391_v13 }
 0x9d7   : > { %3583 = vrot.lane.b32.xlu2 %v9824_v10, %s6602_s8  ;;  %3418 = vrot.lane.b32.xlu0 %v3371_v53, %s6599_s11 }
 0x9d8   : > { %3585 = vrot.lane.b32.xlu1 %v9825_v25, %s6602_s8 }
 0x9d9   : > { %v3393_v50 = vpop.permute.xlu0 %3392 }
 0x9da   : > { %3439 = vst.msk [vmem:[#allocation3 + $0x10] sm:$0xff] %vm3436_vm4, %v3393_v50 }
 0x9df   : > { %3535 = vrot.lane.b32.xlu2 %v9826_v29, %s6602_s8  ;;  %3533 = vrot.lane.b32.xlu0 %v9827_v39, %s6602_s8 }
 0x9e0   : > { %3581 = vrot.lane.b32.xlu1 %v9828_v46, %s6602_s8 }
 0x9e1   : > { %v3401_v35 = vpop.permute.xlu2 %3400 }
 0x9e2   : > { %3443 = vst.msk [vmem:[#allocation3 + $0x30] sm:$0xff] %vm3436_vm4, %v3401_v35 }
 0x9e7   : > { %3541 = vrot.lane.b32.xlu2 %v9829_v6, %s6602_s8  ;;  %3539 = vrot.lane.b32.xlu0 %v9830_v48, %s6602_s8 }
 0x9e8   : > { %3537 = vrot.lane.b32.xlu1 %v9831_v44, %s6602_s8 }
 0x9e9   : > { %v3397_v59 = vpop.permute.xlu1 %3396 }
 0x9ea   : > { %3441 = vst.msk [vmem:[#allocation3 + $0x20] sm:$0xff] %vm3436_vm4, %v3397_v59 }
 0x9ef   : > { %3547 = vrot.lane.b32.xlu2 %v9832_v24, %s6602_s8  ;;  %3545 = vrot.lane.b32.xlu0 %v9833_v28, %s6602_s8 }
 0x9f0   : > { %3543 = vrot.lane.b32.xlu1 %v9834_v33, %s6602_s8 }
 0x9f1   : > { %v3399_v9 = vpop.permute.xlu0 %3398 }
 0x9f2   : > { %3442 = vst.msk [vmem:[#allocation3 + $0x28] sm:$0xff] %vm3436_vm4, %v3399_v9 }
 0x9f7   : > { %3553 = vrot.lane.b32.xlu2 %v9835_v40, %s6602_s8  ;;  %3551 = vrot.lane.b32.xlu0 %v9836_v55, %s6602_s8 }
 0x9f8   : > { %3549 = vrot.lane.b32.xlu1 %v9837_v27, %s6602_s8 }
 0x9f9   : > { %v3407_v43 = vpop.permute.xlu2 %3406 }
 0x9fa   : > { %3446 = vst.msk [vmem:[#allocation3 + $0x48] sm:$0xff] %vm3436_vm4, %v3407_v43 }
 0x9ff   : > { %3559 = vrot.lane.b32.xlu2 %v9838_v58, %s6602_s8  ;;  %3557 = vrot.lane.b32.xlu0 %v9839_v37, %s6602_s8 }
 0xa00   : > { %3555 = vrot.lane.b32.xlu1 %v9840_v49, %s6602_s8 }
 0xa01   : > { %v3403_v54 = vpop.permute.xlu1 %3402  ;;  %v3610_v3 = vpop.permute.xlu2 %3609 }
 0xa02   : > { %3444 = vst.msk [vmem:[#allocation3 + $0x38] sm:$0xff] %vm3436_vm4, %v3403_v54 }
 0xa07   : > { %3563 = vrot.lane.b32.xlu0 %v9841_v32, %s6602_s8 }
 0xa08   : > { %3561 = vrot.lane.b32.xlu1 %v9842_v0, %s6602_s8 }
 0xa09   : > { %v3405_v45 = vpop.permute.xlu0 %3404  ;;  %v3606_v7 = vpop.permute.xlu2 %3605 }
 0xa0a   : > { %3445 = vst.msk [vmem:[#allocation3 + $0x40] sm:$0xff] %vm3436_vm4, %v3405_v45 }
 0xa0f   : > { %4222 = vrot.lane.b32.xlu0 %v9797_v52, %s6601_s7 }
 0xa11   : > { %v3612_v41 = vpop.permute.xlu0 %3611  ;;  %v3602_v17 = vpop.permute.xlu2 %3601 }
 0xa12   : > { %5684 = vmatpush.xpose.msk.msrb.mxu1 %vm622_vm0, %v3612_v41 }
 0xa16   : > { %5685 = vmatpush.xpose.msk.msrb.mxu1 %vm622_vm0, %v3610_v3 }
 0xa17   : > { %4833 = vrot.lane.b32.xlu0 %v9797_v52, %s6600_s6 }
 0xa19   : > { %v3608_v38 = vpop.permute.xlu0 %3607  ;;  %v3415_v51 = vpop.permute.xlu2 %3414 }
 0xa1a   : > { %v3409_v20 = vpop.permute.xlu1 %3408  ;;  %3450 = vst.msk [vmem:[#allocation3 + $0x68] sm:$0xff] %vm3436_vm4, %v3415_v51  ;;  %5686 = vmatpush.xpose.msk.msrb.mxu1 %vm622_vm0, %v3608_v38 }
 0xa1b   : > { %3447 = vst.msk [vmem:[#allocation3 + $0x50] sm:$0xff] %vm3436_vm4, %v3409_v20 }
 0xa1e   : > { %5687 = vmatpush.xpose.msk.msrb.mxu1 %vm622_vm0, %v3606_v7 }
 0xa1f   : > { %4220 = vrot.lane.b32.xlu0 %v9794_v31, %s6601_s7 }
 0xa21   : > { %v3592_v26 = vpop.permute.xlu2 %3591 }
 0xa22   : > { %v3411_v16 = vpop.permute.xlu1 %3410 }
 0xa23   : > { %3448 = vst.msk [vmem:[#allocation3 + $0x58] sm:$0xff] %vm3436_vm4, %v3411_v16 }
 0xa27   : > { %4831 = vrot.lane.b32.xlu0 %v9794_v31, %s6600_s6 }
 0xa29   : > { %v3413_v52 = vpop.permute.xlu0 %3412  ;;  %v3588_v1 = vpop.permute.xlu2 %3587 }
 0xa2a   : > { %v3604_v4 = vpop.permute.xlu1 %3603  ;;  %3449 = vst.msk [vmem:[#allocation3 + $0x60] sm:$0xff] %vm3436_vm4, %v3413_v52 }
 0xa2b   : > { %5688 = vmatpush.xpose.msk.msrb.mxu1 %vm622_vm0, %v3604_v4 }
 0xa2f   : > { %5689 = vmatpush.xpose.msk.msrb.mxu1 %vm622_vm0, %v3602_v17  ;;  %4218 = vrot.lane.b32.xlu0 %v9795_v18, %s6601_s7 }
 0xa31   : > { %v3598_v62 = vpop.permute.xlu0 %3597  ;;  %v3584_v59 = vpop.permute.xlu2 %3583 }
 0xa32   : > { %v3600_v63 = vpop.permute.xlu1 %3599 }
 0xa33   : > { %5690 = vmatpush.xpose.msk.msrb.mxu1 %vm622_vm0, %v3600_v63 }
 0xa37   : > { %5691 = vmatpush.xpose.msk.msrb.mxu1 %vm622_vm0, %v3598_v62  ;;  %4827 = vrot.lane.b32.xlu0 %v9796_v15, %s6600_s6 }
 0xa39   : > { %v3594_v31 = vpop.permute.xlu0 %3593  ;;  %v3536_v43 = vpop.permute.xlu2 %3535 }
 0xa3a   : > { %v3596_v11 = vpop.permute.xlu1 %3595 }
 0xa3b   : > { %5692 = vmatpush.xpose.msk.msrb.mxu1 %vm622_vm0, %v3596_v11 }
 0xa3f   : > { %5693 = vmatpush.xpose.msk.msrb.mxu1 %vm622_vm0, %v3594_v31  ;;  %4214 = vrot.lane.b32.xlu0 %v9793_v14, %s6601_s7 }
 0xa41   : > { %v3590_v13 = vpop.permute.xlu0 %3589  ;;  %v3542_v41 = vpop.permute.xlu2 %3541 }
 0xa42   : > { %v3417_v56 = vpop.permute.xlu1 %3416 }
 0xa43   : > { %3451 = vst.msk [vmem:[#allocation3 + $0x70] sm:$0xff] %vm3436_vm4, %v3417_v56  ;;  %5694 = vmatpush.xpose.msk.msrb.mxu1 %vm622_vm0, %v3592_v26 }
 0xa47   : > { %5695 = vmatpush.xpose.msk.msrb.mxu1 %vm622_vm0, %v3590_v13  ;;  %4825 = vrot.lane.b32.xlu0 %v9793_v14, %s6600_s6 }
 0xa49   : > { %v3419_v53 = vpop.permute.xlu0 %3418  ;;  %v3548_v16 = vpop.permute.xlu2 %3547 }
 0xa4a   : > { %3452 = vst.msk [vmem:[#allocation3 + $0x78] sm:$0xff] %vm3436_vm4, %v3419_v53  ;;  %v3586_v50 = vpop.permute.xlu1 %3585 }
 0xa4b   : > { %5696 = vmatpush.xpose.msk.msrb.mxu1 %vm622_vm0, %v3588_v1 }
 0xa4f   : > { %5697 = vmatpush.xpose.msk.msrb.mxu1 %vm622_vm0, %v3586_v50  ;;  %4210 = vrot.lane.b32.xlu0 %v9818_v21, %s6601_s7 }
 0xa51   : > { %v3534_v35 = vpop.permute.xlu0 %3533  ;;  %v3554_v31 = vpop.permute.xlu2 %3553 }
 0xa52   : > { %v3582_v9 = vpop.permute.xlu1 %3581 }
 0xa53   : > { %5698 = vmatpush.xpose.msk.msrb.mxu1 %vm622_vm0, %v3584_v59 }
 0xa57   : > { %5699 = vmatpush.xpose.msk.msrb.mxu1 %vm622_vm0, %v3582_v9  ;;  %4819 = vrot.lane.b32.xlu0 %v9817_v22, %s6600_s6 }
 0xa59   : > { %v3540_v14 = vpop.permute.xlu0 %3539  ;;  %v3560_v26 = vpop.permute.xlu2 %3559 }
 0xa5a   : > { %5700 = vmatmul.msk.f32.vlgmr.msrb.gmra.mxu1 %vm622_vm0, %v3534_v35  ;;  %v3538_v3 = vpop.permute.xlu1 %3537 }
 0xa5f   : > { %4204 = vrot.lane.b32.xlu0 %v9819_v2, %s6601_s7 }
 0xa61   : > { %v3546_v54 = vpop.permute.xlu0 %3545 }
 0xa62   : > { %5701 = vmatmul.msk.f32.gmra.mxu1 %vm622_vm0, %v3536_v43  ;;  %v3544_v38 = vpop.permute.xlu1 %3543 }
 0xa67   : > { %4813 = vrot.lane.b32.xlu0 %v9820_v12, %s6600_s6 }
 0xa69   : > { %v3552_v45 = vpop.permute.xlu0 %3551 }
 0xa6a   : > { %5702 = vmatmul.msk.f32.gmra.mxu1 %vm622_vm0, %v3538_v3  ;;  %v3550_v4 = vpop.permute.xlu1 %3549 }
 0xa6f   : > { %4198 = vrot.lane.b32.xlu0 %v9823_v8, %s6601_s7 }
 0xa71   : > { %v3558_v7 = vpop.permute.xlu0 %3557 }
 0xa72   : > { %5703 = vmatmul.msk.f32.gmra.mxu1 %vm622_vm0, %v3540_v14  ;;  %v3556_v11 = vpop.permute.xlu1 %3555 }
 0xa77   : > { %4807 = vrot.lane.b32.xlu0 %v9825_v25, %s6600_s6 }
 0xa79   : > { %v3564_v17 = vpop.permute.xlu0 %3563 }
 0xa7a   : > { %5704 = vmatmul.msk.f32.gmra.mxu1 %vm622_vm0, %v3542_v41  ;;  %v3562_v13 = vpop.permute.xlu1 %3561 }
 0xa7f   : > { %4192 = vrot.lane.b32.xlu0 %v9828_v46, %s6601_s7 }
 0xa81   : > { %v4223_v51 = vpop.permute.xlu0 %4222 }
 0xa82   : > { %5705 = vmatmul.msk.f32.gmra.mxu1 %vm622_vm0, %v3544_v38  ;;  %5716 = vmatpush.xpose.msk.msrb.mxu3 %vm622_vm0, %v4223_v51 }
 0xa87   : > { %4755 = vrot.lane.b32.xlu0 %v9827_v39, %s6600_s6 }
 0xa89   : > { %v4834_v20 = vpop.permute.xlu0 %4833 }
 0xa8a   : > { %5706 = vmatmul.msk.f32.gmra.mxu1 %vm622_vm0, %v3546_v54 }
 0xa8b   : > { %5748 = vmatpush.xpose.msk.msra.mxu1 %vm622_vm0, %v4834_v20 }
 0xa8f   : > { %4148 = vrot.lane.b32.xlu0 %v9831_v44, %s6601_s7 }
 0xa91   : > { %v4221_v52 = vpop.permute.xlu0 %4220 }
 0xa92   : > { %5707 = vmatmul.msk.f32.gmra.mxu1 %vm622_vm0, %v3548_v16  ;;  %5717 = vmatpush.xpose.msk.msrb.mxu3 %vm622_vm0, %v4221_v52 }
 0xa97   : > { %4761 = vrot.lane.b32.xlu0 %v9830_v48, %s6600_s6 }
 0xa99   : > { %v4832_v62 = vpop.permute.xlu0 %4831 }
 0xa9a   : > { %5708 = vmatmul.msk.f32.gmra.mxu1 %vm622_vm0, %v3550_v4 }
 0xa9b   : > { %5749 = vmatpush.xpose.msk.msra.mxu1 %vm622_vm0, %v4832_v62 }
 0xa9f   : > { %3890 = vrot.lane.b32.xlu0 %v9812_v5, %s6602_s8 }
 0xaa1   : > { %v4219_v63 = vpop.permute.xlu0 %4218 }
 0xaa2   : > { %5709 = vmatmul.msk.f32.gmra.mxu1 %vm622_vm0, %v3552_v45  ;;  %5718 = vmatpush.xpose.msk.msrb.mxu3 %vm622_vm0, %v4219_v63 }
 0xaa7   : > { %4154 = vrot.lane.b32.xlu0 %v9834_v33, %s6601_s7 }
 0xaa9   : > { %v4828_v53 = vpop.permute.xlu0 %4827 }
 0xaaa   : > { %5710 = vmatmul.msk.f32.gmra.mxu1 %vm622_vm0, %v3554_v31 }
 0xaaf   : > { %3884 = vrot.lane.b32.xlu0 %v9810_v42, %s6602_s8 }
 0xab1   : > { %v8678_v35 = vpop.permute.xlu0 %4214 }
 0xab2   : > { %5711 = vmatmul.msk.f32.gmra.mxu1 %vm622_vm0, %v3556_v11 }
 0xab7   : > { %4767 = vrot.lane.b32.xlu0 %v9833_v28, %s6600_s6 }
 0xab9   : > { %v4826_v9 = vpop.permute.xlu0 %4825 }
 0xaba   : > { %5712 = vmatmul.msk.f32.gmra.mxu1 %vm622_vm0, %v3558_v7 }
 0xabf   : > { %3878 = vrot.lane.b32.xlu0 %v9808_v23, %s6602_s8 }
 0xac1   : > { %v8689_v14 = vpop.permute.xlu0 %4210 }
 0xac2   : > { %5713 = vmatmul.msk.f32.gmra.mxu1 %vm622_vm0, %v3560_v26 }
 0xaca   : > { %5714 = vmatmul.msk.f32.gmra.mxu1 %vm622_vm0, %v3562_v13 }
 0xad2   : > { %5715 = vmatmul.msk.f32.gmra.mxu1 %vm622_vm0, %v3564_v17 }
 0xad7   : > { %v8670_v56 = vpop.f32.mrf.mxu1 }
 0xad8   : > { %3742 = vmax.xlane.f32.xlu2 %v8670_v56 }
 0xadf   : > { %v8673_v1 = vpop.f32.mrf.mxu1 }
 0xae0   : > { %3744 = vmax.xlane.f32.xlu1 %v8673_v1 }
 0xae7   : > { %v8676_v50 = vpop.f32.mrf.mxu1 }
 0xaef   : > { %v8680_v59 = vpop.f32.mrf.mxu1 }
 0xaf0   : > { %4829 = vrot.lane.b32.xlu2 %v9795_v18, %s6600_s6  ;;  %3748 = vmax.xlane.f32.xlu0 %v8680_v59  ;;  %v8697_v18 = vpop.permute.xlu0 %4819 }
 0xaf8   : > { %4212 = vrot.lane.b32.xlu2 %v9816_v61, %s6601_s7 }
 0xaf9   : > { %4216 = vrot.lane.b32.xlu1 %v9796_v15, %s6601_s7  ;;  %v8709_v15 = vpop.permute.xlu0 %4204 }
 0xb00   : > { %4821 = vrot.lane.b32.xlu2 %v9818_v21, %s6600_s6  ;;  %v8733_v21 = vpop.f32.mrf.mxu1 }
 0xb01   : > { %4823 = vrot.lane.b32.xlu1 %v9816_v61, %s6600_s6  ;;  %v8717_v61 = vpop.permute.xlu0 %4813 }
 0xb04   : > { %4164 = vrot.lane.b32.xlu0 %v9835_v40, %s6601_s7 }
 0xb08   : > { %4206 = vrot.lane.b32.xlu2 %v9821_v60, %s6601_s7 }
 0xb09   : > { %4208 = vrot.lane.b32.xlu1 %v9817_v22, %s6601_s7  ;;  %v8727_v22 = vpop.permute.xlu0 %4198 }
 0xb0c   : > { %4166 = vrot.lane.b32.xlu0 %v9840_v49, %s6601_s7 }
 0xb10   : > { %4815 = vrot.lane.b32.xlu2 %v9819_v2, %s6600_s6 }
 0xb11   : > { %4817 = vrot.lane.b32.xlu1 %v9821_v60, %s6600_s6  ;;  %v8737_v2 = vpop.permute.xlu0 %4807 }
 0xb14   : > { %4777 = vrot.lane.b32.xlu0 %v9840_v49, %s6600_s6 }
 0xb18   : > { %4200 = vrot.lane.b32.xlu2 %v9822_v34, %s6601_s7 }
 0xb19   : > { %4202 = vrot.lane.b32.xlu1 %v9820_v12, %s6601_s7  ;;  %v8743_v12 = vpop.f32.mrf.mxu1  ;;  %v8749_v60 = vpop.permute.xlu0 %4192 }
 0xb1c   : > { %4168 = vrot.lane.b32.xlu0 %v9839_v37, %s6601_s7 }
 0xb20   : > { %4809 = vrot.lane.b32.xlu2 %v9823_v8, %s6600_s6 }
 0xb21   : > { %4811 = vrot.lane.b32.xlu1 %v9822_v34, %s6600_s6  ;;  %v8751_v34 = vpop.f32.mrf.mxu1  ;;  %v8757_v8 = vpop.permute.xlu0 %4755 }
 0xb24   : > { %4170 = vrot.lane.b32.xlu0 %v9838_v58, %s6601_s7 }
 0xb28   : > { %4194 = vrot.lane.b32.xlu2 %v9824_v10, %s6601_s7 }
 0xb29   : > { %4196 = vrot.lane.b32.xlu1 %v9825_v25, %s6601_s7 }
 0xb2c   : > { %4781 = vrot.lane.b32.xlu0 %v9838_v58, %s6600_s6 }
 0xb30   : > { %4803 = vrot.lane.b32.xlu2 %v9828_v46, %s6600_s6 }
 0xb31   : > { %4805 = vrot.lane.b32.xlu1 %v9824_v10, %s6600_s6  ;;  %v8763_v10 = vpop.f32.mrf.mxu1 }
 0xb38   : > { %4146 = vrot.lane.b32.xlu2 %v9826_v29, %s6601_s7 }
 0xb39   : > { %4144 = vrot.lane.b32.xlu1 %v9827_v39, %s6601_s7  ;;  %v8767_v39 = vpop.permute.xlu0 %4148  ;;  %v8773_v46 = vpop.f32.mrf.mxu1 }
 0xb40   : > { %4759 = vrot.lane.b32.xlu2 %v9831_v44, %s6600_s6 }
 0xb41   : > { %4757 = vrot.lane.b32.xlu1 %v9826_v29, %s6600_s6 }
 0xb48   : > { %3892 = vrot.lane.b32.xlu2 %v9815_v30, %s6602_s8 }
 0xb49   : > { %4150 = vrot.lane.b32.xlu1 %v9830_v48, %s6601_s7  ;;  %v8777_v48 = vpop.permute.xlu0 %4761 }
 0xb4b   : > { %v8765_v25 = vpop.xlane.xlu2 %3742 }
 0xb50   : > { %4763 = vrot.lane.b32.xlu2 %v9829_v6, %s6600_s6 }
 0xb51   : > { %4152 = vrot.lane.b32.xlu1 %v9829_v6, %s6601_s7  ;;  %v8785_v6 = vpop.f32.mrf.mxu1  ;;  %v8791_v58 = vpop.permute.xlu0 %3890 }
 0xb53   : > { %v4830_v29 = vpop.permute.xlu2 %4829  ;;  %v8793_v49 = vpop.xlane.xlu1 %3744 }
 0xb54   : > { %5750 = vmatpush.xpose.msk.msra.mxu1 %vm622_vm0, %v4830_v29 }
 0xb56   : > { %3758 = vmax.xlane.f32.xlu0 %v8773_v46 }
 0xb58   : > { %3886 = vrot.lane.b32.xlu2 %v9813_v36, %s6602_s8  ;;  %5751 = vmatpush.xpose.msk.msra.mxu1 %vm622_vm0, %v4828_v53 }
 0xb59   : > { %3888 = vrot.lane.b32.xlu1 %v9814_v57, %s6602_s8  ;;  %v8795_v54 = vpop.f32.mrf.mxu1  ;;  %v8803_v45 = vpop.permute.xlu0 %4154 }
 0xb5b   : > { %v4213_v44 = vpop.permute.xlu2 %4212 }
 0xb5c   : > { %5752 = vmatpush.xpose.msk.msra.mxu1 %vm622_vm0, %v4826_v9 }
 0xb60   : > { %4156 = vrot.lane.b32.xlu2 %v9833_v28, %s6601_s7 }
 0xb61   : > { %4765 = vrot.lane.b32.xlu1 %v9834_v33, %s6600_s6  ;;  %v8812_v33 = vpop.f32.mrf.mxu1  ;;  %v8818_v17 = vpop.permute.xlu0 %3884 }
 0xb63   : > { %v4822_v43 = vpop.permute.xlu2 %4821 }
 0xb68   : > { %3880 = vrot.lane.b32.xlu2 %v9809_v47, %s6602_s8 }
 0xb69   : > { %3882 = vrot.lane.b32.xlu1 %v9811_v19, %s6602_s8  ;;  %v8825_v51 = vpop.f32.mrf.mxu1  ;;  %v8830_v20 = vpop.permute.xlu0 %4767 }
 0xb6a   : > { %4174 = vrot.lane.b32.xlu0 %v9841_v32, %s6601_s7 }
 0xb6b   : > { %v4207_v28 = vpop.permute.xlu2 %4206  ;;  %v4217_v3 = vpop.permute.xlu1 %4216 }
 0xb6c   : > { %5719 = vmatpush.xpose.msk.msrb.mxu3 %vm622_vm0, %v4217_v3 }
 0xb70   : > { %4769 = vrot.lane.b32.xlu2 %v9832_v24, %s6600_s6  ;;  %5720 = vmatpush.xpose.msk.msrb.mxu3 %vm622_vm0, %v8678_v35 }
 0xb71   : > { %4158 = vrot.lane.b32.xlu1 %v9832_v24, %s6601_s7  ;;  %v8838_v4 = vpop.f32.mrf.mxu1  ;;  %v8843_v62 = vpop.permute.xlu0 %3878 }
 0xb72   : > { %5114 = vrot.lane.b32.xlu0 %v9815_v30, %s6600_s6 }
 0xb73   : > { %v4816_v7 = vpop.permute.xlu2 %4815  ;;  %v4824_v41 = vpop.permute.xlu1 %4823 }
 0xb74   : > { %5721 = vmatpush.xpose.msk.msrb.mxu3 %vm622_vm0, %v4213_v44  ;;  %5753 = vmatpush.xpose.msk.msra.mxu1 %vm622_vm0, %v4824_v41 }
 0xb78   : > { %4160 = vrot.lane.b32.xlu2 %v9837_v27, %s6601_s7  ;;  %5722 = vmatpush.xpose.msk.msrb.mxu3 %vm622_vm0, %v8689_v14 }
 0xb79   : > { %5754 = vmatpush.xpose.msk.msra.mxu1 %vm622_vm0, %v4822_v43  ;;  %v8848_v31 = vpop.f32.mrf.mxu1  ;;  %v8853_v11 = vpop.xlane.xlu0 %3748 }
 0xb7b   : > { %v4201_v24 = vpop.permute.xlu2 %4200  ;;  %v4209_v38 = vpop.permute.xlu1 %4208 }
 0xb7c   : > { %5723 = vmatpush.xpose.msk.msrb.mxu3 %vm622_vm0, %v4209_v38  ;;  %v3775_v38 = vsub.f32 %v8673_v1, %v8793_v49 }
 0xb7d   : > { %5755 = vmatpush.xpose.msk.msra.mxu1 %vm622_vm0, %v8697_v18 }
 0xb80   : > { %4771 = vrot.lane.b32.xlu2 %v9837_v27, %s6600_s6  ;;  %5724 = vmatpush.xpose.msk.msrb.mxu3 %vm622_vm0, %v4207_v28 }
 0xb81   : > { %v8859_v53 = vpop.f32.mrf.mxu1  ;;  %v8861_v35 = vpop.permute.xlu0 %4164 }
 0xb83   : > { %v4810_v16 = vpop.permute.xlu2 %4809  ;;  %v4818_v52 = vpop.permute.xlu1 %4817 }
 0xb84   : > { %5725 = vmatpush.xpose.msk.msrb.mxu3 %vm622_vm0, %v8709_v15  ;;  %5756 = vmatpush.xpose.msk.msra.mxu1 %vm622_vm0, %v4818_v52  ;;  %v3792_v52 = vmul.f32 1.442695, %v3775_v38 }
 0xb86   : > { %6236 = vpow2.f32 %v3792_v52 }
 0xb88   : > { %4162 = vrot.lane.b32.xlu2 %v9836_v55, %s6601_s7  ;;  %5757 = vmatpush.xpose.msk.msra.mxu1 %vm622_vm0, %v4816_v7 }
 0xb89   : > { %v8870_v15 = vpop.permute.xlu0 %4166 }
 0xb8b   : > { %v4195_v63 = vpop.permute.xlu2 %4194  ;;  %v4203_v27 = vpop.permute.xlu1 %4202 }
 0xb8c   : > { %5726 = vmatpush.xpose.msk.msrb.mxu3 %vm622_vm0, %v4203_v27  ;;  %5758 = vmatpush.xpose.msk.msra.mxu1 %vm622_vm0, %v8717_v61  ;;  %v8921_v49 = vpop.eup %6236 }
 0xb90   : > { %4773 = vrot.lane.b32.xlu2 %v9836_v55, %s6600_s6  ;;  %5727 = vmatpush.xpose.msk.msrb.mxu3 %vm622_vm0, %v4201_v24 }
 0xb93   : > { %v4804_v26 = vpop.permute.xlu2 %4803  ;;  %v4812_v13 = vpop.permute.xlu1 %4811 }
 0xb94   : > { %5728 = vmatpush.xpose.msk.msrb.mxu3 %vm622_vm0, %v8727_v22  ;;  %5759 = vmatpush.xpose.msk.msra.mxu1 %vm622_vm0, %v4812_v13 }
 0xb98   : > { %5760 = vmatpush.xpose.msk.msra.mxu1 %vm622_vm0, %v4810_v16 }
 0xb9b   : > { %v4147_v9 = vpop.permute.xlu2 %4146  ;;  %v4197_v14 = vpop.permute.xlu1 %4196  ;;  %3746 = vmax.xlane.f32.xlu1 %v8676_v50 }
 0xb9c   : > { %3772 = vmax.xlane.f32.xlu0 %v8859_v53  ;;  %5729 = vmatpush.xpose.msk.msrb.mxu3 %vm622_vm0, %v4197_v14 }
 0xb9d   : > { %5761 = vmatpush.xpose.msk.msra.mxu1 %vm622_vm0, %v8737_v2  ;;  %v8879_v2 = vpop.permute.xlu0 %4777 }
 0xba0   : > { %5730 = vmatpush.xpose.msk.msrb.mxu3 %vm622_vm0, %v4195_v63 }
 0xba3   : > { %v4760_v55 = vpop.permute.xlu2 %4759  ;;  %v4806_v18 = vpop.permute.xlu1 %4805  ;;  %3752 = vmax.xlane.f32.xlu1 %v8743_v12 }
 0xba4   : > { %5731 = vmatpush.xpose.msk.msrb.mxu3 %vm622_vm0, %v8749_v60  ;;  %5762 = vmatpush.xpose.msk.msra.mxu1 %vm622_vm0, %v4806_v18 }
 0xba5   : > { %v8886_v44 = vpop.permute.xlu0 %4168 }
 0xba8   : > { %5763 = vmatpush.xpose.msk.msra.mxu1 %vm622_vm0, %v4804_v26 }
 0xbab   : > { %v3893_v61 = vpop.permute.xlu2 %3892  ;;  %v4145_v22 = vpop.permute.xlu1 %4144  ;;  %5764 = vmatmul.msk.f32.vlgmr.msra.gmra.mxu1 %vm622_vm0, %v8757_v8 }
 0xbac   : > { %3902 = vmatpush.bf16.msrb.mxu2 %v3893_v61  ;;  %5732 = vmatmul.msk.f32.vlgmr.msrb.gmra.mxu3 %vm622_vm0, %v4145_v22 }
 0xbb0   : > { %5108 = vrot.lane.b32.xlu0 %v9813_v36, %s6600_s6  ;;  %3903 = vmatpush.bf16.msrb.mxu2 %v8791_v58  ;;  %v8895_v58 = vpop.permute.xlu0 %4170 }
 0xbb3   : > { %v4764_v60 = vpop.permute.xlu2 %4763  ;;  %v4758_v29 = vpop.permute.xlu1 %4757 }
 0xbb4   : > { %5733 = vmatmul.msk.f32.gmra.mxu3 %vm622_vm0, %v4147_v9  ;;  %5765 = vmatmul.msk.f32.gmra.mxu1 %vm622_vm0, %v4758_v29 }
 0xbb8   : > { %v8900_v24 = vpop.permute.xlu0 %4781 }
 0xbb9   : > { %3750 = vmax.xlane.f32.xlu2 %v8733_v21 }
 0xbbb   : > { %v3887_v8 = vpop.permute.xlu2 %3886  ;;  %v4151_v43 = vpop.permute.xlu1 %4150 }
 0xbbc   : > { %4775 = vrot.lane.b32.xlu1 %v9835_v40, %s6600_s6  ;;  %5734 = vmatmul.msk.f32.gmra.mxu3 %vm622_vm0, %v8767_v39 }
 0xbbd   : > { %5766 = vmatmul.msk.f32.gmra.mxu1 %vm622_vm0, %v4760_v55 }
 0xbc1   : > { %3756 = vmax.xlane.f32.xlu2 %v8763_v10 }
 0xbc3   : > { %v4157_v28 = vpop.permute.xlu2 %4156  ;;  %v4153_v3 = vpop.permute.xlu1 %4152 }
 0xbc4   : > { %5735 = vmatmul.msk.f32.gmra.mxu3 %vm622_vm0, %v4151_v43 }
 0xbc5   : > { %5767 = vmatmul.msk.f32.gmra.mxu1 %vm622_vm0, %v8777_v48  ;;  %v3774_v48 = vsub.f32 %v8670_v56, %v8765_v25 }
 0xbc7   : > { %v3790_v63 = vmul.f32 1.442695, %v3774_v48 }
 0xbc9   : > { %v8906_v16 = vpop.xlane.xlu0 %3758  ;;  %6238 = vpow2.f32 %v3790_v63 }
 0xbca   : > { %v3782_v48 = vsub.f32 %v8773_v46, %v8906_v16 }
 0xbcb   : > { %v3881_v7 = vpop.permute.xlu2 %3880  ;;  %v3889_v41 = vpop.permute.xlu1 %3888 }
 0xbcc   : > { %3904 = vmatpush.bf16.msrb.mxu2 %v3889_v41  ;;  %5736 = vmatmul.msk.f32.gmra.mxu3 %vm622_vm0, %v4153_v3  ;;  %v3806_v63 = vmul.f32 1.442695, %v3782_v48 }
 0xbcd   : > { %5768 = vmatmul.msk.f32.gmra.mxu1 %vm622_vm0, %v4764_v60 }
 0xbd0   : > { %3905 = vmatpush.bf16.msrb.mxu2 %v3887_v8 }
 0xbd3   : > { %v4770_v40 = vpop.permute.xlu2 %4769  ;;  %v4766_v39 = vpop.permute.xlu1 %4765 }
 0xbd4   : > { %3906 = vmatpush.bf16.msrb.mxu2 %v8818_v17  ;;  %5737 = vmatmul.msk.f32.gmra.mxu3 %vm622_vm0, %v8803_v45  ;;  %v8923_v45 = vpop.eup %6238 }
 0xbd5   : > { %5769 = vmatmul.msk.f32.gmra.mxu1 %vm622_vm0, %v4766_v39  ;;  %v3854_v17 = vpack.c.bf16 %v8921_v49, %v8923_v45 }
 0xbd9   : > { %4779 = vrot.lane.b32.xlu2 %v9839_v37, %s6600_s6 }
 0xbdb   : > { %v4161_v27 = vpop.permute.xlu2 %4160  ;;  %v3883_v26 = vpop.permute.xlu1 %3882 }
 0xbdc   : > { %3907 = vmatpush.bf16.msrb.mxu2 %v3883_v26  ;;  %5738 = vmatmul.msk.f32.gmra.mxu3 %vm622_vm0, %v4157_v28  ;;  %v8917_v1 = vpop.permute.xlu0 %4174 }
 0xbdd   : > { %5770 = vmatmul.msk.f32.gmra.mxu1 %vm622_vm0, %v8830_v20 }
 0xbe0   : > { %3908 = vmatpush.bf16.msrb.mxu2 %v3881_v7 }
 0xbe3   : > { %v4772_v56 = vpop.permute.xlu2 %4771  ;;  %v4159_v25 = vpop.permute.xlu1 %4158 }
 0xbe4   : > { %3909 = vmatpush.bf16.msrb.mxu2 %v8843_v62  ;;  %5739 = vmatmul.msk.f32.gmra.mxu3 %vm622_vm0, %v4159_v25  ;;  %v5115_v37 = vpop.permute.xlu0 %5114  ;;  %v3777_v62 = vsub.f32 %v8680_v59, %v8853_v11 }
 0xbe5   : > { %5771 = vmatmul.msk.f32.gmra.mxu1 %vm622_vm0, %v4770_v40 }
 0xbe6   : > { %3754 = vmax.xlane.f32.xlu1 %v8751_v34 }
 0xbe7   : > { %3910 = vmatmul.bf16.vlgmr.msrb.gmra.mxu2 %v3854_v17 }
 0xbe8   : > { %5124 = vmatpush.bf16.msra.mxu2 %v5115_v37 }
 0xbeb   : > { %v4163_v20 = vpop.permute.xlu2 %4162 }
 0xbec   : > { %5740 = vmatmul.msk.f32.gmra.mxu3 %vm622_vm0, %v4161_v27 }
 0xbed   : > { %5772 = vmatmul.msk.f32.gmra.mxu1 %vm622_vm0, %v4772_v56 }
 0xbf3   : > { %v4774_v13 = vpop.permute.xlu2 %4773 }
 0xbf4   : > { %5741 = vmatmul.msk.f32.gmra.mxu3 %vm622_vm0, %v4163_v20 }
 0xbf5   : > { %5773 = vmatmul.msk.f32.gmra.mxu1 %vm622_vm0, %v4774_v13 }
 0xbfc   : > { %5742 = vmatmul.msk.f32.gmra.mxu3 %vm622_vm0, %v8861_v35  ;;  %v3796_v35 = vmul.f32 1.442695, %v3777_v62 }
 0xbfe   : > { %6240 = vpow2.f32 %v3796_v35 }
 0xbff   : > { %4172 = vrot.lane.b32.xlu1 %v9842_v0, %s6601_s7 }
 0xc02   : > { %3760 = vmax.xlane.f32.xlu2 %v8785_v6 }
 0xc04   : > { %5743 = vmatmul.msk.f32.gmra.mxu3 %vm622_vm0, %v8870_v15 }
 0xc07   : > { %4783 = vrot.lane.b32.xlu1 %v9842_v0, %s6600_s6  ;;  %v8955_v0 = vpop.eup %6240 }
 0xc0a   : > { %3762 = vmax.xlane.f32.xlu2 %v8795_v54 }
 0xc0c   : > { %5744 = vmatmul.msk.f32.gmra.mxu3 %vm622_vm0, %v8886_v44 }
 0xc0e   : > { %v3747_v9 = vpop.xlane.xlu1 %3746 }
 0xc0f   : > { %v3776_v14 = vsub.f32 %v8676_v50, %v3747_v9  ;;  %4785 = vrot.lane.b32.xlu1 %v9841_v32, %s6600_s6 }
 0xc11   : > { %v3794_v55 = vmul.f32 1.442695, %v3776_v14 }
 0xc12   : > { %3766 = vmax.xlane.f32.xlu2 %v8825_v51 }
 0xc13   : > { %6242 = vpow2.f32 %v3794_v55 }
 0xc14   : > { %5745 = vmatmul.msk.f32.gmra.mxu3 %vm622_vm0, %v8895_v58 }
 0xc16   : > { %v3753_v32 = vpop.xlane.xlu1 %3752 }
 0xc17   : > { %v3779_v11 = vsub.f32 %v8743_v12, %v3753_v32 }
 0xc19   : > { %v8957_v59 = vpop.eup %6242  ;;  %v3800_v15 = vmul.f32 1.442695, %v3779_v11 }
 0xc1a   : > { %3768 = vmax.xlane.f32.xlu2 %v8838_v4  ;;  %v3855_v50 = vpack.c.bf16 %v8955_v0, %v8957_v59 }
 0xc1b   : > { %6244 = vpow2.f32 %v3800_v15 }
 0xc1c   : > { %3915 = vmatmul.bf16.gmra.mxu2 %v3855_v50 }
 0xc21   : > { %v8971_v43 = vpop.eup %6244 }
 0xc22   : > { %3770 = vmax.xlane.f32.xlu2 %v8848_v31 }
 0xc28   : > { %v8964_v18 = vpop.f32.mrf.mxu1 }
 0xc2c   : > { %v3751_v61 = vpop.xlane.xlu2 %3750 }
 0xc2d   : > { %v3778_v22 = vsub.f32 %v8733_v21, %v3751_v61 }
 0xc2e   : > { %v4776_v60 = vpop.permute.xlu1 %4775 }
 0xc2f   : > { %v3798_v29 = vmul.f32 1.442695, %v3778_v22  ;;  %5774 = vmatmul.msk.f32.gmra.mxu1 %vm622_vm0, %v4776_v60  ;;  %v8985_v28 = vpop.f32.mrf.mxu3  ;;  %v3773_v22 = vpop.xlane.xlu0 %3772 }
 0xc31   : > { %6246 = vpow2.f32 %v3798_v29  ;;  %v8968_v44 = vpop.f32.mrf.mxu1 }
 0xc32   : > { %4966 = vmax.xlane.f32.xlu0 %v8968_v44 }
 0xc34   : > { %v3757_v8 = vpop.xlane.xlu2 %3756 }
 0xc35   : > { %v3781_v3 = vsub.f32 %v8763_v10, %v3757_v8 }
 0xc37   : > { %v8973_v12 = vpop.eup %6246  ;;  %5775 = vmatmul.msk.f32.gmra.mxu1 %vm622_vm0, %v8879_v2  ;;  %v8993_v2 = vpop.f32.mrf.mxu3  ;;  %v3804_v41 = vmul.f32 1.442695, %v3781_v3 }
 0xc38   : > { %v3856_v21 = vpack.c.bf16 %v8971_v43, %v8973_v12 }
 0xc39   : > { %3764 = vmax.xlane.f32.xlu1 %v8812_v33  ;;  %6248 = vpow2.f32 %v3804_v41 }
 0xc3a   : > { %5112 = vrot.lane.b32.xlu2 %v9812_v5, %s6600_s6  ;;  %3920 = vmatmul.bf16.gmra.mxu2 %v3856_v21  ;;  %v5109_v21 = vpop.permute.xlu0 %5108 }
 0xc3c   : > { %v4780_v58 = vpop.permute.xlu2 %4779 }
 0xc3f   : > { %5776 = vmatmul.msk.f32.gmra.mxu1 %vm622_vm0, %v4780_v58  ;;  %v9004_v7 = vpop.f32.mrf.mxu3 }
 0xc42   : > { %5110 = vrot.lane.b32.xlu2 %v9814_v57, %s6600_s6 }
 0xc46   : > { %5102 = vrot.lane.b32.xlu0 %v9809_v47, %s6600_s6 }
 0xc47   : > { %5777 = vmatmul.msk.f32.gmra.mxu1 %vm622_vm0, %v8900_v24 }
 0xc4a   : > { %4501 = vrot.lane.b32.xlu2 %v9812_v5, %s6601_s7  ;;  %v9006_v5 = vpop.f32.mrf.mxu1 }
 0xc4e   : > { %4491 = vrot.lane.b32.xlu0 %v9809_v47, %s6601_s7 }
 0xc52   : > { %4503 = vrot.lane.b32.xlu1 %v9815_v30, %s6601_s7  ;;  %4499 = vrot.lane.b32.xlu2 %v9814_v57, %s6601_s7  ;;  %v9013_v57 = vpop.f32.mrf.mxu3  ;;  %v9017_v30 = vpop.eup %6248 }
 0xc53   : > { %v9019_v10 = vpop.f32.mrf.mxu1 }
 0xc56   : > { %4489 = vrot.lane.b32.xlu0 %v9808_v23, %s6601_s7 }
 0xc59   : > { %v3755_v24 = vpop.xlane.xlu1 %3754 }
 0xc5a   : > { %v3780_v40 = vsub.f32 %v8751_v34, %v3755_v24  ;;  %5106 = vrot.lane.b32.xlu1 %v9810_v42, %s6600_s6  ;;  %4497 = vrot.lane.b32.xlu2 %v9813_v36, %s6601_s7  ;;  %v9027_v36 = vpop.f32.mrf.mxu3 }
 0xc5b   : > { %v9029_v38 = vpop.f32.mrf.mxu1 }
 0xc5c   : > { %v3802_v47 = vmul.f32 1.442695, %v3780_v40 }
 0xc5e   : > { %6250 = vpow2.f32 %v3802_v47 }
 0xc5f   : > { %6252 = vpow2.f32 %v3806_v63 }
 0xc62   : > { %5104 = vrot.lane.b32.xlu2 %v9811_v19, %s6600_s6  ;;  %v9034_v26 = vpop.f32.mrf.mxu3 }
 0xc63   : > { %v9037_v25 = vpop.f32.mrf.mxu1 }
 0xc64   : > { %v9021_v39 = vpop.eup %6250 }
 0xc65   : > { %v3857_v34 = vpack.c.bf16 %v9017_v30, %v9021_v39  ;;  %v9042_v16 = vpop.eup %6252 }
 0xc67   : > { %3925 = vmatmul.bf16.gmra.mxu2 %v3857_v34 }
 0xc6a   : > { %4495 = vrot.lane.b32.xlu2 %v9810_v42, %s6601_s7  ;;  %v9046_v20 = vpop.f32.mrf.mxu3 }
 0xc71   : > { %v4173_v52 = vpop.permute.xlu1 %4172 }
 0xc72   : > { %5746 = vmatmul.msk.f32.gmra.mxu3 %vm622_vm0, %v4173_v52  ;;  %v9056_v35 = vpop.f32.mrf.mxu3 }
 0xc75   : > { %v3761_v27 = vpop.xlane.xlu2 %3760 }
 0xc76   : > { %v3783_v56 = vsub.f32 %v8785_v6, %v3761_v27  ;;  %v9049_v6 = vpop.f32.mrf.mxu1 }
 0xc78   : > { %v3808_v37 = vmul.f32 1.442695, %v3783_v56 }
 0xc79   : > { %v4784_v42 = vpop.permute.xlu1 %4783 }
 0xc7a   : > { %6254 = vpow2.f32 %v3808_v37  ;;  %5747 = vmatmul.msk.f32.gmra.mxu3 %vm622_vm0, %v8917_v1  ;;  %5778 = vmatmul.msk.f32.gmra.mxu1 %vm622_vm0, %v4784_v42  ;;  %v9063_v55 = vpop.f32.mrf.mxu3 }
 0xc7d   : > { %v3763_v46 = vpop.xlane.xlu2 %3762 }
 0xc7e   : > { %v9058_v9 = vpop.f32.mrf.mxu1  ;;  %v3784_v29 = vsub.f32 %v8795_v54, %v3763_v46 }
 0xc80   : > { %v9044_v17 = vpop.eup %6254  ;;  %4970 = vmax.xlane.f32.xlu0 %v9019_v10  ;;  %v3810_v58 = vmul.f32 1.442695, %v3784_v29 }
 0xc81   : > { %v4786_v13 = vpop.permute.xlu1 %4785  ;;  %v3858_v62 = vpack.c.bf16 %v9044_v17, %v9042_v16 }
 0xc82   : > { %5779 = vmatmul.msk.f32.gmra.mxu1 %vm622_vm0, %v4786_v13  ;;  %v9068_v15 = vpop.f32.mrf.mxu3  ;;  %6256 = vpow2.f32 %v3810_v58 }
 0xc83   : > { %3930 = vmatmul.bf16.gmra.mxu2 %v3858_v62  ;;  %v3789_v62 = vsub.f32 %v8859_v53, %v3773_v22 }
 0xc84   : > { %4964 = vmax.xlane.f32.xlu1 %v8964_v18 }
 0xc85   : > { %v3767_v1 = vpop.xlane.xlu2 %3766  ;;  %v3820_v29 = vmul.f32 1.442695, %v3789_v62 }
 0xc86   : > { %v9065_v50 = vpop.f32.mrf.mxu1  ;;  %v3786_v52 = vsub.f32 %v8825_v51, %v3767_v1 }
 0xc88   : > { %4972 = vmax.xlane.f32.xlu0 %v9029_v38  ;;  %v9087_v47 = vpop.eup %6256  ;;  %v3814_v56 = vmul.f32 1.442695, %v3786_v52 }
 0xc8a   : > { %v9076_v8 = vpop.f32.mrf.mxu3 }
 0xc8c   : > { %4355 = vmax.xlane.f32.xlu1 %v8993_v2 }
 0xc8d   : > { %v3769_v14 = vpop.xlane.xlu2 %3768 }
 0xc8e   : > { %v9070_v61 = vpop.f32.mrf.mxu1  ;;  %v3787_v48 = vsub.f32 %v8838_v4, %v3769_v14 }
 0xc90   : > { %4363 = vmax.xlane.f32.xlu0 %v9034_v26  ;;  %v3816_v63 = vmul.f32 1.442695, %v3787_v48 }
 0xc92   : > { %v9084_v54 = vpop.f32.mrf.mxu3 }
 0xc93   : > { %4353 = vmax.xlane.f32.xlu2 %v8985_v28 }
 0xc95   : > { %v3771_v32 = vpop.xlane.xlu2 %3770 }
 0xc96   : > { %v3788_v13 = vsub.f32 %v8848_v31, %v3771_v32 }
 0xc98   : > { %4365 = vmax.xlane.f32.xlu0 %v9046_v20  ;;  %v3818_v14 = vmul.f32 1.442695, %v3788_v13 }
 0xc9a   : > { %v9095_v27 = vpop.f32.mrf.mxu3 }
 0xc9d   : > { %v5113_v11 = vpop.permute.xlu2 %5112 }
 0xc9e   : > { %5125 = vmatpush.bf16.msra.mxu2 %v5113_v11 }
 0xca0   : > { %4982 = vmax.xlane.f32.xlu0 %v9070_v61 }
 0xca5   : > { %v5111_v60 = vpop.permute.xlu2 %5110  ;;  %4493 = vrot.lane.b32.xlu1 %v9811_v19, %s6601_s7  ;;  %v4967_v11 = vpop.xlane.xlu0 %4966 }
 0xca6   : > { %5126 = vmatpush.bf16.msra.mxu2 %v5111_v60 }
 0xcaa   : > { %5127 = vmatpush.bf16.msra.mxu2 %v5109_v21 }
 0xcab   : > { %5100 = vrot.lane.b32.xlu2 %v9808_v23, %s6600_s6  ;;  %s6538_s6 = scalar_lea.hbm %s9566_s4, 256 }
 0xcac   : > { %v3765_v3 = vpop.xlane.xlu1 %3764  ;;  %v9080_v41 = vpop.f32.mrf.mxu1 }
 0xcad   : > { %v3785_v24 = vsub.f32 %v8812_v33, %v3765_v3  ;;  %v4502_v40 = vpop.permute.xlu2 %4501  ;;  %4984 = vmax.xlane.f32.xlu0 %v9080_v41 }
 0xcaf   : > { %v3812_v19 = vmul.f32 1.442695, %v3785_v24 }
 0xcb1   : > { %6258 = vpow2.f32 %v3812_v19 }
 0xcb2   : > { %6260 = vpow2.f32 %v3816_v63  ;;  %v9137_v63 = vpop.f32.mrf.mxu3 }
 0xcb3   : > { %6262 = vpow2.f32 %v3814_v56  ;;  %v4997_v56 = vsub.f32 %v8968_v44, %v4967_v11 }
 0xcb4   : > { %6264 = vpow2.f32 %v3818_v14  ;;  %v9115_v58 = vpop.f32.mrf.mxu1 }
 0xcb5   : > { %4375 = vmax.xlane.f32.xlu0 %v9084_v54  ;;  %v4500_v34 = vpop.permute.xlu2 %4499  ;;  %6266 = vpow2.f32 %v3820_v29 }
 0xcb7   : > { %v9089_v23 = vpop.eup %6258 }
 0xcb8   : > { %v3859_v33 = vpack.c.bf16 %v9089_v23, %v9087_v47  ;;  %v9098_v46 = vpop.eup %6260  ;;  %v5103_v31 = vpop.permute.xlu0 %5102 }
 0xcb9   : > { %v9100_v4 = vpop.eup %6262 }
 0xcba   : > { %3935 = vmatmul.bf16.gmra.mxu2 %v3859_v33  ;;  %v3860_v51 = vpack.c.bf16 %v9098_v46, %v9100_v4  ;;  %v9108_v53 = vpop.eup %6264 }
 0xcbb   : > { %v9110_v22 = vpop.eup %6266 }
 0xcbc   : > { %v3861_v21 = vpack.c.bf16 %v9110_v22, %v9108_v53  ;;  %v9120_v3 = vpop.f32.mrf.mxu1 }
 0xcbd   : > { %4377 = vmax.xlane.f32.xlu0 %v9095_v27  ;;  %v4498_v37 = vpop.permute.xlu2 %4497 }
 0xcc4   : > { %v4504_v42 = vpop.permute.xlu1 %4503  ;;  %v9124_v24 = vpop.f32.mrf.mxu1 }
 0xcc5   : > { %4513 = vmatpush.bf16.msra.mxu0 %v4504_v42  ;;  %v5105_v1 = vpop.permute.xlu2 %5104  ;;  %v5014_v42 = vmul.f32 1.442695, %v4997_v56 }
 0xcc9   : > { %4514 = vmatpush.bf16.msra.mxu0 %v4502_v40  ;;  %v4492_v40 = vpop.permute.xlu0 %4491 }
 0xcca   : > { %3940 = vmatmul.bf16.gmra.mxu2 %v3860_v51 }
 0xccc   : > { %v5107_v60 = vpop.permute.xlu1 %5106 }
 0xccd   : > { %4515 = vmatpush.bf16.msra.mxu0 %v4500_v34  ;;  %5128 = vmatpush.bf16.msra.mxu2 %v5107_v60  ;;  %v4496_v32 = vpop.permute.xlu2 %4495 }
 0xccf   : > { %4968 = vmax.xlane.f32.xlu1 %v9006_v5 }
 0xcd1   : > { %4516 = vmatpush.bf16.msra.mxu0 %v4498_v37  ;;  %5129 = vmatpush.bf16.msra.mxu2 %v5105_v1  ;;  %v4490_v52 = vpop.permute.xlu0 %4489 }
 0xcd4   : > { %4357 = vmax.xlane.f32.xlu2 %v9004_v7 }
 0xcd5   : > { %4517 = vmatpush.bf16.msra.mxu0 %v4496_v32  ;;  %5130 = vmatpush.bf16.msra.mxu2 %v5103_v31 }
 0xcd7   : > { %4359 = vmax.xlane.f32.xlu1 %v9013_v57 }
 0xcda   : > { %3945 = vmatmul.bf16.gmra.mxu2 %v3861_v21 }
 0xcdc   : > { %4361 = vmax.xlane.f32.xlu2 %v9027_v36 }
 0xcdf   : > { %4974 = vmax.xlane.f32.xlu1 %v9037_v25 }
 0xce4   : > { %4978 = vmax.xlane.f32.xlu2 %v9058_v9 }
 0xce7   : > { %4976 = vmax.xlane.f32.xlu1 %v9049_v6 }
 0xcec   : > { %4980 = vmax.xlane.f32.xlu2 %v9065_v50 }
 0xcef   : > { %4367 = vmax.xlane.f32.xlu1 %v9056_v35 }
 0xcf4   : > { %4371 = vmax.xlane.f32.xlu2 %v9068_v15 }
 0xcf5   : > { %v9143_v51 = vpop.f32.mrf.mxu3 }
 0xcf7   : > { %4369 = vmax.xlane.f32.xlu1 %v9063_v55  ;;  %v9129_v19 = vpop.f32.mrf.mxu1  ;;  %v4965_v34 = vpop.xlane.xlu1 %4964 }
 0xcf8   : > { %v4996_v48 = vsub.f32 %v8964_v18, %v4965_v34  ;;  %v4971_v18 = vpop.xlane.xlu0 %4970 }
 0xcf9   : > { %v4999_v44 = vsub.f32 %v9019_v10, %v4971_v18 }
 0xcfa   : > { %v5012_v37 = vmul.f32 1.442695, %v4996_v48 }
 0xcfb   : > { %v5018_v29 = vmul.f32 1.442695, %v4999_v44 }
 0xcfc   : > { %4373 = vmax.xlane.f32.xlu2 %v9076_v8  ;;  %6268 = vpow2.f32 %v5012_v37 }
 0xcfd   : > { %6270 = vpow2.f32 %v5014_v42  ;;  %v9157_v10 = vpop.f32.mrf.mxu3 }
 0xcfe   : > { %6272 = vpow2.f32 %v5018_v29 }
 0xcff   : > { %4986 = vmax.xlane.f32.xlu1 %v9115_v58  ;;  %v9134_v33 = vpop.f32.mrf.mxu1  ;;  %v4356_v11 = vpop.xlane.xlu1 %4355 }
 0xd00   : > { %4994 = vmax.xlane.f32.xlu0 %v9134_v33  ;;  %v4973_v31 = vpop.xlane.xlu0 %4972  ;;  %v4386_v32 = vsub.f32 %v8993_v2, %v4356_v11 }
 0xd01   : > { %v5000_v34 = vsub.f32 %v9029_v38, %v4973_v31 }
 0xd02   : > { %v9146_v62 = vpop.eup %6268  ;;  %v4403_v48 = vmul.f32 1.442695, %v4386_v32 }
 0xd03   : > { %v9149_v14 = vpop.eup %6270 }
 0xd04   : > { %4990 = vmax.xlane.f32.xlu2 %v9124_v24  ;;  %v5076_v60 = vpack.c.bf16 %v9149_v14, %v9146_v62 }
 0xd06   : > { %v4354_v13 = vpop.xlane.xlu2 %4353 }
 0xd07   : > { %4988 = vmax.xlane.f32.xlu1 %v9120_v3 }
 0xd08   : > { %3828 = vadd.xlane.f32.xlu0 %v8955_v0  ;;  %v4385_v0 = vsub.f32 %v8985_v28, %v4354_v13  ;;  %v6273_v28 = vpop.eup %6272  ;;  %v4364_v44 = vpop.xlane.xlu0 %4363 }
 0xd0a   : > { %v4401_v21 = vmul.f32 1.442695, %v4385_v0 }
 0xd0c   : > { %4992 = vmax.xlane.f32.xlu2 %v9129_v19  ;;  %6274 = vpow2.f32 %v4401_v21 }
 0xd0d   : > { %6276 = vpow2.f32 %v4403_v48 }
 0xd0e   : > { %v5101_v1 = vpop.permute.xlu2 %5100 }
 0xd0f   : > { %4379 = vmax.xlane.f32.xlu1 %v9137_v63  ;;  %5131 = vmatpush.bf16.msra.mxu2 %v5101_v1 }
 0xd10   : > { %3830 = vadd.xlane.f32.xlu0 %v8973_v12  ;;  %v5020_v12 = vmul.f32 1.442695, %v5000_v34 }
 0xd12   : > { %5132 = vmatmul.bf16.vlgmr.msra.gmra.mxu2 %v5076_v60  ;;  %6278 = vpow2.f32 %v5020_v12  ;;  %v9163_v2 = vpop.eup %6274 }
 0xd13   : > { %v9165_v37 = vpop.eup %6276 }
 0xd14   : > { %4383 = vmax.xlane.f32.xlu2 %v9157_v10  ;;  %v4465_v38 = vpack.c.bf16 %v9165_v37, %v9163_v2 }
 0xd17   : > { %v4494_v56 = vpop.permute.xlu1 %4493  ;;  %4381 = vmax.xlane.f32.xlu1 %v9143_v51 }
 0xd18   : > { %4518 = vmatpush.bf16.msra.mxu0 %v4494_v56  ;;  %3832 = vadd.xlane.f32.xlu0 %v8971_v43  ;;  %v6279_v42 = vpop.eup %6278  ;;  %v9171_v43 = vpop.f32.mrf.mxu2 }
 0xd1c   : > { %4519 = vmatpush.bf16.msra.mxu0 %v4492_v40  ;;  %5050 = vadd.xlane.f32.xlu2 %v6273_v28 }
 0xd20   : > { %3834 = vadd.xlane.f32.xlu0 %v9021_v39  ;;  %4520 = vmatpush.bf16.msra.mxu0 %v4490_v52  ;;  %v9174_v40 = vpop.f32.mrf.mxu2 }
 0xd23   : > { %4521 = vmatmul.bf16.vlgmr.msra.gmra.mxu0 %v4465_v38 }
 0xd24   : > { %5052 = vadd.xlane.f32.xlu2 %v6279_v42 }
 0xd28   : > { %3836 = vadd.xlane.f32.xlu0 %v9017_v30  ;;  %v9177_v13 = vpop.f32.mrf.mxu2 }
 0xd30   : > { %3838 = vadd.xlane.f32.xlu0 %v9042_v16  ;;  %v9181_v30 = vpop.f32.mrf.mxu2 }
 0xd38   : > { %3840 = vadd.xlane.f32.xlu0 %v9044_v17  ;;  %v9188_v21 = vpop.f32.mrf.mxu2 }
 0xd42   : > { %v4969_v39 = vpop.xlane.xlu1 %4968 }
 0xd43   : > { %v4998_v52 = vsub.f32 %v9006_v5, %v4969_v39  ;;  %v4390_v39 = vsub.f32 %v9034_v26, %v4364_v44 }
 0xd45   : > { %v5016_v18 = vmul.f32 1.442695, %v4998_v52  ;;  %v4411_v52 = vmul.f32 1.442695, %v4390_v39 }
 0xd47   : > { %6280 = vpow2.f32 %v5016_v18  ;;  %v4358_v1 = vpop.xlane.xlu2 %4357 }
 0xd48   : > { %v4387_v11 = vsub.f32 %v9004_v7, %v4358_v1  ;;  %v4366_v7 = vpop.xlane.xlu0 %4365  ;;  %v9195_v1 = vpop.f32.mrf.mxu2 }
 0xd49   : > { %v4391_v26 = vsub.f32 %v9046_v20, %v4366_v7 }
 0xd4a   : > { %v4405_v60 = vmul.f32 1.442695, %v4387_v11  ;;  %v4360_v0 = vpop.xlane.xlu1 %4359 }
 0xd4b   : > { %v4388_v16 = vsub.f32 %v9013_v57, %v4360_v0 }
 0xd4c   : > { %6282 = vpow2.f32 %v4405_v60 }
 0xd4d   : > { %v9184_v29 = vpop.eup %6280  ;;  %v4407_v17 = vmul.f32 1.442695, %v4388_v16 }
 0xd4e   : > { %v5077_v31 = vpack.c.bf16 %v6273_v28, %v9184_v29 }
 0xd4f   : > { %6284 = vpow2.f32 %v4407_v17  ;;  %v4362_v5 = vpop.xlane.xlu2 %4361 }
 0xd50   : > { %v4389_v32 = vsub.f32 %v9027_v36, %v4362_v5  ;;  %5137 = vmatmul.bf16.gmra.mxu2 %v5077_v31  ;;  %v4983_v11 = vpop.xlane.xlu0 %4982  ;;  %v4413_v5 = vmul.f32 1.442695, %v4391_v26 }
 0xd52   : > { %v4409_v34 = vmul.f32 1.442695, %v4389_v32  ;;  %v4975_v48 = vpop.xlane.xlu1 %4974  ;;  %v9191_v12 = vpop.eup %6282 }
 0xd53   : > { %v5001_v56 = vsub.f32 %v9037_v25, %v4975_v48 }
 0xd54   : > { %6286 = vpow2.f32 %v4409_v34  ;;  %v9200_v34 = vpop.f32.mrf.mxu2 }
 0xd55   : > { %v6285_v57 = vpop.eup %6284  ;;  %v5022_v38 = vmul.f32 1.442695, %v5001_v56 }
 0xd56   : > { %4439 = vadd.xlane.f32.xlu1 %v6285_v57  ;;  %v4466_v28 = vpack.c.bf16 %v6285_v57, %v9191_v12 }
 0xd57   : > { %6288 = vpow2.f32 %v5022_v38  ;;  %v4979_v36 = vpop.xlane.xlu2 %4978 }
 0xd58   : > { %4526 = vmatmul.bf16.gmra.mxu0 %v4466_v28  ;;  %6290 = vpow2.f32 %v4411_v52  ;;  %v5003_v17 = vsub.f32 %v9058_v9, %v4979_v36  ;;  %v4985_v48 = vpop.xlane.xlu0 %4984 }
 0xd5a   : > { %v4977_v18 = vpop.xlane.xlu1 %4976  ;;  %v6287_v60 = vpop.eup %6286 }
 0xd5b   : > { %v5002_v25 = vsub.f32 %v9049_v6, %v4977_v18  ;;  %v5026_v6 = vmul.f32 1.442695, %v5003_v17 }
 0xd5c   : > { %v9204_v18 = vpop.f32.mrf.mxu2 }
 0xd5d   : > { %v6289_v0 = vpop.eup %6288  ;;  %v5024_v16 = vmul.f32 1.442695, %v5002_v25  ;;  %v5005_v25 = vsub.f32 %v9070_v61, %v4983_v11 }
 0xd5e   : > { %4441 = vadd.xlane.f32.xlu1 %v6287_v60  ;;  %5054 = vadd.xlane.f32.xlu2 %v6289_v0  ;;  %v5078_v44 = vpack.c.bf16 %v6289_v0, %v6279_v42  ;;  %v6291_v56 = vpop.eup %6290 }
 0xd5f   : > { %6292 = vpow2.f32 %v5024_v16  ;;  %v4981_v31 = vpop.xlane.xlu2 %4980  ;;  %v4467_v20 = vpack.c.bf16 %v6291_v56, %v6287_v60  ;;  %v5030_v16 = vmul.f32 1.442695, %v5005_v25 }
 0xd60   : > { %5142 = vmatmul.bf16.gmra.mxu2 %v5078_v44  ;;  %6294 = vpow2.f32 %v4413_v5  ;;  %v5004_v9 = vsub.f32 %v9065_v50, %v4981_v31  ;;  %v4376_v0 = vpop.xlane.xlu0 %4375 }
 0xd61   : > { %6296 = vpow2.f32 %v5026_v6 }
 0xd62   : > { %v4368_v32 = vpop.xlane.xlu1 %4367  ;;  %v5028_v7 = vmul.f32 1.442695, %v5004_v9 }
 0xd63   : > { %v4392_v38 = vsub.f32 %v9056_v35, %v4368_v32 }
 0xd64   : > { %v9209_v5 = vpop.f32.mrf.mxu2 }
 0xd65   : > { %v6293_v57 = vpop.eup %6292  ;;  %v4415_v42 = vmul.f32 1.442695, %v4392_v38 }
 0xd66   : > { %5056 = vadd.xlane.f32.xlu2 %v6293_v57  ;;  %4443 = vadd.xlane.f32.xlu1 %v6291_v56  ;;  %v6295_v28 = vpop.eup %6294 }
 0xd67   : > { %v4372_v39 = vpop.xlane.xlu2 %4371  ;;  %v6297_v52 = vpop.eup %6296  ;;  %6298 = vpow2.f32 %v4415_v42 }
 0xd68   : > { %4531 = vmatmul.bf16.gmra.mxu0 %v4467_v20  ;;  %v4394_v35 = vsub.f32 %v9068_v15, %v4372_v39  ;;  %v5079_v60 = vpack.c.bf16 %v6297_v52, %v6293_v57  ;;  %6300 = vpow2.f32 %v5028_v7  ;;  %v4378_v15 = vpop.xlane.xlu0 %4377  ;;  %v5006_v20 = vsub.f32 %v9080_v41, %v4985_v48 }
 0xd69   : > { %6302 = vpow2.f32 %v5030_v16 }
 0xd6a   : > { %v4370_v36 = vpop.xlane.xlu1 %4369  ;;  %v4419_v26 = vmul.f32 1.442695, %v4394_v35  ;;  %v5032_v39 = vmul.f32 1.442695, %v5006_v20 }
 0xd6b   : > { %v4393_v50 = vsub.f32 %v9063_v55, %v4370_v36 }
 0xd6c   : > { %6304 = vpow2.f32 %v4419_v26  ;;  %v9212_v38 = vpop.f32.mrf.mxu2 }
 0xd6d   : > { %v6299_v44 = vpop.eup %6298  ;;  %v4417_v17 = vmul.f32 1.442695, %v4393_v50 }
 0xd6e   : > { %5058 = vadd.xlane.f32.xlu2 %v6297_v52  ;;  %4445 = vadd.xlane.f32.xlu1 %v6295_v28  ;;  %v6301_v31 = vpop.eup %6300  ;;  %v4468_v61 = vpack.c.bf16 %v6299_v44, %v6295_v28 }
 0xd6f   : > { %6306 = vpow2.f32 %v4417_v17  ;;  %v6303_v32 = vpop.eup %6302  ;;  %v4374_v7 = vpop.xlane.xlu2 %4373 }
 0xd70   : > { %5147 = vmatmul.bf16.gmra.mxu2 %v5079_v60  ;;  %v5080_v57 = vpack.c.bf16 %v6303_v32, %v6301_v31  ;;  %v4395_v28 = vsub.f32 %v9076_v8, %v4374_v7 }
 0xd72   : > { %v4987_v11 = vpop.xlane.xlu1 %4986  ;;  %v6305_v6 = vpop.eup %6304  ;;  %v4421_v35 = vmul.f32 1.442695, %v4395_v28 }
 0xd73   : > { %v5007_v56 = vsub.f32 %v9115_v58, %v4987_v11  ;;  %v4995_v9 = vpop.xlane.xlu0 %4994  ;;  %v4396_v58 = vsub.f32 %v9084_v54, %v4376_v0 }
 0xd74   : > { %v9217_v52 = vpop.f32.mrf.mxu2 }
 0xd75   : > { %v6307_v55 = vpop.eup %6306  ;;  %v5034_v42 = vmul.f32 1.442695, %v5007_v56  ;;  %v4423_v48 = vmul.f32 1.442695, %v4396_v58 }
 0xd76   : > { %5060 = vadd.xlane.f32.xlu2 %v6301_v31  ;;  %4447 = vadd.xlane.f32.xlu1 %v6299_v44  ;;  %v4469_v36 = vpack.c.bf16 %v6305_v6, %v6307_v55 }
 0xd77   : > { %6308 = vpow2.f32 %v5034_v42  ;;  %v4991_v50 = vpop.xlane.xlu2 %4990 }
 0xd78   : > { %4536 = vmatmul.bf16.gmra.mxu0 %v4468_v61  ;;  %6310 = vpow2.f32 %v5032_v39  ;;  %v5009_v54 = vsub.f32 %v9124_v24, %v4991_v50  ;;  %v4397_v24 = vsub.f32 %v9095_v27, %v4378_v15  ;;  %v5011_v27 = vsub.f32 %v9134_v33, %v4995_v9 }
 0xd7a   : > { %v4989_v25 = vpop.xlane.xlu1 %4988  ;;  %v5038_v11 = vmul.f32 1.442695, %v5009_v54  ;;  %v4425_v42 = vmul.f32 1.442695, %v4397_v24  ;;  %v5042_v58 = vmul.f32 1.442695, %v5011_v27 }
 0xd7b   : > { %v3829_v60 = vpop.xlane.xlu0 %3828  ;;  %v5008_v8 = vsub.f32 %v9120_v3, %v4989_v25 }
 0xd7c   : > { %6312 = vrcp.f32 %v3829_v60  ;;  %v9227_v0 = vpop.f32.mrf.mxu2 }
 0xd7d   : > { %v9219_v41 = vpop.eup %6308  ;;  %6314 = vpow2.f32 %v4421_v35  ;;  %v5036_v44 = vmul.f32 1.442695, %v5008_v8 }
 0xd7e   : > { %4451 = vadd.xlane.f32.xlu2 %v6305_v6  ;;  %4449 = vadd.xlane.f32.xlu1 %v6307_v55  ;;  %v9221_v16 = vpop.eup %6310  ;;  %6316 = vpow2.f32 %v4423_v48 }
 0xd7f   : > { %v5081_v26 = vpack.c.bf16 %v9219_v41, %v9221_v16  ;;  %6318 = vpow2.f32 %v5036_v44 }
 0xd80   : > { %5152 = vmatmul.bf16.gmra.mxu2 %v5080_v57  ;;  %6320 = vpow2.f32 %v5038_v11  ;;  %v4993_v57 = vpop.xlane.xlu2 %4992 }
 0xd82   : > { %v6313_v17 = vpop.eup %6312  ;;  %v4380_v31 = vpop.xlane.xlu1 %4379 }
 0xd83   : > { %v9229_v61 = vpop.eup %6314  ;;  %v4398_v3 = vsub.f32 %v9137_v63, %v4380_v31  ;;  %v3970_v6 = vmul.f32 %v6313_v17, %v9181_v30  ;;  %v5010_v63 = vsub.f32 %v9129_v19, %v4993_v57 }
 0xd84   : > { %v9241_v7 = vpop.f32.mrf.mxu2 }
 0xd85   : > { %v4427_v56 = vmul.f32 1.442695, %v4398_v3  ;;  %v5040_v15 = vmul.f32 1.442695, %v5010_v63  ;;  %v3831_v63 = vpop.xlane.xlu0 %3830 }
 0xd86   : > { %5062 = vadd.xlane.f32.xlu2 %v6303_v32  ;;  %v9231_v32 = vpop.eup %6316 }
 0xd87   : > { %v4470_v55 = vpack.c.bf16 %v9231_v32, %v9229_v61  ;;  %v9239_v20 = vpop.eup %6318  ;;  %6322 = vpow2.f32 %v4427_v56 }
 0xd88   : > { %4541 = vmatmul.bf16.gmra.mxu0 %v4469_v36  ;;  %v9243_v39 = vpop.eup %6320  ;;  %6324 = vpow2.f32 %v4425_v42  ;;  %v4384_v25 = vpop.xlane.xlu2 %4383 }
 0xd89   : > { %v5082_v30 = vpack.c.bf16 %v9243_v39, %v9239_v20  ;;  %6326 = vpow2.f32 %v5040_v15  ;;  %v4400_v33 = vsub.f32 %v9157_v10, %v4384_v25 }
 0xd8a   : > { %v4382_v28 = vpop.xlane.xlu1 %4381  ;;  %6328 = vpow2.f32 %v5042_v58 }
 0xd8b   : > { %v4399_v19 = vsub.f32 %v9143_v51, %v4382_v28  ;;  %v4431_v8 = vmul.f32 1.442695, %v4400_v33 }
 0xd8c   : > { %v9253_v60 = vpop.f32.mrf.mxu2 }
 0xd8d   : > { %v9249_v36 = vpop.eup %6322  ;;  %v4429_v9 = vmul.f32 1.442695, %v4399_v19 }
 0xd8e   : > { %v9251_v35 = vpop.eup %6324 }
 0xd8f   : > { %v4471_v48 = vpack.c.bf16 %v9249_v36, %v9251_v35  ;;  %v9259_v50 = vpop.eup %6326  ;;  %6330 = vpow2.f32 %v4429_v9 }
 0xd90   : > { %5157 = vmatmul.bf16.gmra.mxu2 %v5081_v26  ;;  %v9261_v26 = vpop.eup %6328  ;;  %6332 = vpow2.f32 %v4431_v8  ;;  %v5051_v56 = vpop.xlane.xlu2 %5050 }
 0xd91   : > { %v5083_v54 = vpack.c.bf16 %v9261_v26, %v9259_v50  ;;  %6334 = vrcp.f32 %v5051_v56 }
 0xd94   : > { %v9265_v44 = vpop.f32.mrf.mxu2 }
 0xd95   : > { %v9267_v51 = vpop.eup %6330 }
 0xd96   : > { %v9269_v17 = vpop.eup %6332 }
 0xd97   : > { %4005 = vrot.lane.b32.xlu1 %v3970_v6, %s6598_s10  ;;  %v4472_v10 = vpack.c.bf16 %v9269_v17, %v9267_v51  ;;  %v6335_v15 = vpop.eup %6334 }
 0xd98   : > { %4546 = vmatmul.bf16.gmra.mxu0 %v4470_v55  ;;  %v5053_v27 = vpop.xlane.xlu2 %5052 }
 0xd9c   : > { %v9273_v31 = vpop.f32.mrf.mxu2 }
 0xda0   : > { %5162 = vmatmul.bf16.gmra.mxu2 %v5082_v30  ;;  %v9278_v3 = vpop.f32.mrf.mxu0 }
 0xda4   : > { %v9275_v11 = vpop.f32.mrf.mxu2 }
 0xda8   : > { %4551 = vmatmul.bf16.gmra.mxu0 %v4471_v48  ;;  %v9282_v55 = vpop.f32.mrf.mxu0 }
 0xdac   : > { %v9280_v6 = vpop.f32.mrf.mxu2 }
 0xdb0   : > { %5167 = vmatmul.bf16.gmra.mxu2 %v5083_v54 }
 0xdb8   : > { %4556 = vmatmul.bf16.gmra.mxu0 %v4472_v10 }
 0xdc1   : > { %3842 = vadd.xlane.f32.xlu1 %v9087_v47 }
 0xdc9   : > { %v4440_v24 = vpop.xlane.xlu1 %4439 }
 0xdca   : > { %6336 = vrcp.f32 %v4440_v24 }
 0xdcb   : > { %6338 = vrcp.f32 %v3831_v63 }
 0xdcc   : > { %6340 = vrcp.f32 %v5053_v27 }
 0xdd0   : > { %v6337_v58 = vpop.eup %6336 }
 0xdd1   : > { %v4442_v30 = vpop.xlane.xlu1 %4441  ;;  %v6339_v48 = vpop.eup %6338 }
 0xdd2   : > { %6342 = vrcp.f32 %v4442_v30  ;;  %v6341_v33 = vpop.eup %6340  ;;  %v3971_v63 = vmul.f32 %v6339_v48, %v9188_v21  ;;  %v5055_v21 = vpop.xlane.xlu2 %5054  ;;  %v5315_v48 = vld [vmem:[#allocation9 + $0x68] sm:$0xff] }
 0xdd3   : > { %v9284_v57 = vpop.f32.mrf.mxu2 }
 0xdd5   : > { %v9286_v42 = vpop.f32.mrf.mxu0 }
 0xdd8   : > { %v6343_v10 = vpop.eup %6342 }
 0xdd9   : > { %v4444_v9 = vpop.xlane.xlu1 %4443 }
 0xddb   : > { %v5140_v28 = vpop.f32.mrf.mxu2 }
 0xddc   : > { %v5192_v47 = vmul.f32 %v6335_v15, %v5140_v28 }
 0xddd   : > { %v4529_v25 = vpop.f32.mrf.mxu0 }
 0xdde   : > { %v4581_v19 = vmul.f32 %v6337_v58, %v4529_v25  ;;  %5227 = vrot.lane.b32.xlu2 %v5192_v47, %s6597_s26  ;;  %v3833_v47 = vpop.xlane.xlu0 %3832  ;;  %v5317_v25 = vld [vmem:[#allocation9 + $0x78] sm:$0xff] }
 0xddf   : > { %5789 = vmatpush.msra.mxu3 %v5317_v25  ;;  %5788 = vmatpush.msrb.mxu2 %v5317_v25 }
 0xde0   : > { %4616 = vrot.lane.b32.xlu0 %v4581_v19, %s6596_s21  ;;  %v5316_v19 = vld [vmem:[#allocation9 + $0x70] sm:$0xff]  ;;  %5787 = vmatpush.msrb.mxu1 %v5317_v25 }
 0xde1   : > { %v9294_v27 = vpop.xlane.xlu1 %4445  ;;  %5322 = vmatpush.msrb.mxu0 %v5317_v25  ;;  %5792 = vmatpush.msra.mxu3 %v5316_v19 }
 0xde2   : > { %5791 = vmatpush.msrb.mxu2 %v5316_v19  ;;  %5790 = vmatpush.msrb.mxu1 %v5316_v19 }
 0xde3   : > { %v5143_v8 = vpop.f32.mrf.mxu2  ;;  %5323 = vmatpush.msrb.mxu0 %v5316_v19  ;;  %5795 = vmatpush.msra.mxu3 %v5315_v48 }
 0xde4   : > { %v5193_v54 = vmul.f32 %v6341_v33, %v5143_v8  ;;  %5794 = vmatpush.msrb.mxu2 %v5315_v48  ;;  %5793 = vmatpush.msrb.mxu1 %v5315_v48  ;;  %v5312_v8 = vld [vmem:[#allocation9 + $0x50] sm:$0xff] }
 0xde5   : > { %v4532_v24 = vpop.f32.mrf.mxu0  ;;  %5324 = vmatpush.msrb.mxu0 %v5315_v48  ;;  %v5307_v48 = vld [vmem:[#allocation9 + $0x28] sm:$0xff] }
 0xde6   : > { %v4582_v56 = vmul.f32 %v6343_v10, %v4532_v24  ;;  %5229 = vrot.lane.b32.xlu1 %v5193_v54, %s6597_s26  ;;  %v3835_v58 = vpop.xlane.xlu0 %3834  ;;  %v5311_v24 = vld [vmem:[#allocation9 + $0x48] sm:$0xff] }
 0xde7   : > { %6344 = vrcp.f32 %v3835_v58 }
 0xde8   : > { %4618 = vrot.lane.b32.xlu2 %v4582_v56, %s6596_s21  ;;  %4007 = vrot.lane.b32.xlu0 %v3971_v63, %s6598_s10  ;;  %6346 = vrcp.f32 %v4444_v9  ;;  %v5310_v63 = vld [vmem:[#allocation9 + $0x40] sm:$0xff] }
 0xde9   : > { %v9296_v30 = vpop.xlane.xlu1 %4447  ;;  %6348 = vrcp.f32 %v3833_v47 }
 0xdea   : > { %6350 = vrcp.f32 %v5055_v21  ;;  %v5308_v21 = vld [vmem:[#allocation9 + $0x30] sm:$0xff] }
 0xdeb   : > { %v5145_v47 = vpop.f32.mrf.mxu2  ;;  %6352 = vrcp.f32 %v9296_v30 }
 0xded   : > { %v4534_v33 = vpop.f32.mrf.mxu0 }
 0xdf1   : > { %v9298_v15 = vpop.xlane.xlu1 %4449 }
 0xe09   : > { %v4006_v28 = vpop.permute.xlu1 %4005 }
 0xe0a   : > { %4051 = vst.msk [vmem:[#allocation3 + $0x18] sm:$0xff] %vm4047_vm5, %v4006_v28  ;;  %v5309_v28 = vld [vmem:[#allocation9 + $0x38] sm:$0xff] }
 0xe10   : > { %4455 = vadd.xlane.f32.xlu1 %v9231_v32  ;;  %v6345_v32 = vpop.eup %6344 }
 0xe11   : > { %5064 = vadd.xlane.f32.xlu2 %v9221_v16  ;;  %v5314_v16 = vld [vmem:[#allocation9 + $0x60] sm:$0xff]  ;;  %v6347_v9 = vpop.eup %6346  ;;  %v3973_v10 = vmul.f32 %v6345_v32, %v9200_v34  ;;  %v3837_v32 = vpop.xlane.xlu0 %3836 }
 0xe12   : > { %4453 = vadd.xlane.f32.xlu0 %v9229_v61  ;;  %v9305_v61 = vpop.xlane.xlu2 %5056  ;;  %5798 = vmatpush.msra.mxu3 %v5314_v16  ;;  %v4583_v54 = vmul.f32 %v6347_v9, %v4534_v33  ;;  %v6349_v56 = vpop.eup %6348  ;;  %v5302_v9 = vld [vmem:[#allocation9] sm:$0xff] }
 0xe13   : > { %5797 = vmatpush.msrb.mxu2 %v5314_v16  ;;  %5796 = vmatpush.msrb.mxu1 %v5314_v16  ;;  %v3972_v34 = vmul.f32 %v6349_v56, %v9195_v1  ;;  %v6351_v25 = vpop.eup %6350  ;;  %v5306_v1 = vld [vmem:[#allocation9 + $0x20] sm:$0xff]  ;;  %6354 = vrcp.f32 %v9305_v61 }
 0xe14   : > { %5325 = vmatpush.msrb.mxu0 %v5314_v16  ;;  %v5194_v19 = vmul.f32 %v6351_v25, %v5145_v47  ;;  %v5305_v16 = vld [vmem:[#allocation9 + $0x18] sm:$0xff]  ;;  %6356 = vrcp.f32 %v9294_v27 }
 0xe15   : > { %6358 = vrcp.f32 %v3837_v32 }
 0xe1a   : > { %3844 = vadd.xlane.f32.xlu0 %v9089_v23  ;;  %v5313_v23 = vld [vmem:[#allocation9 + $0x58] sm:$0xff]  ;;  %v9311_v58 = vpop.xlane.xlu2 %5058 }
 0xe1b   : > { %5801 = vmatpush.msra.mxu3 %v5313_v23  ;;  %5800 = vmatpush.msrb.mxu2 %v5313_v23 }
 0xe1c   : > { %5799 = vmatpush.msrb.mxu1 %v5313_v23  ;;  %5326 = vmatpush.msrb.mxu0 %v5313_v23  ;;  %v5304_v23 = vld [vmem:[#allocation9 + $0x10] sm:$0xff] }
 0xe1d   : > { %5804 = vmatpush.msra.mxu3 %v5312_v8  ;;  %5803 = vmatpush.msrb.mxu2 %v5312_v8 }
 0xe1e   : > { %5802 = vmatpush.msrb.mxu1 %v5312_v8  ;;  %5327 = vmatpush.msrb.mxu0 %v5312_v8  ;;  %v5303_v8 = vld [vmem:[#allocation9 + $0x8] sm:$0xff] }
 0xe1f   : > { %5807 = vmatpush.msra.mxu3 %v5311_v24  ;;  %5806 = vmatpush.msrb.mxu2 %v5311_v24 }
 0xe20   : > { %5805 = vmatpush.msrb.mxu1 %v5311_v24  ;;  %5328 = vmatpush.msrb.mxu0 %v5311_v24 }
 0xe21   : > { %5810 = vmatpush.msra.mxu3 %v5310_v63  ;;  %5809 = vmatpush.msrb.mxu2 %v5310_v63 }
 0xe22   : > { %5808 = vmatpush.msrb.mxu1 %v5310_v63  ;;  %5329 = vmatpush.msrb.mxu0 %v5310_v63  ;;  %v9315_v33 = vpop.xlane.xlu2 %5060 }
 0xe23   : > { %5813 = vmatpush.msra.mxu3 %v5309_v28  ;;  %5812 = vmatpush.msrb.mxu2 %v5309_v28 }
 0xe24   : > { %5811 = vmatpush.msrb.mxu1 %v5309_v28  ;;  %5330 = vmatpush.msrb.mxu0 %v5309_v28 }
 0xe25   : > { %5816 = vmatpush.msra.mxu3 %v5308_v21  ;;  %5815 = vmatpush.msrb.mxu2 %v5308_v21 }
 0xe26   : > { %5814 = vmatpush.msrb.mxu1 %v5308_v21  ;;  %5331 = vmatpush.msrb.mxu0 %v5308_v21 }
 0xe27   : > { %5819 = vmatpush.msra.mxu3 %v5307_v48  ;;  %5818 = vmatpush.msrb.mxu2 %v5307_v48 }
 0xe28   : > { %5817 = vmatpush.msrb.mxu1 %v5307_v48  ;;  %5332 = vmatpush.msrb.mxu0 %v5307_v48  ;;  %v4537_v48 = vpop.f32.mrf.mxu0 }
 0xe29   : > { %4620 = vrot.lane.b32.xlu2 %v4583_v54, %s6596_s21  ;;  %4011 = vrot.lane.b32.xlu1 %v3973_v10, %s6598_s10  ;;  %v9317_v54 = vpop.xlane.xlu0 %3838 }
 0xe2a   : > { %5822 = vmatpush.msra.mxu3 %v5306_v1  ;;  %5821 = vmatpush.msrb.mxu2 %v5306_v1  ;;  %v9319_v10 = vpop.xlane.xlu2 %4451  ;;  %6360 = vrcp.f32 %v9317_v54 }
 0xe2b   : > { %5820 = vmatpush.msrb.mxu1 %v5306_v1  ;;  %5333 = vmatpush.msrb.mxu0 %v5306_v1  ;;  %6362 = vrcp.f32 %v9311_v58 }
 0xe2c   : > { %5825 = vmatpush.msra.mxu3 %v5305_v16  ;;  %5824 = vmatpush.msrb.mxu2 %v5305_v16 }
 0xe2d   : > { %5823 = vmatpush.msrb.mxu1 %v5305_v16  ;;  %5334 = vmatpush.msrb.mxu0 %v5305_v16  ;;  %v5148_v16 = vpop.f32.mrf.mxu2 }
 0xe2e   : > { %4009 = vrot.lane.b32.xlu0 %v3972_v34, %s6598_s10  ;;  %5828 = vmatpush.msra.mxu3 %v5304_v23 }
 0xe2f   : > { %5827 = vmatpush.msrb.mxu2 %v5304_v23  ;;  %5826 = vmatpush.msrb.mxu1 %v5304_v23 }
 0xe30   : > { %5831 = vmatpush.msra.mxu3 %v5303_v8  ;;  %5335 = vmatpush.msrb.mxu0 %v5304_v23 }
 0xe31   : > { %5231 = vrot.lane.b32.xlu2 %v5194_v19, %s6597_s26  ;;  %5830 = vmatpush.msrb.mxu2 %v5303_v8  ;;  %v9321_v24 = vpop.xlane.xlu0 %3840 }
 0xe32   : > { %5834 = vmatpush.msra.mxu3 %v5302_v9  ;;  %5829 = vmatpush.msrb.mxu1 %v5303_v8  ;;  %v9323_v56 = vpop.xlane.xlu2 %5062  ;;  %6364 = vrcp.f32 %v9321_v24 }
 0xe33   : > { %5833 = vmatpush.msrb.mxu2 %v5302_v9  ;;  %5336 = vmatpush.msrb.mxu0 %v5303_v8  ;;  %6366 = vrcp.f32 %v9298_v15 }
 0xe34   : > { %5832 = vmatpush.msrb.mxu1 %v5302_v9  ;;  %v9327_v47 = vpop.xlane.xlu1 %3842  ;;  %6368 = vrcp.f32 %v9315_v33 }
 0xe35   : > { %5337 = vmatpush.msrb.mxu0 %v5302_v9  ;;  %6370 = vrcp.f32 %v9319_v10 }
 0xe36   : > { %6372 = vrcp.f32 %v9327_v47 }
 0xe37   : > { %6374 = vrcp.f32 %v9323_v56 }
 0xe3a   : > { %v5228_v28 = vpop.permute.xlu2 %5227 }
 0xe42   : > { %v4619_v21 = vpop.permute.xlu2 %4618 }
 0xe52   : > { %v4617_v63 = vpop.permute.xlu0 %4616 }
 0xe53   : > { %4662 = vst.msk [vmem:[#allocation3 + $0x18] sm:$0xff] %vm4658_vm6, %v4617_v63  ;;  %5068 = vadd.xlane.f32.xlu1 %v9239_v20 }
 0xe54   : > { %5273 = vst.msk [vmem:[#allocation3 + $0x18] sm:$0xff] %vm5269_vm7, %v5228_v28 }
 0xe58   : > { %5066 = vadd.xlane.f32.xlu0 %v9219_v41  ;;  %v5230_v19 = vpop.permute.xlu1 %5229  ;;  %v4539_v41 = vpop.f32.mrf.mxu0 }
 0xe5a   : > { %3846 = vadd.xlane.f32.xlu2 %v9100_v4  ;;  %v4008_v34 = vpop.permute.xlu0 %4007  ;;  %v6353_v4 = vpop.eup %6352 }
 0xe5b   : > { %4052 = vst.msk [vmem:[#allocation3 + $0x20] sm:$0xff] %vm4047_vm5, %v4008_v34  ;;  %v5289_v25 = vld [vmem:[#allocation3 + $0x18] sm:$0xff]  ;;  %v4585_v1 = vmul.f32 %v6353_v4, %v4539_v41  ;;  %v6355_v23 = vpop.eup %6354 }
 0xe5c   : > { %4663 = vst.msk [vmem:[#allocation3 + $0x20] sm:$0xff] %vm4658_vm6, %v4619_v21  ;;  %5347 = vmatmul.f32.vlgmr.msra.gmra.mxu3 %v5289_v25  ;;  %v5195_v8 = vmul.f32 %v6355_v23, %v5148_v16  ;;  %v6357_v9 = vpop.eup %6356  ;;  %v9381_v16 = vld [vmem:[%s9565_s3] ss:$0 sm:$0xff] }
 0xe5d   : > { %5274 = vst.msk [vmem:[#allocation3 + $0x20] sm:$0xff] %vm5269_vm7, %v5230_v19  ;;  %v4584_v63 = vmul.f32 %v6357_v9, %v4537_v48 }
 0xe60   : > { %4457 = vadd.xlane.f32.xlu0 %v9251_v35  ;;  %v6359_v35 = vpop.eup %6358 }
 0xe61   : > { %v3974_v30 = vmul.f32 %v6359_v35, %v9204_v18 }
 0xe64   : > { %v5290_v20 = vld [vmem:[#allocation3 + $0x20] sm:$0xff] }
 0xe65   : > { %5350 = vmatmul.f32.gmra.mxu3 %v5290_v20 }
 0xe6c   : > { %4624 = vrot.lane.b32.xlu1 %v4585_v1, %s6596_s21 }
 0xe72   : > { %5233 = vrot.lane.b32.xlu2 %v5195_v8, %s6597_s26 }
 0xe74   : > { %4622 = vrot.lane.b32.xlu0 %v4584_v63, %s6596_s21 }
 0xe7a   : > { %4013 = vrot.lane.b32.xlu2 %v3974_v30, %s6598_s10 }
 0xe83   : > { %v9348_v28 = vpop.xlane.xlu1 %4455 }
 0xe84   : > { %v9344_v61 = vpop.xlane.xlu2 %5064  ;;  %6376 = vrcp.f32 %v9348_v28 }
 0xe85   : > { %v9346_v27 = vpop.xlane.xlu0 %4453 }
 0xe8c   : > { %v4621_v32 = vpop.permute.xlu2 %4620 }
 0xe8d   : > { %v9351_v34 = vpop.xlane.xlu0 %3844 }
 0xe94   : > { %v5232_v25 = vpop.permute.xlu2 %5231 }
 0xe96   : > { %3850 = vadd.xlane.f32.xlu1 %v9108_v53 }
 0xe9b   : > { %v4012_v21 = vpop.permute.xlu1 %4011 }
 0xe9c   : > { %4054 = vst.msk [vmem:[#allocation3 + $0x30] sm:$0xff] %vm4047_vm5, %v4012_v21 }
 0xe9e   : > { %3848 = vadd.xlane.f32.xlu0 %v9098_v46  ;;  %5072 = vadd.xlane.f32.xlu1 %v9259_v50  ;;  %v5150_v46 = vpop.f32.mrf.mxu2  ;;  %v6361_v50 = vpop.eup %6360 }
 0xe9f   : > { %v6363_v19 = vpop.eup %6362  ;;  %v3975_v20 = vmul.f32 %v6361_v50, %v9209_v5 }
 0xea0   : > { %v4010_v18 = vpop.permute.xlu0 %4009  ;;  %v5196_v48 = vmul.f32 %v6363_v19, %v5150_v46  ;;  %v6365_v41 = vpop.eup %6364 }
 0xea1   : > { %4053 = vst.msk [vmem:[#allocation3 + $0x28] sm:$0xff] %vm4047_vm5, %v4010_v18 }
 0xea2   : > { %4664 = vst.msk [vmem:[#allocation3 + $0x28] sm:$0xff] %vm4658_vm6, %v4621_v32 }
 0xea3   : > { %5275 = vst.msk [vmem:[#allocation3 + $0x28] sm:$0xff] %vm5269_vm7, %v5232_v25  ;;  %4459 = vadd.xlane.f32.xlu2 %v9249_v36  ;;  %v6367_v36 = vpop.eup %6366 }
 0xea4   : > { %v6369_v5 = vpop.eup %6368 }
 0xea5   : > { %v6371_v18 = vpop.eup %6370 }
 0xea6   : > { %5070 = vadd.xlane.f32.xlu0 %v9243_v39  ;;  %3826 = vadd.xlane.f32.xlu1 %v8957_v59  ;;  %v3976_v59 = vmul.f32 %v6365_v41, %v9212_v38  ;;  %v4542_v39 = vpop.f32.mrf.mxu0  ;;  %v5153_v54 = vpop.f32.mrf.mxu2 }
 0xea7   : > { %v4586_v58 = vmul.f32 %v6367_v36, %v4542_v39  ;;  %v5197_v24 = vmul.f32 %v6369_v5, %v5153_v54 }
 0xeaa   : > { %v5291_v53 = vld [vmem:[#allocation3 + $0x28] sm:$0xff] }
 0xeab   : > { %5353 = vmatmul.f32.gmra.mxu3 %v5291_v53 }
 0xeba   : > { %5235 = vrot.lane.b32.xlu0 %v5196_v48, %s6597_s26 }
 0xebb   : > { %4015 = vrot.lane.b32.xlu2 %v3975_v20, %s6598_s10 }
 0xebf   : > { %4017 = vrot.lane.b32.xlu1 %v3976_v59, %s6598_s10 }
 0xec3   : > { %4626 = vrot.lane.b32.xlu2 %v4586_v58, %s6596_s21 }
 0xec6   : > { %v9376_v38 = vpop.xlane.xlu1 %5068 }
 0xecb   : > { %5237 = vrot.lane.b32.xlu2 %v5197_v24, %s6597_s26  ;;  %v9374_v4 = vpop.xlane.xlu0 %5066 }
 0xecd   : > { %v3847_v15 = vpop.xlane.xlu2 %3846 }
 0xece   : > { %6378 = vrcp.f32 %v3847_v15 }
 0xed3   : > { %v9383_v23 = vpop.xlane.xlu0 %4457 }
 0xed5   : > { %v5234_v1 = vpop.permute.xlu2 %5233 }
 0xedd   : > { %v4014_v33 = vpop.permute.xlu2 %4013 }
 0xede   : > { %4055 = vst.msk [vmem:[#allocation3 + $0x38] sm:$0xff] %vm4047_vm5, %v4014_v33  ;;  %v4625_v8 = vpop.permute.xlu1 %4624 }
 0xedf   : > { %4666 = vst.msk [vmem:[#allocation3 + $0x38] sm:$0xff] %vm4658_vm6, %v4625_v8  ;;  %v5348_v9 = vpop.f32.mrf.mxu3 }
 0xee0   : > { %v5349_v63 = vadd.f32 %v9381_v16, %v5348_v9 }
 0xee2   : > { %5390 = vst [vmem:[%s9390_s25 + $0x18] sm:$0xff] %v5349_v63 }
 0xee4   : > { %4461 = vadd.xlane.f32.xlu0 %v9267_v51  ;;  %v4544_v51 = vpop.f32.mrf.mxu0 }
 0xee5   : > { %v4587_v25 = vmul.f32 %v6371_v18, %v4544_v51 }
 0xee6   : > { %v4623_v35 = vpop.permute.xlu0 %4622 }
 0xee7   : > { %4665 = vst.msk [vmem:[#allocation3 + $0x30] sm:$0xff] %vm4658_vm6, %v4623_v35 }
 0xee8   : > { %5276 = vst.msk [vmem:[#allocation3 + $0x30] sm:$0xff] %vm5269_vm7, %v5234_v1  ;;  %v5351_v30 = vpop.f32.mrf.mxu3 }
 0xee9   : > { %v5352_v32 = vadd.f32 %v9381_v16, %v5351_v30  ;;  %5048 = vadd.xlane.f32.xlu1 %v9184_v29  ;;  %v6373_v29 = vpop.eup %6372 }
 0xeeb   : > { %5391 = vst [vmem:[%s9390_s25 + $0x20] sm:$0xff] %v5352_v32 }
 0xeec   : > { %4437 = vadd.xlane.f32.xlu0 %v9191_v12  ;;  %v4547_v12 = vpop.f32.mrf.mxu0 }
 0xeef   : > { %v5292_v21 = vld [vmem:[#allocation3 + $0x30] sm:$0xff] }
 0xef0   : > { %5356 = vmatmul.f32.gmra.mxu3 %v5292_v21 }
 0xef1   : > { %5044 = vadd.xlane.f32.xlu1 %v9146_v62  ;;  %v5155_v62 = vpop.f32.mrf.mxu2 }
 0xef4   : > { %4463 = vadd.xlane.f32.xlu0 %v9269_v17  ;;  %3852 = vadd.xlane.f32.xlu2 %v9110_v22  ;;  %v3977_v22 = vmul.f32 %v6373_v29, %v9217_v52 }
 0xef9   : > { %v5158_v24 = vpop.f32.mrf.mxu2 }
 0xefc   : > { %5074 = vadd.xlane.f32.xlu2 %v9261_v26  ;;  %v6375_v26 = vpop.eup %6374 }
 0xefd   : > { %v6377_v17 = vpop.eup %6376  ;;  %v5198_v10 = vmul.f32 %v6375_v26, %v5155_v62 }
 0xefe   : > { %v6379_v52 = vpop.eup %6378 }
 0xeff   : > { %v3979_v46 = vmul.f32 %v6379_v52, %v9241_v7 }
 0xf01   : > { %v5160_v33 = vpop.f32.mrf.mxu2 }
 0xf04   : > { %3822 = vadd.xlane.f32.xlu2 %v8923_v45  ;;  %v4549_v45 = vpop.f32.mrf.mxu0 }
 0xf05   : > { %v4589_v56 = vmul.f32 %v6377_v17, %v4549_v45 }
 0xf08   : > { %4628 = vrot.lane.b32.xlu0 %v4587_v25, %s6596_s21 }
 0xf09   : > { %v3851_v47 = vpop.xlane.xlu1 %3850  ;;  %v5163_v63 = vpop.f32.mrf.mxu2 }
 0xf0a   : > { %4019 = vrot.lane.b32.xlu1 %v3977_v22, %s6598_s10 }
 0xf0c   : > { %4433 = vadd.xlane.f32.xlu2 %v9163_v2  ;;  %v4552_v32 = vpop.f32.mrf.mxu0 }
 0xf10   : > { %5239 = vrot.lane.b32.xlu0 %v5198_v10, %s6597_s26 }
 0xf11   : > { %v3849_v28 = vpop.xlane.xlu0 %3848  ;;  %v5073_v2 = vpop.xlane.xlu1 %5072 }
 0xf12   : > { %4632 = vrot.lane.b32.xlu1 %v4589_v56, %s6596_s21  ;;  %6380 = vrcp.f32 %v3849_v28 }
 0xf13   : > { %6382 = vrcp.f32 %v3851_v47 }
 0xf14   : > { %4435 = vadd.xlane.f32.xlu2 %v9165_v37 }
 0xf16   : > { %v9416_v53 = vpop.xlane.xlu2 %4459 }
 0xf18   : > { %v6381_v50 = vpop.eup %6380 }
 0xf19   : > { %v3980_v48 = vmul.f32 %v6381_v50, %v9253_v60  ;;  %v3827_v37 = vpop.xlane.xlu1 %3826  ;;  %v5071_v20 = vpop.xlane.xlu0 %5070 }
 0xf1a   : > { %4023 = vrot.lane.b32.xlu1 %v3979_v46, %s6598_s10  ;;  %v6383_v41 = vpop.eup %6382  ;;  %6384 = vrcp.f32 %v3827_v37 }
 0xf1b   : > { %v3981_v7 = vmul.f32 %v6383_v41, %v9265_v44  ;;  %6386 = vrcp.f32 %v9346_v27 }
 0xf1c   : > { %5046 = vadd.xlane.f32.xlu2 %v9149_v14  ;;  %6388 = vrcp.f32 %v9351_v34 }
 0xf1d   : > { %6390 = vrcp.f32 %v9374_v4 }
 0xf1e   : > { %v4016_v19 = vpop.permute.xlu2 %4015  ;;  %6392 = vrcp.f32 %v9376_v38  ;;  %v5165_v38 = vpop.f32.mrf.mxu2 }
 0xf1f   : > { %4056 = vst.msk [vmem:[#allocation3 + $0x40] sm:$0xff] %vm4047_vm5, %v4016_v19  ;;  %6394 = vrcp.f32 %v9344_v61 }
 0xf20   : > { %v6385_v39 = vpop.eup %6384  ;;  %6396 = vrcp.f32 %v5071_v20 }
 0xf21   : > { %v6387_v58 = vpop.eup %6386  ;;  %v3969_v5 = vmul.f32 %v6385_v39, %v9177_v13  ;;  %6398 = vrcp.f32 %v9383_v23 }
 0xf22   : > { %4025 = vrot.lane.b32.xlu1 %v3980_v48, %s6598_s10  ;;  %v4588_v27 = vmul.f32 %v6387_v58, %v4547_v12  ;;  %v6389_v1 = vpop.eup %6388  ;;  %6400 = vrcp.f32 %v5073_v2  ;;  %v4554_v12 = vpop.f32.mrf.mxu0 }
 0xf23   : > { %v3978_v13 = vmul.f32 %v6389_v1, %v9227_v0  ;;  %v6391_v8 = vpop.eup %6390  ;;  %6402 = vrcp.f32 %v9416_v53 }
 0xf24   : > { %v5200_v9 = vmul.f32 %v6391_v8, %v5160_v33  ;;  %v6393_v35 = vpop.eup %6392 }
 0xf25   : > { %v6395_v4 = vpop.eup %6394 }
 0xf26   : > { %v4627_v59 = vpop.permute.xlu2 %4626  ;;  %v5199_v0 = vmul.f32 %v6395_v4, %v5158_v24  ;;  %v6397_v30 = vpop.eup %6396 }
 0xf27   : > { %4667 = vst.msk [vmem:[#allocation3 + $0x40] sm:$0xff] %vm4658_vm6, %v4627_v59  ;;  %v6399_v21 = vpop.eup %6398  ;;  %v5202_v61 = vmul.f32 %v6397_v30, %v5165_v38  ;;  %v5168_v25 = vpop.f32.mrf.mxu2 }
 0xf28   : > { %v4590_v51 = vmul.f32 %v6399_v21, %v4552_v32  ;;  %v6401_v18 = vpop.eup %6400 }
 0xf29   : > { %v6403_v29 = vpop.eup %6402  ;;  %v5203_v22 = vmul.f32 %v6401_v18, %v5168_v25 }
 0xf2a   : > { %4027 = vrot.lane.b32.xlu1 %v3981_v7, %s6598_s10  ;;  %v4591_v62 = vmul.f32 %v6403_v29, %v4554_v12  ;;  %v4557_v10 = vpop.f32.mrf.mxu0 }
 0xf2c   : > { %v5236_v14 = vpop.permute.xlu0 %5235 }
 0xf2d   : > { %5277 = vst.msk [vmem:[#allocation3 + $0x38] sm:$0xff] %vm5269_vm7, %v5236_v14 }
 0xf2e   : > { %v5238_v60 = vpop.permute.xlu2 %5237  ;;  %v5354_v36 = vpop.f32.mrf.mxu3 }
 0xf2f   : > { %5278 = vst.msk [vmem:[#allocation3 + $0x40] sm:$0xff] %vm5269_vm7, %v5238_v60  ;;  %v5355_v54 = vadd.f32 %v9381_v16, %v5354_v36  ;;  %v5170_v14 = vpop.f32.mrf.mxu2 }
 0xf31   : > { %5392 = vst [vmem:[%s9390_s25 + $0x28] sm:$0xff] %v5355_v54  ;;  %v4018_v44 = vpop.permute.xlu1 %4017 }
 0xf32   : > { %4057 = vst.msk [vmem:[#allocation3 + $0x48] sm:$0xff] %vm4047_vm5, %v4018_v44  ;;  %4003 = vrot.lane.b32.xlu1 %v3969_v5, %s6598_s10  ;;  %v4559_v50 = vpop.f32.mrf.mxu0 }
 0xf34   : > { %4630 = vrot.lane.b32.xlu2 %v4588_v27, %s6596_s21  ;;  %v5293_v15 = vld [vmem:[#allocation3 + $0x38] sm:$0xff] }
 0xf35   : > { %5359 = vmatmul.f32.gmra.mxu3 %v5293_v15 }
 0xf36   : > { %v5294_v34 = vld [vmem:[#allocation3 + $0x40] sm:$0xff] }
 0xf3a   : > { %3824 = vadd.xlane.f32.xlu0 %v8921_v49  ;;  %v5201_v49 = vmul.f32 %v6393_v35, %v5163_v63 }
 0xf3c   : > { %4021 = vrot.lane.b32.xlu2 %v3978_v13, %s6598_s10 }
 0xf3d   : > { %5362 = vmatmul.f32.gmra.mxu3 %v5294_v34 }
 0xf44   : > { %5243 = vrot.lane.b32.xlu2 %v5200_v9, %s6597_s26 }
 0xf4c   : > { %5245 = vrot.lane.b32.xlu2 %v5201_v49, %s6597_s26 }
 0xf4e   : > { %5241 = vrot.lane.b32.xlu0 %v5199_v0, %s6597_s26 }
 0xf54   : > { %5247 = vrot.lane.b32.xlu2 %v5202_v61, %s6597_s26 }
 0xf56   : > { %4634 = vrot.lane.b32.xlu0 %v4590_v51, %s6596_s21 }
 0xf57   : > { %v4462_v23 = vpop.xlane.xlu0 %4461 }
 0xf58   : > { %6404 = vrcp.f32 %v4462_v23 }
 0xf5c   : > { %5249 = vrot.lane.b32.xlu2 %v5203_v22, %s6597_s26  ;;  %v5049_v53 = vpop.xlane.xlu1 %5048 }
 0xf5e   : > { %4636 = vrot.lane.b32.xlu0 %v4591_v62, %s6596_s21  ;;  %v6405_v17 = vpop.eup %6404 }
 0xf5f   : > { %v4438_v26 = vpop.xlane.xlu0 %4437  ;;  %v4592_v45 = vmul.f32 %v6405_v17, %v4557_v10 }
 0xf60   : > { %6406 = vrcp.f32 %v4438_v26 }
 0xf64   : > { %v5045_v41 = vpop.xlane.xlu1 %5044 }
 0xf66   : > { %v6407_v47 = vpop.eup %6406  ;;  %4638 = vrot.lane.b32.xlu0 %v4592_v45, %s6596_s21 }
 0xf67   : > { %v3853_v56 = vpop.xlane.xlu2 %3852  ;;  %v4464_v28 = vpop.xlane.xlu0 %4463  ;;  %v4580_v52 = vmul.f32 %v6407_v47, %v9286_v42 }
 0xf68   : > { %6408 = vrcp.f32 %v3853_v56 }
 0xf69   : > { %6410 = vrcp.f32 %v4464_v28  ;;  %4614 = vrot.lane.b32.xlu2 %v4580_v52, %s6596_s21 }
 0xf6a   : > { %6412 = vrcp.f32 %v5049_v53 }
 0xf6e   : > { %v6409_v46 = vpop.eup %6408 }
 0xf6f   : > { %v6411_v2 = vpop.eup %6410  ;;  %v5075_v19 = vpop.xlane.xlu2 %5074  ;;  %v3982_v48 = vmul.f32 %v6409_v46, %v9273_v31 }
 0xf70   : > { %6414 = vrcp.f32 %v5075_v19  ;;  %v4593_v37 = vmul.f32 %v6411_v2, %v4559_v50  ;;  %v6413_v20 = vpop.eup %6412 }
 0xf71   : > { %4029 = vrot.lane.b32.xlu0 %v3982_v48, %s6598_s10  ;;  %v5191_v60 = vmul.f32 %v6413_v20, %v9284_v57 }
 0xf72   : > { %4640 = vrot.lane.b32.xlu1 %v4593_v37, %s6596_s21 }
 0xf73   : > { %v5357_v42 = vpop.f32.mrf.mxu3 }
 0xf74   : > { %v5358_v59 = vadd.f32 %v9381_v16, %v5357_v42 }
 0xf76   : > { %v6415_v7 = vpop.eup %6414  ;;  %5393 = vst [vmem:[%s9390_s25 + $0x30] sm:$0xff] %v5358_v59 }
 0xf77   : > { %v3823_v39 = vpop.xlane.xlu2 %3822  ;;  %v5204_v36 = vmul.f32 %v6415_v7, %v5170_v14 }
 0xf78   : > { %6416 = vrcp.f32 %v3823_v39 }
 0xf79   : > { %5225 = vrot.lane.b32.xlu0 %v5191_v60, %s6597_s26  ;;  %5251 = vrot.lane.b32.xlu2 %v5204_v36, %s6597_s26 }
 0xf7a   : > { %v4629_v31 = vpop.permute.xlu0 %4628 }
 0xf7b   : > { %4668 = vst.msk [vmem:[#allocation3 + $0x48] sm:$0xff] %vm4658_vm6, %v4629_v31 }
 0xf7c   : > { %v4020_v58 = vpop.permute.xlu1 %4019 }
 0xf7d   : > { %4058 = vst.msk [vmem:[#allocation3 + $0x50] sm:$0xff] %vm4047_vm5, %v4020_v58 }
 0xf7e   : > { %v6417_v54 = vpop.eup %6416 }
 0xf7f   : > { %v4434_v5 = vpop.xlane.xlu2 %4433  ;;  %v3967_v24 = vmul.f32 %v6417_v54, %v9171_v43 }
 0xf80   : > { %6418 = vrcp.f32 %v4434_v5 }
 0xf81   : > { %3999 = vrot.lane.b32.xlu1 %v3967_v24, %s6598_s10 }
 0xf82   : > { %v5240_v57 = vpop.permute.xlu0 %5239 }
 0xf83   : > { %5279 = vst.msk [vmem:[#allocation3 + $0x48] sm:$0xff] %vm5269_vm7, %v5240_v57 }
 0xf84   : > { %v4633_v44 = vpop.permute.xlu1 %4632 }
 0xf86   : > { %v6419_v27 = vpop.eup %6418 }
 0xf87   : > { %v4436_v15 = vpop.xlane.xlu2 %4435  ;;  %v4578_v1 = vmul.f32 %v6419_v27, %v9278_v3 }
 0xf88   : > { %6420 = vrcp.f32 %v4436_v15 }
 0xf89   : > { %4610 = vrot.lane.b32.xlu2 %v4578_v1, %s6596_s21 }
 0xf8a   : > { %v5295_v13 = vld [vmem:[#allocation3 + $0x48] sm:$0xff] }
 0xf8b   : > { %5365 = vmatmul.f32.gmra.mxu3 %v5295_v13 }
 0xf8c   : > { %v4024_v33 = vpop.permute.xlu1 %4023 }
 0xf8d   : > { %4060 = vst.msk [vmem:[#allocation3 + $0x60] sm:$0xff] %vm4047_vm5, %v4024_v33 }
 0xf8e   : > { %v6421_v43 = vpop.eup %6420 }
 0xf8f   : > { %v5047_v34 = vpop.xlane.xlu2 %5046  ;;  %v4579_v8 = vmul.f32 %v6421_v43, %v9282_v55 }
 0xf90   : > { %6422 = vrcp.f32 %v5047_v34 }
 0xf91   : > { %4612 = vrot.lane.b32.xlu1 %v4579_v8, %s6596_s21  ;;  %s5404_s21 = scalar_lea.sflag [#allocation6], %s6732_s24 }
 0xf94   : > { %v4026_v9 = vpop.permute.xlu1 %4025 }
 0xf95   : > { %4061 = vst.msk [vmem:[#allocation3 + $0x68] sm:$0xff] %vm4047_vm5, %v4026_v9 }
 0xf96   : > { %v6423_v63 = vpop.eup %6422 }
 0xf97   : > { %v4631_v3 = vpop.permute.xlu2 %4630  ;;  %v5190_v35 = vmul.f32 %v6423_v63, %v9280_v6 }
 0xf98   : > { %4669 = vst.msk [vmem:[#allocation3 + $0x50] sm:$0xff] %vm4658_vm6, %v4631_v3 }
 0xf99   : > { %5223 = vrot.lane.b32.xlu2 %v5190_v35, %s6597_s26 }
 0xf9c   : > { %v4028_v4 = vpop.permute.xlu1 %4027 }
 0xf9d   : > { %4062 = vst.msk [vmem:[#allocation3 + $0x70] sm:$0xff] %vm4047_vm5, %v4028_v4 }
 0xf9f   : > { %v4022_v49 = vpop.permute.xlu2 %4021 }
 0xfa0   : > { %4059 = vst.msk [vmem:[#allocation3 + $0x58] sm:$0xff] %vm4047_vm5, %v4022_v49 }
 0xfa1   : > { %4670 = vst.msk [vmem:[#allocation3 + $0x58] sm:$0xff] %vm4658_vm6, %v4633_v44 }
 0xfa4   : > { %v4004_v55 = vpop.permute.xlu1 %4003 }
 0xfa5   : > { %4050 = vst.msk [vmem:[#allocation3 + $0x10] sm:$0xff] %vm4047_vm5, %v4004_v55 }
 0xfa7   : > { %v5244_v0 = vpop.permute.xlu2 %5243 }
 0xfa8   : > { %5281 = vst.msk [vmem:[#allocation3 + $0x58] sm:$0xff] %vm5269_vm7, %v5244_v0 }
 0xfad   : > { %v3825_v6 = vpop.xlane.xlu0 %3824 }
 0xfae   : > { %6424 = vrcp.f32 %v3825_v6 }
 0xfaf   : > { %v5246_v30 = vpop.permute.xlu2 %5245  ;;  %6426 = vrcp.f32 %v5045_v41  ;;  %v5297_v17 = vld [vmem:[#allocation3 + $0x58] sm:$0xff] }
 0xfb4   : > { %v6425_v32 = vpop.eup %6424 }
 0xfb5   : > { %v3968_v38 = vmul.f32 %v6425_v32, %v9174_v40  ;;  %v6427_v18 = vpop.eup %6426 }
 0xfb6   : > { %v5189_v23 = vmul.f32 %v6427_v18, %v9275_v11 }
 0xfb7   : > { %v5248_v21 = vpop.permute.xlu2 %5247  ;;  %4001 = vrot.lane.b32.xlu0 %v3968_v38, %s6598_s10 }
 0xfb8   : > { %v5360_v61 = vpop.f32.mrf.mxu3 }
 0xfb9   : > { %v5361_v51 = vadd.f32 %v9381_v16, %v5360_v61 }
 0xfbb   : > { %5394 = vst [vmem:[%s9390_s25 + $0x38] sm:$0xff] %v5361_v51 }
 0xfbf   : > { %v5250_v29 = vpop.permute.xlu2 %5249  ;;  %5221 = vrot.lane.b32.xlu0 %v5189_v23, %s6597_s26  ;;  %s6532_s26 = sshra.s32 %s5419_s14, 4  ;;  %s6533_s26 = int_to_ptr.hbm [resolvable:$true] %s6532_s26 }
 0xfc0   : > { %v5363_v12 = vpop.f32.mrf.mxu3  ;;  %v5242_v25 = vpop.permute.xlu0 %5241  ;;  %s6534_s19 = scalar_lea.hbm %s6533_s26, 128  ;;  %p6539_p11 = scmp.lt.s32.totalorder %s6533_s26, %s9566_s4 }
 0xfc1   : > { %v5364_v22 = vadd.f32 %v9381_v16, %v5363_v12  ;;  %5280 = vst.msk [vmem:[#allocation3 + $0x50] sm:$0xff] %vm5269_vm7, %v5242_v25  ;;  %p6535_p1 = scmp.ne.s32.totalorder %s6533_s26, %s6534_s19  ;;  %p6540_p9 = scmp.lt.s32.totalorder %s6538_s6, %s6534_s19 }
 0xfc3   : > { %5395 = vst [vmem:[%s9390_s25 + $0x40] sm:$0xff] %v5364_v22  ;;  %p6536_p4 = pnand %p6535_p1, %p6702_p5  ;;  %p6541_p2 = por %p6540_p9, %p6539_p11 }
 0xfc5   : > { %p6537_p8 = pneg %p6536_p4 }
 0xfc7   : > { %v4615_v40 = vpop.permute.xlu2 %4614  ;;  %p6542_p10 = pnand %p6541_p2, %p6537_p8 }
 0xfc8   : > { %4661 = vst.msk [vmem:[#allocation3 + $0x10] sm:$0xff] %vm4658_vm6, %v4615_v40  ;;  %v4635_v62 = vpop.permute.xlu0 %4634  ;;  %v5296_v26 = vld [vmem:[#allocation3 + $0x50] sm:$0xff] }
 0xfc9   : > { %4671 = vst.msk [vmem:[#allocation3 + $0x60] sm:$0xff] %vm4658_vm6, %v4635_v62  ;;  %5368 = vmatmul.f32.gmra.mxu3 %v5296_v26 }
 0xfca   : > { %5282 = vst.msk [vmem:[#allocation3 + $0x60] sm:$0xff] %vm5269_vm7, %v5246_v30 }
 0xfd0   : > { %v4637_v11 = vpop.permute.xlu0 %4636 }
 0xfd1   : > { %4672 = vst.msk [vmem:[#allocation3 + $0x68] sm:$0xff] %vm4658_vm6, %v4637_v11  ;;  %5371 = vmatmul.f32.gmra.mxu3 %v5297_v17  ;;  %v5298_v45 = vld [vmem:[#allocation3 + $0x60] sm:$0xff] }
 0xfd2   : > { %5283 = vst.msk [vmem:[#allocation3 + $0x68] sm:$0xff] %vm5269_vm7, %v5248_v21 }
 0xfd3   : > { %v5252_v52 = vpop.permute.xlu2 %5251 }
 0xfd8   : > { %v4639_v10 = vpop.permute.xlu0 %4638 }
 0xfd9   : > { %4673 = vst.msk [vmem:[#allocation3 + $0x70] sm:$0xff] %vm4658_vm6, %v4639_v10  ;;  %5374 = vmatmul.f32.gmra.mxu3 %v5298_v45  ;;  %v5299_v47 = vld [vmem:[#allocation3 + $0x68] sm:$0xff] }
 0xfda   : > { %5284 = vst.msk [vmem:[#allocation3 + $0x70] sm:$0xff] %vm5269_vm7, %v5250_v29 }
 0xfe1   : > { %5377 = vmatmul.f32.gmra.mxu3 %v5299_v47  ;;  %v5300_v53 = vld [vmem:[#allocation3 + $0x70] sm:$0xff] }
 0xfe3   : > { %v4030_v56 = vpop.permute.xlu0 %4029  ;;  %v4611_v48 = vpop.permute.xlu2 %4610 }
 0xfe4   : > { %v4641_v28 = vpop.permute.xlu1 %4640  ;;  %4063 = vst.msk [vmem:[#allocation3 + $0x78] sm:$0xff] %vm4047_vm5, %v4030_v56 }
 0xfe5   : > { %4674 = vst.msk [vmem:[#allocation3 + $0x78] sm:$0xff] %vm4658_vm6, %v4641_v28 }
 0xfe6   : > { %5285 = vst.msk [vmem:[#allocation3 + $0x78] sm:$0xff] %vm5269_vm7, %v5252_v52 }
 0xfe9   : > { %5380 = vmatmul.f32.gmra.mxu3 %v5300_v53 }
 0xfeb   : > { %v5226_v46 = vpop.permute.xlu0 %5225 }
 0xfec   : > { %5272 = vst.msk [vmem:[#allocation3 + $0x10] sm:$0xff] %vm5269_vm7, %v5226_v46 }
 0xfed   : > { %v5301_v2 = vld [vmem:[#allocation3 + $0x78] sm:$0xff] }
 0xff1   : > { %5383 = vmatmul.f32.gmra.mxu3 %v5301_v2 }
 0xff3   : > { %v4000_v50 = vpop.permute.xlu1 %3999  ;;  %v5288_v19 = vld [vmem:[#allocation3 + $0x10] sm:$0xff]  ;;  %v5224_v59 = vpop.permute.xlu2 %5223 }
 0xff4   : > { %4048 = vst.msk [vmem:[#allocation3] sm:$0xff] %vm4047_vm5, %v4000_v50  ;;  %5344 = vmatmul.f32.vlgmr.msrb.gmra.mxu2 %v5288_v19 }
 0xff5   : > { %4659 = vst.msk [vmem:[#allocation3] sm:$0xff] %vm4658_vm6, %v4611_v48 }
0x1003   : > { %v4613_v41 = vpop.permute.xlu1 %4612 }
0x100e   : > { %v5366_v37 = vpop.f32.mrf.mxu3 }
0x100f   : > { %v5367_v42 = vadd.f32 %v9381_v16, %v5366_v37 }
0x1011   : > { %5396 = vst [vmem:[%s9390_s25 + $0x48] sm:$0xff] %v5367_v42 }
0x1029   : > { %v4002_v20 = vpop.permute.xlu0 %4001 }
0x102a   : > { %4049 = vst.msk [vmem:[#allocation3 + $0x8] sm:$0xff] %vm4047_vm5, %v4002_v20 }
0x102b   : > { %4660 = vst.msk [vmem:[#allocation3 + $0x8] sm:$0xff] %vm4658_vm6, %v4613_v41 }
0x102c   : > { %5271 = vst.msk [vmem:[#allocation3 + $0x8] sm:$0xff] %vm5269_vm7, %v5224_v59 }
0x1031   : > { %v5222_v7 = vpop.permute.xlu0 %5221 }
0x1032   : > { %5270 = vst.msk [vmem:[#allocation3] sm:$0xff] %vm5269_vm7, %v5222_v7 }
0x1033   : > { %v5287_v14 = vld [vmem:[#allocation3 + $0x8] sm:$0xff] }
0x1034   : > { %5341 = vmatmul.f32.vlgmr.msrb.gmra.mxu1 %v5287_v14 }
0x1039   : > { %v5286_v39 = vld [vmem:[#allocation3] sm:$0xff] }
0x103a   : > { %5338 = vmatmul.f32.vlgmr.msrb.gmra.mxu0 %v5286_v39 }
0x104c   : > { %v5369_v60 = vpop.f32.mrf.mxu3 }
0x104d   : > { %v5370_v36 = vadd.f32 %v9381_v16, %v5369_v60 }
0x104f   : > { %5397 = vst [vmem:[%s9390_s25 + $0x50] sm:$0xff] %v5370_v36 }
0x1054   : > { %v5372_v31 = vpop.f32.mrf.mxu3 }
0x1055   : > { %v5373_v58 = vadd.f32 %v9381_v16, %v5372_v31 }
0x1057   : > { %5398 = vst [vmem:[%s9390_s25 + $0x58] sm:$0xff] %v5373_v58 }
0x105c   : > { %v5375_v54 = vpop.f32.mrf.mxu3 }
0x105d   : > { %v5376_v5 = vadd.f32 %v9381_v16, %v5375_v54 }
0x105f   : > { %5399 = vst [vmem:[%s9390_s25 + $0x60] sm:$0xff] %v5376_v5 }
0x1064   : > { %v5378_v24 = vpop.f32.mrf.mxu3 }
0x1065   : > { %v5379_v57 = vadd.f32 %v9381_v16, %v5378_v24 }
0x1067   : > { %5400 = vst [vmem:[%s9390_s25 + $0x68] sm:$0xff] %v5379_v57 }
0x106c   : > { %v5381_v44 = vpop.f32.mrf.mxu3 }
0x106d   : > { %v5382_v27 = vadd.f32 %v9381_v16, %v5381_v44 }
0x106f   : > { %5401 = vst [vmem:[%s9390_s25 + $0x70] sm:$0xff] %v5382_v27 }
0x1074   : > { %v5384_v15 = vpop.f32.mrf.mxu3 }
0x1075   : > { %v5385_v1 = vadd.f32 %v9381_v16, %v5384_v15 }
0x1077   : > { %5402 = vst [vmem:[%s9390_s25 + $0x78] sm:$0xff] %v5385_v1  ;;  %v5345_v13 = vpop.f32.mrf.mxu2 }
0x1078   : > { %v5346_v33 = vadd.f32 %v9381_v16, %v5345_v13 }
0x107a   : > { %5389 = vst [vmem:[%s9390_s25 + $0x10] sm:$0xff] %v5346_v33 }
0x10b1   : > { %v5342_v43 = vpop.f32.mrf.mxu1 }
0x10b2   : > { %v5343_v34 = vadd.f32 %v9381_v16, %v5342_v43 }
0x10b4   : > { %5388 = vst [vmem:[%s9390_s25 + $0x8] sm:$0xff] %v5343_v34 }
0x10b7   : > { %v5339_v8 = vpop.f32.mrf.mxu0 }
0x10b8   : > { %v5340_v9 = vadd.f32 %v9381_v16, %v5339_v8 }
0x10ba   : > { %5387 = vst [vmem:[%s9390_s25] sm:$0xff] %v5340_v9 }
0x10bb   : > { %6545 = shalt.err (!%p6542_p10)
}
0x10bc   : > { %s6603_s24 = smov 128   ;;  %s6604_s9 = smov 8  }
0x10bd   : > { %5845 = dma.vmem_to_hbm [thread:$0]  (%p6702_p5), %s5417_s13, 2048, %s5419_s14, %s5404_s21, %s6603_s24, %s6603_s24, %s6604_s9  }
0x10be PF: > { %s5433_s27 = sand.u32 1, %s6576_s15   ;;  %p9843_p12 = scmp.ge.s32.totalorder %s6588_s18, 2 }
0x10bf   : > { %s5434_s25 = scalar_lea.sflag [#allocation6], %s5433_s27 }
0x10c0   : > { %p5859_p13 = pnand %p9843_p12, %p6665_p6 }
0x10c2   : > { %p5860_p0 = pneg %p5859_p13 }
0x10c4   : > { %6571 = dma.done.wait (%p5860_p0), %s5434_s25, 2048  }
0x10c5   : > { %6573 = vsyncadd (%p5860_p0), %s5434_s25, 4294965248  ;;  %p18_p3 = scmp.ge.s32.totalorder %s6689_s12, 4   ;;  %s9844_s15 = smov %s6580_s16 }
0x10c6   : > { %s9845_s16 = smov %s6584_s17  ;;  %s9846_s17 = smov %s6698_s20 }
0x10c7   : > { %s9847_s18 = smov %s6689_s12  ;;  %20 = sbr.rel (!%p18_p3) target bundleno = 6 (0x6), region = 89 }
0x10cc   :  { %5440 = vsyncpa [#allocation5], 1 }
0x10cd   :  { %5442 = vsyncpa [#allocation5 + $0x1], 1 }
0x10ce   :  { %5443 = vsyncpa [#allocation8], 1 }
0x10cf   :  { %5444 = vsyncpa [#allocation6], 1 }
0x10d0   :  { %5446 = vsyncpa [#allocation6 + $0x1], 1 }

</bundles_post_ra>
